<compile_context>
chip_gen: v7x
topology: tpu7x:2x2x1
jax: 0.10.0
libtpu: 0.0.40
codegen_flags: <defaults>
</compile_context>

<pallas_src>
import jax
import jax.numpy as jnp
import numpy as np
from jax.experimental import pallas as pl
from jax.experimental.pallas import tpu as pltpu

# ---------------- static problem dimensions (from the PyTorch module) ----------------
H = W = 64                      # input spatial size
C_IN, C1, C2 = 3, 8, 16         # channels: input, conv1 out, conv2 out
KS = 3                          # 3x3 kernels, stride 2, padding 1
H1 = W1 = 32                    # conv1 output spatial
H2 = W2 = 16                    # conv2 output spatial
GW = 17                         # group width: 68/4 phase groups == flattened-output row pitch
FLAT = H2 * GW                  # 272 flattened conv-output lanes (col 16 of each row = junk)
FRONT = GW + 1                  # 18: zero margin so negative tap offsets stay in range
LANES = 384                     # lane width of the pre-assembled im2col rows (multiple of 128)
PLANE_W = LANES + FRONT         # 402: padded width of the phase planes in the wrapper
K1 = KS * KS * C_IN             # 27  contraction depth of conv1
K2 = KS * KS * C1               # 72  contraction depth of conv2
_PREC = jax.lax.Precision.HIGHEST


def _fused_conv_kernel(xa_ref, w1_ref, b1_ref, w2_ref, b2_ref, mask_ref, o_ref):
    """Both convolutions fused; all refs are VMEM and accessed with [...] only.

    xa_ref  : (1, 4, 27, 384)  per-(alpha,beta) pre-assembled conv1 im2col rows
    w1_ref  : (8, 27)          conv1 weights, tap-major / in-channel-minor
    b1_ref  : (8, 1)           conv1 bias with the -0.5 folded in
    w2_ref  : (16, 72)
    b2_ref  : (16, 1)
    mask_ref: (4, 272)         0/1 halo masks: [ones, col0-off, row0-off, both-off]
    o_ref   : (1, 16, 272)     NCHW output, spatial flattened at row pitch 17
    """
    xa = xa_ref[...]
    w1 = w1_ref[...]
    b1 = b1_ref[...]
    w2 = w2_ref[...]
    b2 = b2_ref[...]
    masks = mask_ref[...]

    # conv2 tap (kh2, kw2) needs conv1's relu'd output at rows 2*oh2+kh2-1 and
    # cols 2*ow2+kw2-1 of the (zero-padded) 32x32 activation, i.e. conv1
    # evaluated at a fixed row/col parity (alpha, beta) with an offset
    # (da, db) in {-1, 0}.  Each such slab is one K=27 channel-major matmul on
    # a contiguous 272-lane slice of the pre-assembled im2col rows, followed by
    # bias+relu and (for the halo taps) a 0/1 mask that realizes conv2's
    # zero padding.
    slabs = []
    for kh2 in range(KS):
        alpha, da = (1, -1) if kh2 == 0 else ((0, 0) if kh2 == 1 else (1, 0))
        for kw2 in range(KS):
            beta, db = (1, -1) if kw2 == 0 else ((0, 0) if kw2 == 1 else (1, 0))
            base = FRONT + da * GW + db                       # 0, 1, 17 or 18
            patches1 = xa[0, 2 * alpha + beta, :, base:base + FLAT]   # (27, 272)
            z = jnp.dot(w1, patches1, preferred_element_type=jnp.float32,
                        precision=_PREC)                      # (8, 272)
            z = jnp.maximum(z + b1, 0.0)                      # conv1 + bias(-0.5) + relu
            m = 2 * int(da < 0) + int(db < 0)
            if m:                                             # halo-only zeroing
                z = z * masks[m:m + 1, :]
            slabs.append(z)

    # conv2: one K=72 channel-major matmul on the concatenated slabs.
    patches2 = jnp.concatenate(slabs, axis=0)                 # (72, 272)
    y = jnp.dot(w2, patches2, preferred_element_type=jnp.float32,
                precision=_PREC)                              # (16, 272)
    o_ref[...] = jnp.maximum(y + b2, 0.0)[None]


def _prep_input(x_nchw):
    """NCHW input -> (n, 4, 27, 384) pre-assembled conv1 im2col rows.

    Pure XLA layout plumbing on a tiny tensor.  For each conv1-output parity
    (alpha, beta) and tap (kh1, kw1, c0) the row holds the padded input sampled
    on a stride-4 grid, flattened with row pitch 17 and shifted so that inside
    the kernel the im2col block for any conv2-tap offset is ONE contiguous
    lane slice.
    """
    n = x_nchw.shape[0]
    # zero-pad: 1 top/left (conv padding), 3 bottom/right (to reach a multiple of 4)
    xp = jnp.pad(x_nchw, ((0, 0), (0, 0), (1, 3), (1, 3)))            # (n, 3, 68, 68)
    # mod-4 phase split:  xq[n, pu, pv, c, g, h] = xp[n, c, 4g+pu, 4h+pv]
    xq = xp.reshape(n, C_IN, GW, 4, GW, 4)
    xq = jnp.transpose(xq, (0, 3, 5, 1, 2, 4)).reshape(n, 4, 4, C_IN, GW * GW)
    # zero margin front/back so every shifted row below is a plain in-range slice
    xq = jnp.pad(xq, ((0, 0), (0, 0), (0, 0), (0, 0),
                      (FRONT, PLANE_W - GW * GW - FRONT)))            # (n, 4, 4, 3, 402)

    groups = []
    for alpha in (0, 1):
        for beta in (0, 1):
            rows = []
            for kh in range(KS):
                for kw in range(KS):
                    du, pu = divmod(2 * alpha + kh, 4)
                    dv, pv = divmod(2 * beta + kw, 4)
                    s = du * GW + dv
                    rows.append(xq[:, pu, pv, :, s:s + LANES])        # (n, 3, 384)
            groups.append(jnp.concatenate(rows, axis=1))              # (n, 27, 384)
    return jnp.stack(groups, axis=1)                                  # (n, 4, 27, 384)


def _halo_masks():
    t = np.arange(FLAT)
    col_ok = (t % GW != 0).astype(np.float32)   # zero where ow2 == 0 (left halo)
    row_ok = (t >= GW).astype(np.float32)       # zero where oh2 == 0 (top halo)
    return jnp.asarray(np.stack([np.ones(FLAT, np.float32),
                                 col_ok, row_ok, row_ok * col_ok]))    # (4, 272)


def model_forward(x_nchw, params):
    """NCHW float32 input -> NCHW float32 output, matching the PyTorch Model."""
    n = x_nchw.shape[0]
    xa = _prep_input(x_nchw)

    # weights: OIHW -> (O, kh, kw, I) -> (O, K); biases carry the -0.5
    w1c = jnp.transpose(params["w1"], (0, 2, 3, 1)).reshape(C1, K1)
    w2c = jnp.transpose(params["w2"], (0, 2, 3, 1)).reshape(C2, K2)
    b1c = (params["b1"] - 0.5).reshape(C1, 1)
    b2c = (params["b2"] - 0.5).reshape(C2, 1)
    masks = _halo_masks()

    out = pl.pallas_call(
        _fused_conv_kernel,
        out_shape=jax.ShapeDtypeStruct((n, C2, FLAT), jnp.float32),
        grid=(n,),
        in_specs=[
            pl.BlockSpec((1, 4, K1, LANES), lambda i: (i, 0, 0, 0)),
            pl.BlockSpec((C1, K1), lambda i: (0, 0)),
            pl.BlockSpec((C1, 1), lambda i: (0, 0)),
            pl.BlockSpec((C2, K2), lambda i: (0, 0)),
            pl.BlockSpec((C2, 1), lambda i: (0, 0)),
            pl.BlockSpec((4, FLAT), lambda i: (0, 0)),
        ],
        out_specs=pl.BlockSpec((1, C2, FLAT), lambda i: (i, 0, 0)),
        compiler_params=pltpu.CompilerParams(
            dimension_semantics=("parallel",)),
    )(xa, w1c, b1c, w2c, b2c, masks)

    # (n, 16, 272) is already channel-major; drop the junk column of each row.
    return out.reshape(n, C2, H2, GW)[:, :, :, :W2]


def _ref_forward(x_nchw, params):
    # Pure-JAX reference (lax.conv) for the correctness check.
    y = jax.lax.conv_general_dilated(
        x_nchw, params["w1"], (2, 2), [(1, 1), (1, 1)],
        dimension_numbers=("NCHW", "OIHW", "NCHW"), precision=_PREC)
    y = jnp.maximum(y + params["b1"][None, :, None, None] - 0.5, 0.0)
    y = jax.lax.conv_general_dilated(
        y, params["w2"], (2, 2), [(1, 1), (1, 1)],
        dimension_numbers=("NCHW", "OIHW", "NCHW"), precision=_PREC)
    y = jnp.maximum(y + params["b2"][None, :, None, None] - 0.5, 0.0)
    return y


if __name__ == "__main__":
    key = jax.random.PRNGKey(0)
    k1, k2, k3, k4, kx = jax.random.split(key, 5)

    def uinit(k, shape, fan_in):
        bound = 1.0 / np.sqrt(fan_in)
        return jax.random.uniform(k, shape, jnp.float32, -bound, bound)

    # Deterministic parameters, PyTorch Conv2d-style uniform init (OIHW layout).
    params = {
        "w1": uinit(k1, (C1, C_IN, KS, KS), C_IN * KS * KS),
        "b1": uinit(k2, (C1,), C_IN * KS * KS),
        "w2": uinit(k3, (C2, C1, KS, KS), C1 * KS * KS),
        "b2": uinit(k4, (C2,), C1 * KS * KS),
    }

    x = jax.random.normal(kx, (2, C_IN, H, W), jnp.float32)   # NCHW like PyTorch

    out = jax.block_until_ready(jax.jit(model_forward)(x, params))
    assert out.shape == (2, C2, H2, W2), out.shape

    ref = jax.block_until_ready(_ref_forward(x, params))
    np.testing.assert_allclose(np.asarray(out), np.asarray(ref),
                               rtol=1e-4, atol=1e-4)
    print("KERNEL_OK")
</pallas_src>

<mosaic_0001>
module attributes {stable_mosaic.version = 11 : i64} {
  func.func @_fused_conv_kernel(%arg0: i32, %arg1: memref<1x4x27x384xf32, #tpu.memory_space<vmem>>, %arg2: memref<8x27xf32, #tpu.memory_space<vmem>>, %arg3: memref<8x1xf32, #tpu.memory_space<vmem>>, %arg4: memref<16x72xf32, #tpu.memory_space<vmem>>, %arg5: memref<16x1xf32, #tpu.memory_space<vmem>>, %arg6: memref<4x272xf32, #tpu.memory_space<vmem>>, %arg7: memref<1x16x272xf32, #tpu.memory_space<vmem>>) attributes {dimension_semantics = [#tpu.dimension_semantics<parallel>], iteration_bounds = array<i64: 2>, scalar_prefetch = 0 : i64, scratch_operands = 0 : i64, tpu.core_type = #tpu.core_type<tc>, window_params = [{transform_indices = @transform_0, window_bounds = array<i64: 1, 4, 27, 384>}, {pipeline_mode = #tpu.pipeline_mode<synchronous>, transform_indices = @transform_1, window_bounds = array<i64: 8, 27>}, {pipeline_mode = #tpu.pipeline_mode<synchronous>, transform_indices = @transform_2, window_bounds = array<i64: 8, 1>}, {pipeline_mode = #tpu.pipeline_mode<synchronous>, transform_indices = @transform_3, window_bounds = array<i64: 16, 72>}, {pipeline_mode = #tpu.pipeline_mode<synchronous>, transform_indices = @transform_4, window_bounds = array<i64: 16, 1>}, {pipeline_mode = #tpu.pipeline_mode<synchronous>, transform_indices = @transform_5, window_bounds = array<i64: 4, 272>}, {transform_indices = @transform_6, window_bounds = array<i64: 1, 16, 272>}]} {
    %c0 = arith.constant 0 : index
    %c0_0 = arith.constant 0 : index
    %c0_1 = arith.constant 0 : index
    %c0_2 = arith.constant 0 : index
    %0 = vector.load %arg1[%c0, %c0_0, %c0_1, %c0_2] : memref<1x4x27x384xf32, #tpu.memory_space<vmem>>, vector<1x4x27x384xf32>
    %c0_3 = arith.constant 0 : index
    %c0_4 = arith.constant 0 : index
    %1 = vector.load %arg2[%c0_3, %c0_4] : memref<8x27xf32, #tpu.memory_space<vmem>>, vector<8x27xf32>
    %c0_5 = arith.constant 0 : index
    %c0_6 = arith.constant 0 : index
    %2 = vector.load %arg3[%c0_5, %c0_6] : memref<8x1xf32, #tpu.memory_space<vmem>>, vector<8x1xf32>
    %c0_7 = arith.constant 0 : index
    %c0_8 = arith.constant 0 : index
    %3 = vector.load %arg4[%c0_7, %c0_8] : memref<16x72xf32, #tpu.memory_space<vmem>>, vector<16x72xf32>
    %c0_9 = arith.constant 0 : index
    %c0_10 = arith.constant 0 : index
    %4 = vector.load %arg5[%c0_9, %c0_10] : memref<16x1xf32, #tpu.memory_space<vmem>>, vector<16x1xf32>
    %c0_11 = arith.constant 0 : index
    %c0_12 = arith.constant 0 : index
    %5 = vector.load %arg6[%c0_11, %c0_12] : memref<4x272xf32, #tpu.memory_space<vmem>>, vector<4x272xf32>
    %6 = vector.extract_strided_slice %0 {offsets = [0, 3, 0, 0], sizes = [1, 1, 27, 272], strides = [1, 1, 1, 1]} : vector<1x4x27x384xf32> to vector<1x1x27x272xf32>
    %7 = vector.shape_cast %6 : vector<1x1x27x272xf32> to vector<27x272xf32>
    %cst = arith.constant dense<0.000000e+00> : vector<8x272xf32>
    %8 = tpu.matmul %1, %7, %cst {dimension_numbers = #tpu.dot_dimension_numbers<[1], [0], [0], [1], [0, 0, 1, 1], [], []>, precision = #tpu.contract_precision<fp32>} : vector<8x27xf32>, vector<27x272xf32>, vector<8x272xf32> -> vector<8x272xf32>
    %9 = vector.broadcast %2 : vector<8x1xf32> to vector<8x272xf32>
    %10 = arith.addf %8, %9 : vector<8x272xf32>
    %cst_13 = arith.constant 0.000000e+00 : f32
    %11 = vector.broadcast %cst_13 : f32 to vector<8x272xf32>
    %12 = arith.maximumf %10, %11 : vector<8x272xf32>
    %13 = vector.extract_strided_slice %5 {offsets = [3, 0], sizes = [1, 272], strides = [1, 1]} : vector<4x272xf32> to vector<1x272xf32>
    %14 = vector.broadcast %13 : vector<1x272xf32> to vector<8x272xf32>
    %15 = arith.mulf %12, %14 : vector<8x272xf32>
    %16 = vector.extract_strided_slice %0 {offsets = [0, 2, 0, 1], sizes = [1, 1, 27, 272], strides = [1, 1, 1, 1]} : vector<1x4x27x384xf32> to vector<1x1x27x272xf32>
    %17 = vector.shape_cast %16 : vector<1x1x27x272xf32> to vector<27x272xf32>
    %cst_14 = arith.constant dense<0.000000e+00> : vector<8x272xf32>
    %18 = tpu.matmul %1, %17, %cst_14 {dimension_numbers = #tpu.dot_dimension_numbers<[1], [0], [0], [1], [0, 0, 1, 1], [], []>, precision = #tpu.contract_precision<fp32>} : vector<8x27xf32>, vector<27x272xf32>, vector<8x272xf32> -> vector<8x272xf32>
    %19 = vector.broadcast %2 : vector<8x1xf32> to vector<8x272xf32>
    %20 = arith.addf %18, %19 : vector<8x272xf32>
    %cst_15 = arith.constant 0.000000e+00 : f32
    %21 = vector.broadcast %cst_15 : f32 to vector<8x272xf32>
    %22 = arith.maximumf %20, %21 : vector<8x272xf32>
    %23 = vector.extract_strided_slice %5 {offsets = [2, 0], sizes = [1, 272], strides = [1, 1]} : vector<4x272xf32> to vector<1x272xf32>
    %24 = vector.broadcast %23 : vector<1x272xf32> to vector<8x272xf32>
    %25 = arith.mulf %22, %24 : vector<8x272xf32>
    %26 = vector.extract_strided_slice %0 {offsets = [0, 3, 0, 1], sizes = [1, 1, 27, 272], strides = [1, 1, 1, 1]} : vector<1x4x27x384xf32> to vector<1x1x27x272xf32>
    %27 = vector.shape_cast %26 : vector<1x1x27x272xf32> to vector<27x272xf32>
    %cst_16 = arith.constant dense<0.000000e+00> : vector<8x272xf32>
    %28 = tpu.matmul %1, %27, %cst_16 {dimension_numbers = #tpu.dot_dimension_numbers<[1], [0], [0], [1], [0, 0, 1, 1], [], []>, precision = #tpu.contract_precision<fp32>} : vector<8x27xf32>, vector<27x272xf32>, vector<8x272xf32> -> vector<8x272xf32>
    %29 = vector.broadcast %2 : vector<8x1xf32> to vector<8x272xf32>
    %30 = arith.addf %28, %29 : vector<8x272xf32>
    %cst_17 = arith.constant 0.000000e+00 : f32
    %31 = vector.broadcast %cst_17 : f32 to vector<8x272xf32>
    %32 = arith.maximumf %30, %31 : vector<8x272xf32>
    %33 = vector.extract_strided_slice %5 {offsets = [2, 0], sizes = [1, 272], strides = [1, 1]} : vector<4x272xf32> to vector<1x272xf32>
    %34 = vector.broadcast %33 : vector<1x272xf32> to vector<8x272xf32>
    %35 = arith.mulf %32, %34 : vector<8x272xf32>
    %36 = vector.extract_strided_slice %0 {offsets = [0, 1, 0, 17], sizes = [1, 1, 27, 272], strides = [1, 1, 1, 1]} : vector<1x4x27x384xf32> to vector<1x1x27x272xf32>
    %37 = vector.shape_cast %36 : vector<1x1x27x272xf32> to vector<27x272xf32>
    %cst_18 = arith.constant dense<0.000000e+00> : vector<8x272xf32>
    %38 = tpu.matmul %1, %37, %cst_18 {dimension_numbers = #tpu.dot_dimension_numbers<[1], [0], [0], [1], [0, 0, 1, 1], [], []>, precision = #tpu.contract_precision<fp32>} : vector<8x27xf32>, vector<27x272xf32>, vector<8x272xf32> -> vector<8x272xf32>
    %39 = vector.broadcast %2 : vector<8x1xf32> to vector<8x272xf32>
    %40 = arith.addf %38, %39 : vector<8x272xf32>
    %cst_19 = arith.constant 0.000000e+00 : f32
    %41 = vector.broadcast %cst_19 : f32 to vector<8x272xf32>
    %42 = arith.maximumf %40, %41 : vector<8x272xf32>
    %43 = vector.extract_strided_slice %5 {offsets = [1, 0], sizes = [1, 272], strides = [1, 1]} : vector<4x272xf32> to vector<1x272xf32>
    %44 = vector.broadcast %43 : vector<1x272xf32> to vector<8x272xf32>
    %45 = arith.mulf %42, %44 : vector<8x272xf32>
    %46 = vector.extract_strided_slice %0 {offsets = [0, 0, 0, 18], sizes = [1, 1, 27, 272], strides = [1, 1, 1, 1]} : vector<1x4x27x384xf32> to vector<1x1x27x272xf32>
    %47 = vector.shape_cast %46 : vector<1x1x27x272xf32> to vector<27x272xf32>
    %cst_20 = arith.constant dense<0.000000e+00> : vector<8x272xf32>
    %48 = tpu.matmul %1, %47, %cst_20 {dimension_numbers = #tpu.dot_dimension_numbers<[1], [0], [0], [1], [0, 0, 1, 1], [], []>, precision = #tpu.contract_precision<fp32>} : vector<8x27xf32>, vector<27x272xf32>, vector<8x272xf32> -> vector<8x272xf32>
    %49 = vector.broadcast %2 : vector<8x1xf32> to vector<8x272xf32>
    %50 = arith.addf %48, %49 : vector<8x272xf32>
    %cst_21 = arith.constant 0.000000e+00 : f32
    %51 = vector.broadcast %cst_21 : f32 to vector<8x272xf32>
    %52 = arith.maximumf %50, %51 : vector<8x272xf32>
    %53 = vector.extract_strided_slice %0 {offsets = [0, 1, 0, 18], sizes = [1, 1, 27, 272], strides = [1, 1, 1, 1]} : vector<1x4x27x384xf32> to vector<1x1x27x272xf32>
    %54 = vector.shape_cast %53 : vector<1x1x27x272xf32> to vector<27x272xf32>
    %cst_22 = arith.constant dense<0.000000e+00> : vector<8x272xf32>
    %55 = tpu.matmul %1, %54, %cst_22 {dimension_numbers = #tpu.dot_dimension_numbers<[1], [0], [0], [1], [0, 0, 1, 1], [], []>, precision = #tpu.contract_precision<fp32>} : vector<8x27xf32>, vector<27x272xf32>, vector<8x272xf32> -> vector<8x272xf32>
    %56 = vector.broadcast %2 : vector<8x1xf32> to vector<8x272xf32>
    %57 = arith.addf %55, %56 : vector<8x272xf32>
    %cst_23 = arith.constant 0.000000e+00 : f32
    %58 = vector.broadcast %cst_23 : f32 to vector<8x272xf32>
    %59 = arith.maximumf %57, %58 : vector<8x272xf32>
    %60 = vector.extract_strided_slice %0 {offsets = [0, 3, 0, 17], sizes = [1, 1, 27, 272], strides = [1, 1, 1, 1]} : vector<1x4x27x384xf32> to vector<1x1x27x272xf32>
    %61 = vector.shape_cast %60 : vector<1x1x27x272xf32> to vector<27x272xf32>
    %cst_24 = arith.constant dense<0.000000e+00> : vector<8x272xf32>
    %62 = tpu.matmul %1, %61, %cst_24 {dimension_numbers = #tpu.dot_dimension_numbers<[1], [0], [0], [1], [0, 0, 1, 1], [], []>, precision = #tpu.contract_precision<fp32>} : vector<8x27xf32>, vector<27x272xf32>, vector<8x272xf32> -> vector<8x272xf32>
    %63 = vector.broadcast %2 : vector<8x1xf32> to vector<8x272xf32>
    %64 = arith.addf %62, %63 : vector<8x272xf32>
    %cst_25 = arith.constant 0.000000e+00 : f32
    %65 = vector.broadcast %cst_25 : f32 to vector<8x272xf32>
    %66 = arith.maximumf %64, %65 : vector<8x272xf32>
    %67 = vector.extract_strided_slice %5 {offsets = [1, 0], sizes = [1, 272], strides = [1, 1]} : vector<4x272xf32> to vector<1x272xf32>
    %68 = vector.broadcast %67 : vector<1x272xf32> to vector<8x272xf32>
    %69 = arith.mulf %66, %68 : vector<8x272xf32>
    %70 = vector.extract_strided_slice %0 {offsets = [0, 2, 0, 18], sizes = [1, 1, 27, 272], strides = [1, 1, 1, 1]} : vector<1x4x27x384xf32> to vector<1x1x27x272xf32>
    %71 = vector.shape_cast %70 : vector<1x1x27x272xf32> to vector<27x272xf32>
    %cst_26 = arith.constant dense<0.000000e+00> : vector<8x272xf32>
    %72 = tpu.matmul %1, %71, %cst_26 {dimension_numbers = #tpu.dot_dimension_numbers<[1], [0], [0], [1], [0, 0, 1, 1], [], []>, precision = #tpu.contract_precision<fp32>} : vector<8x27xf32>, vector<27x272xf32>, vector<8x272xf32> -> vector<8x272xf32>
    %73 = vector.broadcast %2 : vector<8x1xf32> to vector<8x272xf32>
    %74 = arith.addf %72, %73 : vector<8x272xf32>
    %cst_27 = arith.constant 0.000000e+00 : f32
    %75 = vector.broadcast %cst_27 : f32 to vector<8x272xf32>
    %76 = arith.maximumf %74, %75 : vector<8x272xf32>
    %77 = vector.extract_strided_slice %0 {offsets = [0, 3, 0, 18], sizes = [1, 1, 27, 272], strides = [1, 1, 1, 1]} : vector<1x4x27x384xf32> to vector<1x1x27x272xf32>
    %78 = vector.shape_cast %77 : vector<1x1x27x272xf32> to vector<27x272xf32>
    %cst_28 = arith.constant dense<0.000000e+00> : vector<8x272xf32>
    %79 = tpu.matmul %1, %78, %cst_28 {dimension_numbers = #tpu.dot_dimension_numbers<[1], [0], [0], [1], [0, 0, 1, 1], [], []>, precision = #tpu.contract_precision<fp32>} : vector<8x27xf32>, vector<27x272xf32>, vector<8x272xf32> -> vector<8x272xf32>
    %80 = vector.broadcast %2 : vector<8x1xf32> to vector<8x272xf32>
    %81 = arith.addf %79, %80 : vector<8x272xf32>
    %cst_29 = arith.constant 0.000000e+00 : f32
    %82 = vector.broadcast %cst_29 : f32 to vector<8x272xf32>
    %83 = arith.maximumf %81, %82 : vector<8x272xf32>
    %84 = tpu.concatenate %15, %25, %35, %45, %52, %59, %69, %76, %83 in 0 : vector<8x272xf32>, vector<8x272xf32>, vector<8x272xf32>, vector<8x272xf32>, vector<8x272xf32>, vector<8x272xf32>, vector<8x272xf32>, vector<8x272xf32>, vector<8x272xf32> -> vector<72x272xf32>
    %cst_30 = arith.constant dense<0.000000e+00> : vector<16x272xf32>
    %85 = tpu.matmul %3, %84, %cst_30 {dimension_numbers = #tpu.dot_dimension_numbers<[1], [0], [0], [1], [0, 0, 1, 1], [], []>, precision = #tpu.contract_precision<fp32>} : vector<16x72xf32>, vector<72x272xf32>, vector<16x272xf32> -> vector<16x272xf32>
    %86 = vector.broadcast %4 : vector<16x1xf32> to vector<16x272xf32>
    %87 = arith.addf %85, %86 : vector<16x272xf32>
    %cst_31 = arith.constant 0.000000e+00 : f32
    %88 = vector.broadcast %cst_31 : f32 to vector<16x272xf32>
    %89 = arith.maximumf %87, %88 : vector<16x272xf32>
    %90 = vector.shape_cast %89 : vector<16x272xf32> to vector<1x16x272xf32>
    %c0_32 = arith.constant 0 : index
    %c0_33 = arith.constant 0 : index
    %c0_34 = arith.constant 0 : index
    %91 = vector.load %arg7[%c0_32, %c0_33, %c0_34] : memref<1x16x272xf32, #tpu.memory_space<vmem>>, vector<1x16x272xf32>
    tpu.vector_store %arg7[%c0_32, %c0_33, %c0_34], %90 {strides = array<i32>} : memref<1x16x272xf32, #tpu.memory_space<vmem>>, vector<1x16x272xf32>,
    return
  }
  func.func @transform_0(%arg0: i32) -> (i32, i32, i32, i32) {
    %c0_i32 = arith.constant 0 : i32
    %c0_i32_0 = arith.constant 0 : i32
    %c0_i32_1 = arith.constant 0 : i32
    %c0_i32_2 = arith.constant 0 : i32
    return %arg0, %c0_i32, %c0_i32_0, %c0_i32_1 : i32, i32, i32, i32
  }
  func.func @transform_1(%arg0: i32) -> (i32, i32) {
    %c0_i32 = arith.constant 0 : i32
    %c0_i32_0 = arith.constant 0 : i32
    %c0_i32_1 = arith.constant 0 : i32
    return %c0_i32, %c0_i32_0 : i32, i32
  }
  func.func @transform_2(%arg0: i32) -> (i32, i32) {
    %c0_i32 = arith.constant 0 : i32
    %c0_i32_0 = arith.constant 0 : i32
    %c0_i32_1 = arith.constant 0 : i32
    return %c0_i32, %c0_i32_0 : i32, i32
  }
  func.func @transform_3(%arg0: i32) -> (i32, i32) {
    %c0_i32 = arith.constant 0 : i32
    %c0_i32_0 = arith.constant 0 : i32
    %c0_i32_1 = arith.constant 0 : i32
    return %c0_i32, %c0_i32_0 : i32, i32
  }
  func.func @transform_4(%arg0: i32) -> (i32, i32) {
    %c0_i32 = arith.constant 0 : i32
    %c0_i32_0 = arith.constant 0 : i32
    %c0_i32_1 = arith.constant 0 : i32
    return %c0_i32, %c0_i32_0 : i32, i32
  }
  func.func @transform_5(%arg0: i32) -> (i32, i32) {
    %c0_i32 = arith.constant 0 : i32
    %c0_i32_0 = arith.constant 0 : i32
    %c0_i32_1 = arith.constant 0 : i32
    return %c0_i32, %c0_i32_0 : i32, i32
  }
  func.func @transform_6(%arg0: i32) -> (i32, i32, i32) {
    %c0_i32 = arith.constant 0 : i32
    %c0_i32_0 = arith.constant 0 : i32
    %c0_i32_1 = arith.constant 0 : i32
    return %arg0, %c0_i32, %c0_i32_0 : i32, i32, i32
  }
}

</mosaic_0001>

<bundles_post_ra>
// kernel: model_forward.1
= control target key start
LH: loop header
LB: loop body
LE: loop exit
PB: predicated region body
PF: predicated region fallthrough
CT: control target
= control target key end

     0   :  { %s13865_s21 = smov 0   ;;  %s17207_s0 = inlined_call_operand.vmem [shape: f32[2,4,27,384], index: 0, kind: input, shape index: {}]   ;;  %s17208_s1 = inlined_call_operand.vmem [shape: f32[8,27], index: 1, kind: input, shape index: {}]   ;;  %s17209_s2 = inlined_call_operand.vmem [shape: f32[8,1], index: 2, kind: input, shape index: {}]   ;;  %s17210_s3 = inlined_call_operand.vmem [shape: f32[16,72], index: 3, kind: input, shape index: {}]   ;;  %s17211_s4 = inlined_call_operand.vmem [shape: f32[16,1], index: 4, kind: input, shape index: {}]   ;;  %s17212_s5 = inlined_call_operand.vmem [shape: f32[4,272], index: 5, kind: input, shape index: {}]   ;;  %s17213_s6 = inlined_call_operand.vmem [shape: f32[2,16,272], index: 6, kind: output, shape index: {}]  }
   0x1 LB: > { %s11528_s22 = sadd.s32 4294967295, %s13821_s21   ;;  %p11532_p0 = scmp.ge.s32.totalorder %s13821_s21, 1  ;;  %s13821_s21 = sphi %s13865_s21, %s16_s21  }
   0x2   : > { %p212_p1 = scmp.lt.s32.totalorder %s13821_s21, 3 }
   0x4   : > { %p213_p2 = pnand %p11532_p0, %p212_p1 }
   0x6   : > { %216 = sbr.rel (%p213_p2) target bundleno = 1073 (0x431), region = 44 }
   0xd   : > { %p242_p3 = scmp.lt.s32.totalorder %s11528_s22, 1  ;;  %v300_v0 = vld [vmem:[%s17208_s1] sm:$0xff]  ;;  %v17251_v1 = vmov 0.0|0.0   ;;  %v17243_v2 = vmov 0.0   ;;  %vm313_vm0 = vcmask 220160   ;;  %vm13825_vm1 = vmmov 0  }
   0xe   : > { %12641 = vmatprep.subr.bf16.mxu1 %v17251_v1  ;;  %399 = vmatprep.mubr.f32.mxu0 %v17243_v2  ;;  %v315_v3 = vsel %vm313_vm0, %v300_v0, 0  ;;  %s13826_s29 = smov 127   ;;  %vm317_vm2 = vcmask 1042432   ;;  %s13827_s30 = smov 111   ;;  %vm1426_vm3 = vcmask 1039360   ;;  %vm3637_vm4 = vcmask 908288  }
   0xf   : > { %s17415_s22 = smov (!%p242_p3, %s11528_s22), 1  ;;  %11881 = vmatprep.mubr.msk.f32.mxu1 %vm13825_vm1, %v17243_v2  ;;  %v13882_v4 = vand.u32 4294901760, %v315_v3  ;;  %s13829_s7 = smov 110   ;;  %vm4758_vm5 = vcmask 900096   ;;  %vm10138_vm6 = vcmask 588800   ;;  %vm11468_vm7 = vcmask 130048  }
  0x10   : > { %s13784_s25 = smul.u32 384, %s17415_s22 }
  0x11   : > { %v13886_v5 = vsub.f32 %v315_v3, %v13882_v4  ;;  %s13785_s24 = smul.u32 48, %s17415_s22 }
  0x12   : > { %s13891_s28 = scalar_lea.vmem %s17207_s0, %s13784_s25 }
  0x13   : > { %v13894_v6 = vld [vmem:[%s13891_s28 + $0xe0] sm:$0xff]  ;;  %v13897_v7 = vld [vmem:[%s13891_s28 + $0xc8] sm:$0xff]  ;;  %v13900_v8 = vand.u32 4294901760, %v13886_v5  ;;  %v13910_v10 = vld [vmem:[%s13891_s28 + $0xd0] sm:$0xff]  ;;  %s251_s27 = scalar_lea.vmem %s17213_s6, %s13785_s24 }
  0x14   : > { %1410 = vrot.lane.b32.xlu1 %v13894_v6, %s13826_s29  ;;  %1404 = vrot.lane.b32.xlu0 %v13897_v7, %s13826_s29  ;;  %v13907_v9 = vld [vmem:[%s13891_s28 + $0xe8] sm:$0xff]  ;;  %v13915_v12 = vld [vmem:[%s13891_s28 + $0xd8] sm:$0xff] }
  0x15   : > { %v403_v11 = vsub.f32 %v13886_v5, %v13900_v8  ;;  %v13918_v13 = vld [vmem:[%s13891_s28 + $0x128] sm:$0xff]  ;;  %v13921_v14 = vld [vmem:[%s13891_s28 + $0x140] sm:$0xff]  ;;  %v13931_v16 = vld [vmem:[%s13891_s28 + $0x130] sm:$0xff] }
  0x16   : > { %v13928_v15 = vld [vmem:[%s13891_s28 + $0x120] sm:$0xff]  ;;  %v327_v17 = vand.u32 4294901760, %v13918_v13  ;;  %v331_v18 = vand.u32 4294901760, %v13921_v14  ;;  %v13939_v20 = vld [vmem:[%s13891_s28 + $0x170] sm:$0x7]  ;;  %v871_v22 = vand.u32 4294901760, %v13931_v16 }
  0x17   : > { %v13936_v19 = vld [vmem:[%s13891_s28 + $0xc0] sm:$0xff]  ;;  %v329_v21 = vand.u32 4294901760, %v13928_v15  ;;  %v13943_v23 = vand.u32 4294901760, %v403_v11  ;;  %v13946_v24 = vld [vmem:[%s13891_s28 + $0x158] sm:$0xff]  ;;  %v322_v29 = vsel %vm317_vm2, %v13939_v20, 0  ;;  %v13962_v30 = vld [vmem:[%s13891_s28 + $0x148] sm:$0xff] }
  0x18   : > { %1412 = vrot.lane.b32.xlu1 %v13907_v9, %s13826_s29  ;;  %1406 = vrot.lane.b32.xlu0 %v13910_v10, %s13826_s29  ;;  %v13949_v25 = vld [vmem:[%s13891_s28 + $0x138] sm:$0xff]  ;;  %v13951_v26 = vpack.c.bf16 %v331_v18, %v327_v17  ;;  %v13954_v27 = vsub.f32 %v13918_v13, %v327_v17  ;;  %v13957_v28 = vsub.f32 %v13921_v14, %v331_v18  ;;  %v13965_v31 = vld [vmem:[%s13891_s28 + $0x168] sm:$0x7]  ;;  %v335_v34 = vand.u32 4294901760, %v13946_v24 }
  0x19   : > { %v333_v32 = vand.u32 4294901760, %v13949_v25  ;;  %v13969_v33 = vsub.f32 %v13928_v15, %v329_v21  ;;  %v339_v35 = vand.u32 4294901760, %v322_v29  ;;  %v13977_v36 = vld [vmem:[%s13891_s28 + $0x150] sm:$0xff]  ;;  %v319_v37 = vsel %vm317_vm2, %v13965_v31, 0  ;;  %v287_v41 = vld [vmem:[%s13891_s28 + $0x118] sm:$0x7] }
  0x1a   : > { %v874_v38 = vand.u32 4294901760, %v13962_v30  ;;  %v13983_v39 = vsub.f32 %v13931_v16, %v871_v22  ;;  %v413_v40 = vand.u32 4294901760, %v13954_v27  ;;  %v13988_v42 = vld [vmem:[%s13891_s28 + $0x110] sm:$0x7]  ;;  %12594 = vmatprep.subr.bf16.mxu0 %v13951_v26  ;;  %v13999_v46 = vsub.f32 %v13946_v24, %v335_v34  ;;  %v14008_v51 = vld [vmem:[%s13891_s28 + $0x160] sm:$0xff]  ;;  %v14034_v62 = vld [vmem:[%s13891_s28 + $0xf8] sm:$0xff] }
  0x1b   : > { %v13991_v43 = vpack.c.bf16 %v333_v32, %v329_v21  ;;  %v13994_v44 = vsub.f32 %v13949_v25, %v333_v32  ;;  %v13996_v45 = vpack.c.bf16 %v339_v35, %v335_v34  ;;  %v14001_v47 = vsub.f32 %v322_v29, %v339_v35  ;;  %v14022_v56 = vld [vmem:[%s13891_s28 + $0x178] sm:$0x7]  ;;  %v284_v61 = vld [vmem:[%s13891_s28 + $0x100] sm:$0xff] }
  0x1c   : > { %1408 = vrot.lane.b32.xlu1 %v13915_v12, %s13826_s29  ;;  %1402 = vrot.lane.b32.xlu0 %v13936_v19, %s13826_s29  ;;  %v337_v48 = vand.u32 4294901760, %v13977_v36  ;;  %v341_v49 = vand.u32 4294901760, %v319_v37  ;;  %v14004_v50 = vpack.c.bf16 %v874_v38, %v871_v22  ;;  %v14011_v52 = vsub.f32 %v13962_v30, %v874_v38 }
  0x1d   : > { %12596 = vmatpush1.bf16.msra.mxu0 %v13991_v43  ;;  %v414_v53 = vsub.f32 %v13954_v27, %v413_v40  ;;  %v425_v54 = vand.u32 4294901760, %v13957_v28  ;;  %v419_v55 = vand.u32 4294901760, %v13969_v33  ;;  %v17215_v60 = vand.u32 4294901760, %v13994_v44 }
  0x1e   : > { %v14024_v57 = vpack.c.bf16 %v341_v49, %v337_v48  ;;  %v14027_v58 = vsub.f32 %v13977_v36, %v337_v48  ;;  %v14029_v59 = vsub.f32 %v319_v37, %v341_v49  ;;  %12598 = vmatprep.subr.bf16.mxu0 %v13996_v45  ;;  %12643 = vmatpush3.bf16.msra.mxu1 %v14004_v50  ;;  %v325_v11 = vsel %vm317_vm2, %v14022_v56, 0  ;;  %v282_v49 = vld [vmem:[%s13891_s28 + $0xf0] sm:$0xff] }
  0x1f   : > { %v415_v63 = vand.u32 4294901760, %v414_v53  ;;  %v426_v0 = vsub.f32 %v13957_v28, %v425_v54  ;;  %v420_v3 = vsub.f32 %v13969_v33, %v419_v55  ;;  %v432_v17 = vsub.f32 %v13994_v44, %v17215_v60  ;;  %12644 = vmatprep.subr.bf16.mxu1 %v17251_v1  ;;  %v14067_v53 = vld [vmem:[%s13891_s28 + $0x108] sm:$0x7] }
  0x20   : > { %1424 = vrot.lane.b32.xlu1 %v287_v41, %s13826_s29  ;;  %1422 = vrot.lane.b32.xlu0 %v13988_v42, %s13826_s29  ;;  %v877_v18 = vand.u32 4294901760, %v14008_v51  ;;  %v880_v21 = vand.u32 4294901760, %v325_v11  ;;  %v17214_v22 = vand.u32 4294901760, %v13999_v46  ;;  %v17217_v34 = vand.u32 4294901760, %v14001_v47 }
  0x21   : > { %12600 = vmatpush1.bf16.msra.mxu0 %v14024_v57  ;;  %v427_v29 = vand.u32 4294901760, %v426_v0  ;;  %v421_v32 = vand.u32 4294901760, %v420_v3  ;;  %v17216_v35 = vand.u32 4294901760, %v14027_v58  ;;  %v433_v37 = vand.u32 4294901760, %v432_v17 }
  0x22   : > { %v14058_v38 = vpack.c.bf16 %v880_v21, %v877_v18  ;;  %v14061_v41 = vsub.f32 %v14008_v51, %v877_v18  ;;  %v14063_v48 = vsub.f32 %v325_v11, %v880_v21  ;;  %v438_v3 = vsub.f32 %v13999_v46, %v17214_v22 }
  0x23   : > { %v12601_v0 = vpack.c.bf16 %v427_v29, %v415_v63  ;;  %v444_v17 = vsub.f32 %v14027_v58, %v17216_v35  ;;  %v12603_v11 = vpack.c.bf16 %v433_v37, %v421_v32  ;;  %v455_v18 = vand.u32 4294901760, %v14029_v59 }
  0x24   : > { %1418 = vrot.lane.b32.xlu1 %v284_v61, %s13826_s29  ;;  %1416 = vrot.lane.b32.xlu0 %v14034_v62, %s13826_s29  ;;  %v450_v61 = vsub.f32 %v14001_v47, %v17217_v34  ;;  %v17218_v63 = vand.u32 4294901760, %v13983_v39  ;;  %v959_v21 = vand.u32 4294901760, %v14011_v52  ;;  %v439_v29 = vand.u32 4294901760, %v438_v3 }
  0x25   : > { %405 = vmatmul.mubr.f32.vlgmr.msra.gmra.mrb[0].mxu0 %v13943_v23  ;;  %12646 = vmatpush3.bf16.msra.mxu1 %v14058_v38  ;;  %v445_v60 = vand.u32 4294901760, %v444_v17  ;;  %v456_v32 = vsub.f32 %v14029_v59, %v455_v18  ;;  %v17219_v3 = vand.u32 4294901760, %v14061_v41 }
  0x26   : > { %12602 = vmatprep.subr.bf16.mxu0 %v12601_v0  ;;  %v451_v22 = vand.u32 4294901760, %v450_v61  ;;  %12647 = vmatprep.subr.bf16.mxu1 %v17251_v1  ;;  %v953_v37 = vsub.f32 %v13983_v39, %v17218_v63  ;;  %v960_v0 = vsub.f32 %v14011_v52, %v959_v21 }
  0x27   : > { %12604 = vmatpush1.bf16.msra.mxu0 %v12603_v11  ;;  %v457_v17 = vand.u32 4294901760, %v456_v32  ;;  %515 = vmatprep.mubr.f32.mxu0 %v17243_v2  ;;  %v967_v63 = vsub.f32 %v14061_v41, %v17219_v3 }
  0x28   : > { %1414 = vrot.lane.b32.xlu1 %v282_v49, %s13826_s29  ;;  %1420 = vrot.lane.b32.xlu0 %v14067_v53, %s13826_s29  ;;  %v12605_v61 = vpack.c.bf16 %v451_v22, %v439_v29  ;;  %v17220_v49 = vand.u32 4294901760, %v14063_v48  ;;  %v954_v35 = vand.u32 4294901760, %v953_v37  ;;  %v961_v34 = vand.u32 4294901760, %v960_v0 }
  0x29   : > { %11882 = vmatmul.mubr.f32.vlgmr.msra.gmra.mrb[0].mxu1 %v13943_v23  ;;  %v12609_v22 = vpack.c.bf16 %v13957_v28, %v13954_v27  ;;  %v12607_v29 = vpack.c.bf16 %v457_v17, %v445_v60  ;;  %v968_v37 = vand.u32 4294901760, %v967_v63  ;;  %v12615_v60 = vpack.c.bf16 %v14029_v59, %v14027_v58  ;;  %v270_v17 = vld [vmem:[%s13891_s28 + $0x90] sm:$0xff] }
  0x2a   : > { %11892 = vmatprep.mubr.msk.f32.mxu1 %vm13825_vm1, %v17243_v2  ;;  %12606 = vmatprep.subr.bf16.mxu0 %v12605_v61  ;;  %v974_v11 = vsub.f32 %v14063_v48, %v17220_v49  ;;  %v12648_v32 = vpack.c.bf16 %v961_v34, %v954_v35  ;;  %v12611_v61 = vpack.c.bf16 %v13994_v44, %v13969_v33  ;;  %v17279_v27 = vand.u32 4294901760, %v13994_v44  ;;  %v14181_v33 = vld [vmem:[%s13891_s28 + $0x70] sm:$0xff] }
  0x2b   : > { %12608 = vmatpush1.bf16.msra.mxu0 %v12607_v29  ;;  %v12613_v49 = vpack.c.bf16 %v14001_v47, %v13999_v46  ;;  %v12654_v34 = vpack.c.bf16 %v14011_v52, %v13983_v39  ;;  %v12657_v35 = vpack.c.bf16 %v14063_v48, %v14061_v41  ;;  %v12625_v63 = vpack.c.bf16 %v425_v54, %v413_v40  ;;  %v257_v29 = vld [vmem:[%s13891_s28 + $0x28] sm:$0xff] }
  0x2c   : > { %2522 = vrot.lane.b32.xlu0 %v13918_v13, %s13826_s29  ;;  %2524 = vrot.lane.b32.xlu1 %v13931_v16, %s13826_s29  ;;  %v975_v0 = vand.u32 4294901760, %v974_v11  ;;  %v12627_v28 = vpack.c.bf16 %v17279_v27, %v419_v55  ;;  %v17280_v40 = vand.u32 4294901760, %v13999_v46  ;;  %v17281_v54 = vand.u32 4294901760, %v14001_v47  ;;  %v256_v11 = vld [vmem:[%s13891_s28 + $0x20] sm:$0xff] }
  0x2d   : > { %12649 = vmatpush3.bf16.msra.mxu1 %v12648_v32  ;;  %12610 = vmatprep.subr.bf16.mxu0 %v12609_v22  ;;  %v17282_v44 = vand.u32 4294901760, %v14027_v58  ;;  %v17283_v47 = vand.u32 4294901760, %v13983_v39  ;;  %v14198_v58 = vld [vmem:[%s13891_s28 + $0x80] sm:$0xff]  ;;  %v14203_v39 = vld [vmem:[%s13891_s28 + $0x88] sm:$0xff]  ;;  %v17284_v52 = vand.u32 4294901760, %v14061_v41  ;;  %v17285_v59 = vand.u32 4294901760, %v14063_v48 }
  0x2e   : > { %12650 = vmatprep.subr.bf16.mxu1 %v17251_v1  ;;  %v12651_v3 = vpack.c.bf16 %v975_v0, %v968_v37  ;;  %517 = vmatmul.mubr.f32.vlgmr.msra.gmra.mrb[0].mxu0 %v13882_v4  ;;  %v14222_v41 = vld [vmem:[%s13891_s28 + $0x78] sm:$0xff]  ;;  %v254_v22 = vld [vmem:[%s13891_s28 + $0x10] sm:$0xff]  ;;  %v252_v32 = vld [vmem:[%s13891_s28] sm:$0xff] }
  0x2f   : > { %12612 = vmatpush1.bf16.msra.mxu0 %v12611_v61  ;;  %603 = vmatprep.mubr.f32.mxu0 %v17243_v2  ;;  %v12631_v46 = vpack.c.bf16 %v455_v18, %v17282_v44  ;;  %v12666_v55 = vpack.c.bf16 %v959_v21, %v17283_v47  ;;  %v12669_v18 = vpack.c.bf16 %v17285_v59, %v17284_v52  ;;  %v14216_v21 = vld [vmem:[%s13891_s28 + $0x60] sm:$0xff]  ;;  %v275_v48 = vld [vmem:[%s13891_s28 + $0xb8] sm:$0x7]  ;;  %v262_v0 = vld [vmem:[%s13891_s28 + $0x50] sm:$0x7] }
  0x30   : > { %2528 = vrot.lane.b32.xlu0 %v13921_v14, %s13826_s29  ;;  %2530 = vrot.lane.b32.xlu1 %v13962_v30, %s13826_s29  ;;  %v255_v37 = vld [vmem:[%s13891_s28 + $0x18] sm:$0xff] }
  0x31   : > { %12652 = vmatpush3.bf16.msra.mxu1 %v12651_v3  ;;  %12614 = vmatprep.subr.bf16.mxu0 %v12613_v49  ;;  %v12629_v3 = vpack.c.bf16 %v17281_v54, %v17280_v40  ;;  %v14175_v49 = vld [vmem:[%s13891_s28 + $0x68] sm:$0xff]  ;;  %v263_v61 = vld [vmem:[%s13891_s28 + $0x58] sm:$0x7] }
  0x32   : > { %12653 = vmatprep.subr.bf16.mxu1 %v17251_v1 }
  0x33   : > { %12616 = vmatpush1.bf16.msra.mxu0 %v12615_v60  ;;  %v259_v60 = vld [vmem:[%s13891_s28 + $0x38] sm:$0xff] }
  0x34   : > { %2520 = vrot.lane.b32.xlu0 %v13928_v15, %s13826_s29  ;;  %2526 = vrot.lane.b32.xlu1 %v13949_v25, %s13826_s29 }
  0x35   : > { %11893 = vmatmul.mubr.f32.vlgmr.msra.gmra.mrb[0].mxu1 %v13882_v4  ;;  %12618 = vmatprep.subr.bf16.mxu0 %v13951_v26 }
  0x36   : > { %12655 = vmatpush3.bf16.msra.mxu1 %v12654_v34  ;;  %606 = vmatmul.mubr.f32.vlgmr.msra.gmra.mrb[0].mxu0 %v13886_v5  ;;  %v260_v34 = vld [vmem:[%s13891_s28 + $0x40] sm:$0xff] }
  0x37   : > { %12656 = vmatprep.subr.bf16.mxu1 %v17251_v1  ;;  %11903 = vmatprep.mubr.msk.f32.mxu1 %vm13825_vm1, %v17243_v2 }
  0x38   : > { %2540 = vrot.lane.b32.xlu0 %v13939_v20, %s13826_s29  ;;  %2542 = vrot.lane.b32.xlu1 %v14022_v56, %s13826_s29 }
  0x39   : > { %12620 = vmatpush1.bf16.msra.mxu0 %v13991_v43  ;;  %684 = vmatprep.mubr.f32.mxu0 %v17243_v2 }
  0x3a   : > { %12658 = vmatpush3.bf16.msra.mxu1 %v12657_v35  ;;  %12622 = vmatprep.subr.bf16.mxu0 %v13996_v45  ;;  %v261_v35 = vld [vmem:[%s13891_s28 + $0x48] sm:$0x7] }
  0x3b   : > { %12659 = vmatprep.subr.bf16.mxu1 %v17251_v1 }
  0x3c   : > { %2534 = vrot.lane.b32.xlu0 %v13946_v24, %s13826_s29  ;;  %2536 = vrot.lane.b32.xlu1 %v14008_v51, %s13826_s29 }
  0x3d   : > { %11904 = vmatmul.mubr.f32.vlgmr.msra.gmra.mrb[0].mxu1 %v13886_v5  ;;  %12624 = vmatpush1.bf16.msra.mxu0 %v14024_v57 }
  0x3e   : > { %12661 = vmatpush3.bf16.msra.mxu1 %v14004_v50  ;;  %12626 = vmatprep.subr.bf16.mxu0 %v12625_v63  ;;  %v258_v63 = vld [vmem:[%s13891_s28 + $0x30] sm:$0xff] }
  0x3f   : > { %12662 = vmatprep.subr.bf16.mxu1 %v17251_v1  ;;  %11914 = vmatprep.mubr.msk.f32.mxu1 %vm13825_vm1, %v17243_v2 }
  0x40   : > { %2538 = vrot.lane.b32.xlu0 %v13965_v31, %s13826_s29  ;;  %2532 = vrot.lane.b32.xlu1 %v13977_v36, %s13826_s29 }
  0x41   : > { %688 = vmatmul.mubr.f32.vlgmr.msra.gmra.mrb[0].mxu0 %v13900_v8 }
  0x42   : > { %12628 = vmatpush1.bf16.msra.mxu0 %v12627_v28  ;;  %12664 = vmatpush3.bf16.msra.mxu1 %v14058_v38 }
  0x43   : > { %12630 = vmatprep.subr.bf16.mxu0 %v12629_v3  ;;  %12665 = vmatprep.subr.bf16.mxu1 %v17251_v1 }
  0x44   : > { %3615 = vrot.lane.b32.xlu0 %v14175_v49, %s13827_s30  ;;  %3617 = vrot.lane.b32.xlu1 %v14181_v33, %s13827_s30 }
  0x45   : > { %11915 = vmatmul.mubr.f32.vlgmr.msra.gmra.mrb[0].mxu1 %v13900_v8  ;;  %782 = vmatprep.mubr.f32.mxu0 %v17243_v2 }
  0x46   : > { %12632 = vmatpush1.bf16.msra.mxu0 %v12631_v46  ;;  %12667 = vmatpush3.bf16.msra.mxu1 %v12666_v55 }
  0x47   : > { %12634 = vmatprep.subr.bf16.mxu0 %v13951_v26  ;;  %12668 = vmatprep.subr.bf16.mxu1 %v17251_v1  ;;  %v274_v26 = vld [vmem:[%s13891_s28 + $0xb0] sm:$0x7] }
  0x48   : > { %3621 = vrot.lane.b32.xlu0 %v14198_v58, %s13827_s30  ;;  %3623 = vrot.lane.b32.xlu1 %v14203_v39, %s13827_s30 }
  0x49   : > { %784 = vmatmul.mubr.f32.vlgmr.msra.gmra.mrb[0].mxu0 %v13882_v4  ;;  %11925 = vmatprep.mubr.msk.f32.mxu1 %vm13825_vm1, %v17243_v2 }
  0x4a   : > { %12636 = vmatpush1.bf16.msra.mxu0 %v13991_v43  ;;  %12670 = vmatpush3.bf16.msra.mxu1 %v12669_v18  ;;  %v271_v43 = vld [vmem:[%s13891_s28 + $0x98] sm:$0xff] }
  0x4b   : > { %12638 = vmatprep.subr.bf16.mxu0 %v13996_v45  ;;  %12671 = vmatprep.subr.bf16.mxu1 %v17251_v1  ;;  %v272_v45 = vld [vmem:[%s13891_s28 + $0xa0] sm:$0xff] }
  0x4c   : > { %3613 = vrot.lane.b32.xlu0 %v14216_v21, %s13827_s30  ;;  %3619 = vrot.lane.b32.xlu1 %v14222_v41, %s13827_s30 }
  0x4d   : > { %11926 = vmatmul.mubr.f32.vlgmr.msra.gmra.mrb[0].mxu1 %v13882_v4  ;;  %862 = vmatprep.mubr.f32.mxu0 %v17243_v2 }
  0x4e   : > { %12640 = vmatpush1.bf16.msra.mxu0 %v14024_v57  ;;  %12673 = vmatpush3.bf16.msra.mxu1 %v14004_v50  ;;  %v13828_v50 = vmov 0   ;;  %v273_v57 = vld [vmem:[%s13891_s28 + $0xa8] sm:$0x7] }
  0x4f   : > { %12674 = vmatprep.subr.bf16.mxu1 %v17251_v1  ;;  %11936 = vmatprep.mubr.msk.f32.mxu1 %vm13825_vm1, %v17243_v2 }
  0x50   : > { %3633 = vrot.lane.b32.xlu0 %v274_v26, %s13827_s30  ;;  %3635 = vrot.lane.b32.xlu1 %v275_v48, %s13827_s30 }
  0x51   : > { %864 = vmatmul.mubr.f32.vlgmr.msra.gmra.mrb[0].mxu0 %v13882_v4  ;;  %13801 = vset.pattern.permute.xlu0 %v13828_v50 }
  0x52   : > { %12676 = vmatpush3.bf16.msra.mxu1 %v14058_v38  ;;  %1522 = vmatprep.mubr.f32.mxu0 %v17243_v2  ;;  %v253_v38 = vld [vmem:[%s13891_s28 + $0x8] sm:$0xff] }
  0x53   : > { %12725 = vmatprep.subr.bf16.mxu1 %v17251_v1  ;;  %13802 = vset.pattern.permute.xlu1 %v13828_v50 }
  0x54   : > { %3627 = vrot.lane.b32.xlu0 %v271_v43, %s13827_s30  ;;  %3629 = vrot.lane.b32.xlu1 %v272_v45, %s13827_s30 }
  0x55   : > { %11937 = vmatmul.mubr.f32.vlgmr.msra.gmra.mrb[0].mxu1 %v13882_v4 }
  0x56   : > { %11947 = vmatprep.mubr.msk.f32.mxu1 %vm13825_vm1, %v17243_v2 }
  0x58   : > { %3631 = vrot.lane.b32.xlu0 %v273_v57, %s13827_s30  ;;  %3625 = vrot.lane.b32.xlu1 %v270_v17, %s13827_s30 }
  0x5c   : > { %4736 = vrot.lane.b32.xlu0 %v253_v38, %s13829_s7  ;;  %4738 = vrot.lane.b32.xlu1 %v254_v22, %s13829_s7 }
  0x60   : > { %4742 = vrot.lane.b32.xlu0 %v256_v11, %s13829_s7  ;;  %4744 = vrot.lane.b32.xlu1 %v257_v29, %s13829_s7 }
  0x64   : > { %4734 = vrot.lane.b32.xlu0 %v252_v32, %s13829_s7  ;;  %4740 = vrot.lane.b32.xlu1 %v255_v37, %s13829_s7 }
  0x68   : > { %4754 = vrot.lane.b32.xlu0 %v262_v0, %s13829_s7  ;;  %4756 = vrot.lane.b32.xlu1 %v263_v61, %s13829_s7 }
  0x6c   : > { %4748 = vrot.lane.b32.xlu0 %v259_v60, %s13829_s7  ;;  %4750 = vrot.lane.b32.xlu1 %v260_v34, %s13829_s7 }
  0x70   : > { %4752 = vrot.lane.b32.xlu0 %v261_v35, %s13829_s7  ;;  %4746 = vrot.lane.b32.xlu1 %v258_v63, %s13829_s7 }
  0x74   : > { %5815 = vrot.lane.b32.xlu0 %v14175_v49, %s13829_s7  ;;  %5817 = vrot.lane.b32.xlu1 %v14181_v33, %s13829_s7 }
  0x78   : > { %5821 = vrot.lane.b32.xlu0 %v14198_v58, %s13829_s7  ;;  %5823 = vrot.lane.b32.xlu1 %v14203_v39, %s13829_s7 }
  0x7c   : > { %5813 = vrot.lane.b32.xlu0 %v14216_v21, %s13829_s7  ;;  %5819 = vrot.lane.b32.xlu1 %v14222_v41, %s13829_s7 }
  0x80   : > { %5833 = vrot.lane.b32.xlu0 %v274_v26, %s13829_s7  ;;  %5835 = vrot.lane.b32.xlu1 %v275_v48, %s13829_s7 }
  0x84   : > { %5827 = vrot.lane.b32.xlu0 %v271_v43, %s13829_s7  ;;  %5829 = vrot.lane.b32.xlu1 %v272_v45, %s13829_s7 }
  0x86   : > { %v1411_v27 = vpop.permute.xlu1 %1410  ;;  %v1405_v28 = vpop.permute.xlu0 %1404 }
  0x88   : > { %5831 = vrot.lane.b32.xlu0 %v273_v57, %s13829_s7  ;;  %5825 = vrot.lane.b32.xlu1 %v270_v17, %s13829_s7 }
  0x8a   : > { %v1413_v40 = vpop.permute.xlu1 %1412  ;;  %v1407_v54 = vpop.permute.xlu0 %1406 }
  0x8b   : > { %v1430_v3 = vsel %vm1426_vm3, %v1411_v27, %v1413_v40  ;;  %v1997_v49 = vand.u32 4294901760, %v1413_v40  ;;  %v1428_v33 = vsel %vm1426_vm3, %v1405_v28, %v1407_v54  ;;  %v1994_v44 = vand.u32 4294901760, %v1407_v54 }
  0x8c   : > { %v1454_v46 = vand.u32 4294901760, %v1430_v3  ;;  %v1450_v47 = vand.u32 4294901760, %v1428_v33  ;;  %6893 = vrot.lane.b32.xlu0 %v13918_v13, %s13827_s30  ;;  %6895 = vrot.lane.b32.xlu1 %v13931_v16, %s13827_s30 }
  0x8d   : > { %v14305_v55 = vsub.f32 %v1413_v40, %v1997_v49  ;;  %v14307_v58 = vpack.c.bf16 %v1997_v49, %v1994_v44  ;;  %v14309_v39 = vsub.f32 %v1407_v54, %v1994_v44 }
  0x8e   : > { %v14311_v52 = vsub.f32 %v1428_v33, %v1450_v47  ;;  %v1409_v59 = vpop.permute.xlu1 %1408  ;;  %v1403_v18 = vpop.permute.xlu0 %1402  ;;  %v14313_v21 = vpack.c.bf16 %v1454_v46, %v1450_v47  ;;  %v14320_v43 = vsub.f32 %v1430_v3, %v1454_v46 }
  0x8f   : > { %v2082_v41 = vand.u32 4294901760, %v14305_v55  ;;  %v2075_v26 = vand.u32 4294901760, %v14309_v39  ;;  %v1429_v48 = vsel %vm1426_vm3, %v1409_v59, %v1411_v27  ;;  %v1427_v16 = vsel %vm1426_vm3, %v1403_v18, %v1405_v28  ;;  %12727 = vmatpush3.bf16.msra.mxu1 %v14307_v58 }
  0x90   : > { %v1456_v45 = vand.u32 4294901760, %v1429_v48  ;;  %v1452_v50 = vand.u32 4294901760, %v1427_v16  ;;  %12678 = vmatprep.subr.bf16.mxu0 %v14313_v21  ;;  %6899 = vrot.lane.b32.xlu0 %v13921_v14, %s13827_s30  ;;  %v1536_v37 = vand.u32 4294901760, %v14311_v52  ;;  %v1548_v63 = vand.u32 4294901760, %v14320_v43 }
  0x91   : > { %v2083_v57 = vsub.f32 %v14305_v55, %v2082_v41  ;;  %v2076_v17 = vsub.f32 %v14309_v39, %v2075_v26  ;;  %12728 = vmatprep.subr.bf16.mxu1 %v17251_v1  ;;  %6901 = vrot.lane.b32.xlu1 %v13962_v30, %s13827_s30 }
  0x92   : > { %v14332_v38 = vsub.f32 %v1429_v48, %v1456_v45  ;;  %v14334_v22 = vpack.c.bf16 %v1456_v45, %v1452_v50  ;;  %v14336_v11 = vsub.f32 %v1427_v16, %v1452_v50  ;;  %v1425_v29 = vpop.permute.xlu1 %1424  ;;  %v1423_v32 = vpop.permute.xlu0 %1422  ;;  %v1537_v33 = vsub.f32 %v14311_v52, %v1536_v37 }
  0x93   : > { %v1448_v0 = vsel %vm317_vm2, %v1425_v29, 0  ;;  %v1434_v61 = vsel %vm1426_vm3, %v1423_v32, %v1425_v29  ;;  %v2084_v60 = vand.u32 4294901760, %v2083_v57  ;;  %v2077_v34 = vand.u32 4294901760, %v2076_v17 }
  0x94   : > { %v2003_v35 = vand.u32 4294901760, %v1448_v0  ;;  %12680 = vmatpush1.bf16.msra.mxu0 %v14334_v22  ;;  %6891 = vrot.lane.b32.xlu0 %v13928_v15, %s13827_s30  ;;  %v17221_v27 = vand.u32 4294901760, %v14332_v38  ;;  %v1446_v28 = vsel %vm317_vm2, %v1434_v61, 0  ;;  %v17222_v30 = vand.u32 4294901760, %v14336_v11 }
  0x95   : > { %v1462_v54 = vand.u32 4294901760, %v1446_v28  ;;  %6897 = vrot.lane.b32.xlu1 %v13949_v25, %s13827_s30  ;;  %v12732_v18 = vpack.c.bf16 %v2084_v60, %v2077_v34  ;;  %v1549_v48 = vsub.f32 %v14320_v43, %v1548_v63  ;;  %v1538_v61 = vand.u32 4294901760, %v1537_v33 }
  0x96   : > { %v14350_v40 = vsub.f32 %v1448_v0, %v2003_v35  ;;  %v1419_v3 = vpop.permute.xlu1 %1418  ;;  %v1417_v49 = vpop.permute.xlu0 %1416  ;;  %v1555_v16 = vsub.f32 %v14332_v38, %v17221_v27  ;;  %v1543_v57 = vsub.f32 %v14336_v11, %v17222_v30 }
  0x97   : > { %v2000_v44 = vand.u32 4294901760, %v1419_v3  ;;  %v1432_v46 = vsel %vm1426_vm3, %v1417_v49, %v1419_v3  ;;  %v14359_v59 = vsub.f32 %v1446_v28, %v1462_v54 }
  0x98   : > { %v2096_v47 = vand.u32 4294901760, %v14350_v40  ;;  %6911 = vrot.lane.b32.xlu0 %v13939_v20, %s13827_s30  ;;  %v1458_v50 = vand.u32 4294901760, %v1432_v46  ;;  %v1556_v33 = vand.u32 4294901760, %v1555_v16 }
  0x99   : > { %v14369_v25 = vpack.c.bf16 %v2003_v35, %v2000_v44  ;;  %v14371_v45 = vsub.f32 %v1419_v3, %v2000_v44  ;;  %v17223_v17 = vand.u32 4294901760, %v14359_v59  ;;  %6913 = vrot.lane.b32.xlu1 %v14022_v56, %s13827_s30  ;;  %v1550_v56 = vand.u32 4294901760, %v1549_v48 }
  0x9a   : > { %v2097_v20 = vsub.f32 %v14350_v40, %v2096_v47  ;;  %v1415_v29 = vpop.permute.xlu1 %1414  ;;  %v1421_v0 = vpop.permute.xlu0 %1420  ;;  %v14383_v34 = vsub.f32 %v1432_v46, %v1458_v50  ;;  %v14389_v27 = vpack.c.bf16 %v1462_v54, %v1458_v50 }
  0x9b   : > { %v2089_v60 = vand.u32 4294901760, %v14371_v45  ;;  %v1431_v35 = vsel %vm1426_vm3, %v1415_v29, %v1417_v49  ;;  %v1433_v28 = vsel %vm1426_vm3, %v1421_v0, %v1423_v32  ;;  %12730 = vmatpush3.bf16.msra.mxu1 %v14369_v25  ;;  %v1544_v29 = vand.u32 4294901760, %v1543_v57 }
  0x9c   : > { %v1460_v3 = vand.u32 4294901760, %v1431_v35  ;;  %v1444_v44 = vsel %vm317_vm2, %v1433_v28, 0  ;;  %6905 = vrot.lane.b32.xlu0 %v13946_v24, %s13827_s30  ;;  %12731 = vmatprep.subr.bf16.mxu1 %v17251_v1  ;;  %v1560_v32 = vand.u32 4294901760, %v14383_v34  ;;  %v2098_v0 = vand.u32 4294901760, %v2097_v20 }
  0x9d   : > { %v2090_v49 = vsub.f32 %v14371_v45, %v2089_v60  ;;  %v1464_v46 = vand.u32 4294901760, %v1444_v44  ;;  %12682 = vmatprep.subr.bf16.mxu0 %v14389_v27  ;;  %v1573_v24 = vsub.f32 %v14359_v59, %v17223_v17  ;;  %v12685_v28 = vpack.c.bf16 %v1550_v56, %v1538_v61  ;;  %6907 = vrot.lane.b32.xlu1 %v14008_v51, %s13827_s30 }
  0x9e   : > { %v14398_v30 = vsub.f32 %v1431_v35, %v1460_v3  ;;  %11948 = vmatmul.mubr.f32.vlgmr.msra.gmra.mrb[2].mxu1 %v13943_v23  ;;  %v14405_v54 = vpop.permute.xlu0 %2522  ;;  %v1561_v57 = vsub.f32 %v14383_v34, %v1560_v32  ;;  %v14416_v20 = vpop.permute.xlu1 %2524  ;;  %v12687_v61 = vpack.c.bf16 %v1556_v33, %v1544_v29 }
  0x9f   : > { %v2091_v48 = vand.u32 4294901760, %v2090_v49  ;;  %v14407_v16 = vpack.c.bf16 %v1464_v46, %v1460_v3  ;;  %v14409_v50 = vsub.f32 %v1444_v44, %v1464_v46  ;;  %12733 = vmatpush3.bf16.msra.mxu1 %v12732_v18  ;;  %11958 = vmatprep.mubr.msk.f32.mxu1 %vm13825_vm1, %v17243_v2  ;;  %v1574_v46 = vand.u32 4294901760, %v1573_v24 }
  0xa0   : > { %v1566_v35 = vand.u32 4294901760, %v14398_v30  ;;  %6909 = vrot.lane.b32.xlu0 %v13965_v31, %s13827_s30  ;;  %12734 = vmatprep.subr.bf16.mxu1 %v17251_v1  ;;  %v1562_v44 = vand.u32 4294901760, %v1561_v57  ;;  %v12738_v24 = vpack.c.bf16 %v14305_v55, %v14309_v39  ;;  %v12741_v57 = vpack.c.bf16 %v14350_v40, %v14371_v45 }
  0xa1   : > { %v1578_v3 = vand.u32 4294901760, %v14409_v50  ;;  %12684 = vmatpush1.bf16.msra.mxu0 %v14407_v16  ;;  %v12735_v18 = vpack.c.bf16 %v2098_v0, %v2091_v48  ;;  %6903 = vrot.lane.b32.xlu1 %v13977_v36, %s13827_s30  ;;  %v17287_v45 = vand.u32 4294901760, %v14332_v38 }
  0xa2   : > { %v1567_v49 = vsub.f32 %v14398_v30, %v1566_v35  ;;  %12686 = vmatprep.subr.bf16.mxu0 %v12685_v28  ;;  %v14429_v17 = vpop.permute.xlu0 %2528  ;;  %v12689_v51 = vpack.c.bf16 %v1574_v46, %v1562_v44  ;;  %v14440_v48 = vpop.permute.xlu1 %2530  ;;  %v12697_v44 = vpack.c.bf16 %v14359_v59, %v14383_v34 }
  0xa3   : > { %v1579_v31 = vsub.f32 %v14409_v50, %v1578_v3  ;;  %12736 = vmatpush3.bf16.msra.mxu1 %v12735_v18  ;;  %v3114_v55 = vand.u32 4294901760, %v14440_v48  ;;  %v14509_v39 = vsel %vm1426_vm3, %v14429_v17, %v14440_v48 }
  0xa4   : > { %v1568_v56 = vand.u32 4294901760, %v1567_v49  ;;  %1528 = vmatmul.mubr.f32.vlgmr.msra.gmra.mrb[2].mxu0 %v13943_v23  ;;  %7974 = vrot.lane.b32.xlu0 %v13897_v7, %s13829_s7  ;;  %v12693_v7 = vpack.c.bf16 %v14320_v43, %v14311_v52  ;;  %v12699_v49 = vpack.c.bf16 %v14409_v50, %v14398_v30 }
  0xa5   : > { %v1580_v0 = vand.u32 4294901760, %v1579_v31  ;;  %12688 = vmatpush1.bf16.msra.mxu0 %v12687_v61  ;;  %12737 = vmatprep.subr.bf16.mxu1 %v17251_v1  ;;  %v3111_v31 = vand.u32 4294901760, %v14416_v20 }
  0xa6   : > { %12690 = vmatprep.subr.bf16.mxu0 %v12689_v51  ;;  %11959 = vmatmul.mubr.f32.vlgmr.msra.gmra.mrb[2].mxu1 %v13882_v4  ;;  %v14443_v33 = vpop.permute.xlu0 %2520  ;;  %v2527_v18 = vpop.permute.xlu1 %2526  ;;  %v14552_v51 = vsub.f32 %v14440_v48, %v3114_v55 }
  0xa7   : > { %12739 = vmatpush3.bf16.msra.mxu1 %v12738_v24  ;;  %v12691_v29 = vpack.c.bf16 %v1580_v0, %v1568_v56  ;;  %1638 = vmatprep.mubr.f32.mxu0 %v17243_v2  ;;  %v12753_v56 = vpack.c.bf16 %v2096_v47, %v2089_v60  ;;  %v14541_v40 = vsel %vm1426_vm3, %v2527_v18, %v14429_v17  ;;  %v17286_v47 = vand.u32 4294901760, %v14336_v11 }
  0xa8   : > { %7980 = vrot.lane.b32.xlu0 %v13894_v6, %s13829_s7  ;;  %12740 = vmatprep.subr.bf16.mxu1 %v17251_v1  ;;  %v12695_v6 = vpack.c.bf16 %v14332_v38, %v14336_v11  ;;  %v14557_v0 = vsel %vm1426_vm3, %v14443_v33, %v14405_v54 }
  0xa9   : > { %12692 = vmatpush1.bf16.msra.mxu0 %v12691_v29  ;;  %11969 = vmatprep.mubr.msk.f32.mxu1 %vm13825_vm1, %v17243_v2  ;;  %v12711_v60 = vpack.c.bf16 %v17287_v45, %v17286_v47  ;;  %v13803_v45 = vld [vmem:[%s13891_s28 + $0x170] sm:$0x7] }
  0xaa   : > { %12694 = vmatprep.subr.bf16.mxu0 %v12693_v7  ;;  %v14455_v28 = vpop.permute.xlu0 %2540  ;;  %7976 = vrot.lane.b32.xlu1 %v13910_v10, %s13829_s7 }
  0xab   : > { %12742 = vmatpush3.bf16.msra.mxu1 %v12741_v57  ;;  %v2569_v57 = vand.u32 4294901760, %v14557_v0 }
  0xac   : > { %1640 = vmatmul.mubr.f32.vlgmr.msra.gmra.mrb[2].mxu0 %v13882_v4  ;;  %7972 = vrot.lane.b32.xlu0 %v13936_v19, %s13829_s7  ;;  %v2543_v19 = vpop.permute.xlu1 %2542 }
  0xad   : > { %12696 = vmatpush1.bf16.msra.mxu0 %v12695_v6  ;;  %12743 = vmatprep.subr.bf16.mxu1 %v17251_v1  ;;  %v14533_v52 = vsel %vm317_vm2, %v2543_v19, 0 }
  0xae   : > { %12698 = vmatprep.subr.bf16.mxu0 %v12697_v44  ;;  %11970 = vmatmul.mubr.f32.vlgmr.msra.gmra.mrb[2].mxu1 %v13886_v5  ;;  %v14468_v36 = vpop.permute.xlu0 %2534  ;;  %v3120_v11 = vand.u32 4294901760, %v14533_v52 }
  0xaf   : > { %12745 = vmatpush3.bf16.msra.mxu1 %v14307_v58  ;;  %1726 = vmatprep.mubr.f32.mxu0 %v17243_v2 }
  0xb0   : > { %7992 = vrot.lane.b32.xlu0 %v13988_v42, %s13829_s7  ;;  %12746 = vmatprep.subr.bf16.mxu1 %v17251_v1  ;;  %v12750_v42 = vpack.c.bf16 %v2082_v41, %v2075_v26  ;;  %v14497_v61 = vpop.permute.xlu1 %2536  ;;  %v12709_v41 = vpack.c.bf16 %v1548_v63, %v1536_v37  ;;  %v2551_v26 = vsel %vm1426_vm3, %v14455_v28, %v2543_v19  ;;  %v2571_v63 = vand.u32 4294901760, %v14509_v39 }
  0xb1   : > { %12700 = vmatpush1.bf16.msra.mxu0 %v12699_v49  ;;  %11980 = vmatprep.mubr.msk.f32.mxu1 %vm13825_vm1, %v17243_v2  ;;  %v14560_v17 = vsel %vm317_vm2, %v2551_v26, 0  ;;  %v3117_v24 = vand.u32 4294901760, %v14497_v61  ;;  %v14617_v30 = vsub.f32 %v14533_v52, %v3120_v11 }
  0xb2   : > { %12702 = vmatprep.subr.bf16.mxu0 %v14313_v21  ;;  %v2539_v46 = vpop.permute.xlu0 %2538  ;;  %7982 = vrot.lane.b32.xlu1 %v13907_v9, %s13829_s7  ;;  %v17288_v9 = vand.u32 4294901760, %v14359_v59  ;;  %v2573_v59 = vand.u32 4294901760, %v14541_v40  ;;  %v14592_v7 = vsub.f32 %v14509_v39, %v2571_v63  ;;  %v2579_v6 = vand.u32 4294901760, %v14560_v17 }
  0xb3   : > { %12748 = vmatpush3.bf16.msra.mxu1 %v14369_v25  ;;  %v14622_v50 = vsub.f32 %v14497_v61, %v3117_v24 }
  0xb4   : > { %1729 = vmatmul.mubr.f32.vlgmr.msra.gmra.mrb[2].mxu0 %v13886_v5  ;;  %7986 = vrot.lane.b32.xlu0 %v14034_v62, %s13829_s7  ;;  %v14503_v62 = vsel %vm1426_vm3, %v14405_v54, %v14416_v20  ;;  %v12713_v38 = vpack.c.bf16 %v17288_v9, %v1560_v32  ;;  %v14573_v54 = vsel %vm1426_vm3, %v14468_v36, %v14497_v61  ;;  %v2533_v33 = vpop.permute.xlu1 %2532 }
  0xb5   : > { %12704 = vmatpush1.bf16.msra.mxu0 %v14334_v22  ;;  %12749 = vmatprep.subr.bf16.mxu1 %v17251_v1  ;;  %v2567_v37 = vand.u32 4294901760, %v14503_v62  ;;  %v2575_v18 = vand.u32 4294901760, %v14573_v54  ;;  %v14608_v49 = vsel %vm1426_vm3, %v2533_v33, %v14468_v36  ;;  %v14639_v36 = vsub.f32 %v14557_v0, %v2569_v57  ;;  %v13804_v33 = vld [vmem:[%s13891_s28 + $0x118] sm:$0x7] }
  0xb6   : > { %12706 = vmatprep.subr.bf16.mxu0 %v14389_v27  ;;  %11981 = vmatmul.mubr.f32.vlgmr.msra.gmra.mrb[2].mxu1 %v13900_v8  ;;  %v14495_v10 = vpop.permute.xlu0 %3615  ;;  %v3206_v47 = vand.u32 4294901760, %v14622_v50  ;;  %v14731_v52 = vpack.c.bf16 %v2573_v59, %v2569_v57 }
  0xb7   : > { %12751 = vmatpush3.bf16.msra.mxu1 %v12750_v42  ;;  %1807 = vmatprep.mubr.f32.mxu0 %v17243_v2  ;;  %v14587_v29 = vsub.f32 %v14503_v62, %v2567_v37  ;;  %v14657_v26 = vsub.f32 %v14573_v54, %v2575_v18  ;;  %v2659_v48 = vand.u32 4294901760, %v14639_v36  ;;  %v14716_v62 = vpack.c.bf16 %v3120_v11, %v3117_v24 }
  0xb8   : > { %7990 = vrot.lane.b32.xlu0 %v14067_v53, %s13829_s7  ;;  %12752 = vmatprep.subr.bf16.mxu1 %v17251_v1  ;;  %v14530_v53 = vsub.f32 %v14416_v20, %v3111_v31  ;;  %v3207_v39 = vsub.f32 %v14622_v50, %v3206_v47 }
  0xb9   : > { %12708 = vmatpush1.bf16.msra.mxu0 %v14407_v16  ;;  %11991 = vmatprep.mubr.msk.f32.mxu1 %vm13825_vm1, %v17243_v2  ;;  %v2677_v9 = vand.u32 4294901760, %v14657_v26 }
  0xba   : > { %12710 = vmatprep.subr.bf16.mxu0 %v12709_v41  ;;  %v14535_v43 = vpop.permute.xlu0 %3621  ;;  %v3192_v34 = vand.u32 4294901760, %v14530_v53  ;;  %7978 = vrot.lane.b32.xlu1 %v13915_v12, %s13829_s7  ;;  %v2665_v41 = vand.u32 4294901760, %v14592_v7  ;;  %v14666_v12 = vpack.c.bf16 %v3114_v55, %v3111_v31 }
  0xbb   : > { %12754 = vmatpush3.bf16.msra.mxu1 %v12753_v56  ;;  %v3213_v56 = vand.u32 4294901760, %v14617_v30 }
  0xbc   : > { %1811 = vmatmul.mubr.f32.vlgmr.msra.gmra.mrb[2].mxu0 %v13900_v8  ;;  %9052 = vrot.lane.b32.xlu0 %v13918_v13, %s13829_s7  ;;  %v2550_v13 = vsel %vm1426_vm3, %v2539_v46, %v14455_v28  ;;  %v12715_v28 = vpack.c.bf16 %v1578_v3, %v1566_v35  ;;  %v14634_v35 = vsub.f32 %v14541_v40, %v2573_v59  ;;  %v2653_v3 = vand.u32 4294901760, %v14587_v29  ;;  %v13805_v40 = vld [vmem:[%s13891_s28 + $0x158] sm:$0xff] }
  0xbd   : > { %12712 = vmatpush1.bf16.msra.mxu0 %v12711_v60  ;;  %12755 = vmatprep.subr.bf16.mxu1 %v17251_v1  ;;  %v14604_v44 = vsel %vm317_vm2, %v2550_v13, 0  ;;  %v2577_v46 = vand.u32 4294901760, %v14608_v49  ;;  %v14702_v60 = vpack.c.bf16 %v2571_v63, %v2567_v37  ;;  %v2666_v0 = vsub.f32 %v14592_v7, %v2665_v41 }
  0xbe   : > { %12714 = vmatprep.subr.bf16.mxu0 %v12713_v38  ;;  %11992 = vmatmul.mubr.f32.vlgmr.msra.gmra.mrb[2].mxu1 %v13882_v4  ;;  %v14582_v32 = vpop.permute.xlu0 %3613  ;;  %v2581_v19 = vand.u32 4294901760, %v14604_v44  ;;  %v2671_v20 = vand.u32 4294901760, %v14634_v35  ;;  %v3214_v13 = vsub.f32 %v14617_v30, %v3213_v56  ;;  %v2660_v63 = vsub.f32 %v14639_v36, %v2659_v48 }
  0xbf   : > { %12757 = vmatpush3.bf16.msra.mxu1 %v14307_v58  ;;  %1905 = vmatprep.mubr.f32.mxu0 %v17243_v2  ;;  %v3199_v58 = vand.u32 4294901760, %v14552_v51  ;;  %v14749_v59 = vpack.c.bf16 %v2579_v6, %v2575_v18  ;;  %v2667_v57 = vand.u32 4294901760, %v2666_v0 }
  0xc0   : > { %9058 = vrot.lane.b32.xlu0 %v13921_v14, %s13829_s7  ;;  %12758 = vmatprep.subr.bf16.mxu1 %v17251_v1  ;;  %v14629_v14 = vsub.f32 %v14530_v53, %v3192_v34  ;;  %v14683_v31 = vsub.f32 %v14604_v44, %v2581_v19  ;;  %v2672_v61 = vsub.f32 %v14634_v35, %v2671_v20 }
  0xc1   : > { %12716 = vmatpush1.bf16.msra.mxu0 %v12715_v28  ;;  %12002 = vmatprep.mubr.msk.f32.mxu1 %vm13825_vm1, %v17243_v2  ;;  %v2678_v28 = vsub.f32 %v14657_v26, %v2677_v9 }
  0xc2   : > { %12718 = vmatprep.subr.bf16.mxu0 %v14313_v21  ;;  %v14644_v42 = vpop.permute.xlu0 %3633  ;;  %v14652_v21 = vsub.f32 %v14560_v17, %v2579_v6  ;;  %7994 = vrot.lane.b32.xlu1 %v13804_v33, %s13829_s7  ;;  %v2673_v17 = vand.u32 4294901760, %v2672_v61  ;;  %v2661_v6 = vand.u32 4294901760, %v2660_v63 }
  0xc3   : > { %12760 = vmatpush3.bf16.msra.mxu1 %v14369_v25  ;;  %v3200_v25 = vsub.f32 %v14552_v51, %v3199_v58  ;;  %v2679_v44 = vand.u32 4294901760, %v2678_v28 }
  0xc4   : > { %1907 = vmatmul.mubr.f32.vlgmr.msra.gmra.mrb[2].mxu0 %v13882_v4  ;;  %9050 = vrot.lane.b32.xlu0 %v13928_v15, %s13829_s7  ;;  %v3194_v15 = vand.u32 4294901760, %v14629_v14  ;;  %v2689_v55 = vand.u32 4294901760, %v14652_v21  ;;  %v12771_v33 = vpack.c.bf16 %v2673_v17, %v2661_v6  ;;  %v13808_v17 = vld [vmem:[%s13891_s28 + $0xf0] sm:$0xff]  ;;  %v12779_v6 = vpack.c.bf16 %v14634_v35, %v14639_v36 }
  0xc5   : > { %12720 = vmatpush1.bf16.msra.mxu0 %v14334_v22  ;;  %12809 = vmatprep.subr.bf16.mxu1 %v17251_v1  ;;  %v14688_v22 = vsub.f32 %v14608_v49, %v2577_v46  ;;  %v3201_v38 = vand.u32 4294901760, %v3200_v25  ;;  %v3215_v25 = vand.u32 4294901760, %v3214_v13  ;;  %v13806_v13 = vld [vmem:[%s13891_s28 + $0x168] sm:$0x7] }
  0xc6   : > { %12722 = vmatprep.subr.bf16.mxu0 %v14389_v27  ;;  %12003 = vmatmul.mubr.f32.vlgmr.msra.gmra.mrb[2].mxu1 %v13882_v4  ;;  %v2654_v27 = vsub.f32 %v14587_v29, %v2653_v3  ;;  %v14724_v37 = vpop.permute.xlu0 %3627  ;;  %v2690_v14 = vsub.f32 %v14652_v21, %v2689_v55 }
  0xc7   : > { %12811 = vmatpush3.bf16.msra.mxu1 %v14666_v12  ;;  %1985 = vmatprep.mubr.f32.mxu0 %v17243_v2  ;;  %v2683_v11 = vand.u32 4294901760, %v14688_v22  ;;  %v12816_v54 = vpack.c.bf16 %v3201_v38, %v3194_v15  ;;  %v14776_v38 = vpop.permute.xlu1 %3617 }
  0xc8   : > { %9070 = vrot.lane.b32.xlu0 %v13803_v45, %s13829_s7  ;;  %12812 = vmatprep.subr.bf16.mxu1 %v17251_v1  ;;  %v2655_v24 = vand.u32 4294901760, %v2654_v27  ;;  %v3208_v27 = vand.u32 4294901760, %v3207_v39  ;;  %v14768_v45 = vpack.c.bf16 %v2581_v19, %v2577_v46  ;;  %v2691_v19 = vand.u32 4294901760, %v2690_v14  ;;  %v301_v39 = vld [vmem:[%s17209_s2] sm:$0xff] }
  0xc9   : > { %12724 = vmatpush1.bf16.msra.mxu0 %v14407_v16  ;;  %12013 = vmatprep.mubr.msk.f32.mxu1 %vm13825_vm1, %v17243_v2  ;;  %v2695_v16 = vand.u32 4294901760, %v14683_v31  ;;  %v2684_v15 = vsub.f32 %v14688_v22, %v2683_v11 }
  0xca   : > { %12762 = vmatprep.subr.bf16.mxu0 %v14702_v60  ;;  %v14774_v0 = vpop.permute.xlu0 %3631  ;;  %v12769_v49 = vpack.c.bf16 %v2667_v57, %v2655_v24  ;;  %v12819_v46 = vpack.c.bf16 %v3215_v25, %v3208_v27  ;;  %v13807_v24 = vld [vmem:[%s13891_s28 + $0x100] sm:$0xff]  ;;  %v12822_v57 = vpack.c.bf16 %v14552_v51, %v14530_v53  ;;  %v12777_v27 = vpack.c.bf16 %v14592_v7, %v14587_v29 }
  0xcb   : > { %12814 = vmatpush3.bf16.msra.mxu1 %v14716_v62  ;;  %v2696_v18 = vsub.f32 %v14683_v31, %v2695_v16  ;;  %v2685_v63 = vand.u32 4294901760, %v2684_v15  ;;  %7988 = vrot.lane.b32.xlu1 %v13807_v24, %s13829_s7  ;;  %v14795_v14 = vpop.permute.xlu1 %3623  ;;  %v14850_v53 = vsel %vm3637_vm4, %v14495_v10, %v14776_v38  ;;  %v13810_v24 = vld [vmem:[%s13891_s28 + $0x148] sm:$0xff]  ;;  %v3644_v35 = vsel %vm3637_vm4, %v14774_v0, %v14644_v42 }
  0xcc   : > { %1987 = vmatmul.mubr.f32.vlgmr.msra.gmra.mrb[2].mxu0 %v13882_v4  ;;  %9064 = vrot.lane.b32.xlu0 %v13805_v40, %s13829_s7  ;;  %v12773_v40 = vpack.c.bf16 %v2691_v19, %v2679_v44  ;;  %v13809_v44 = vld [vmem:[%s13891_s28 + $0x130] sm:$0xff]  ;;  %v14855_v51 = vsel %vm3637_vm4, %v14535_v43, %v14795_v14 }
  0xcd   : > { %12764 = vmatpush1.bf16.msra.mxu0 %v14731_v52  ;;  %12815 = vmatprep.subr.bf16.mxu1 %v17251_v1  ;;  %v2697_v61 = vand.u32 4294901760, %v2696_v18 }
  0xce   : > { %12766 = vmatprep.subr.bf16.mxu0 %v14749_v59  ;;  %12014 = vmatmul.mubr.f32.vlgmr.msra.gmra.mrb[4].mxu1 %v13943_v23  ;;  %v14793_v28 = vpop.permute.xlu0 %4736 }
  0xcf   : > { %12817 = vmatpush3.bf16.msra.mxu1 %v12816_v54  ;;  %2639 = vmatprep.mubr.f32.mxu0 %v17243_v2  ;;  %v12775_v25 = vpack.c.bf16 %v2697_v61, %v2685_v63  ;;  %v12825_v54 = vpack.c.bf16 %v14617_v30, %v14622_v50  ;;  %v3620_v15 = vpop.permute.xlu1 %3619  ;;  %v4205_v61 = vand.u32 4294901760, %v14776_v38  ;;  %v3665_v50 = vand.u32 4294901760, %v14855_v51 }
  0xd0   : > { %9068 = vrot.lane.b32.xlu0 %v13806_v13, %s13829_s7  ;;  %12818 = vmatprep.subr.bf16.mxu1 %v17251_v1  ;;  %v12781_v13 = vpack.c.bf16 %v14652_v21, %v14657_v26  ;;  %v12795_v30 = vpack.c.bf16 %v2671_v20, %v2659_v48 }
  0xd1   : > { %12768 = vmatpush1.bf16.msra.mxu0 %v14768_v45  ;;  %12024 = vmatprep.mubr.msk.f32.mxu1 %vm13825_vm1, %v17243_v2  ;;  %v14875_v29 = vsub.f32 %v14776_v38, %v4205_v61 }
  0xd2   : > { %12770 = vmatprep.subr.bf16.mxu0 %v12769_v49  ;;  %7984 = vrot.lane.b32.xlu1 %v13808_v17, %s13829_s7  ;;  %v14810_v18 = vpop.permute.xlu0 %4742  ;;  %v12783_v49 = vpack.c.bf16 %v14683_v31, %v14688_v22 }
  0xd3   : > { %12820 = vmatpush3.bf16.msra.mxu1 %v12819_v46  ;;  %v3636_v46 = vpop.permute.xlu1 %3635 }
  0xd4   : > { %2645 = vmatmul.mubr.f32.vlgmr.msra.gmra.mrb[4].mxu0 %v13943_v23  ;;  %310 = vperm.xlu0 %13801, %v301_v39   ;;  %v12834_v39 = vpack.c.bf16 %v3199_v58, %v3192_v34  ;;  %v4208_v34 = vand.u32 4294901760, %v14795_v14  ;;  %v12793_v58 = vpack.c.bf16 %v2665_v41, %v2653_v3  ;;  %v14878_v7 = vsel %vm317_vm2, %v3636_v46, 0 }
  0xd5   : > { %12772 = vmatpush1.bf16.msra.mxu0 %v12771_v33  ;;  %12821 = vmatprep.subr.bf16.mxu1 %v17251_v1  ;;  %v14883_v3 = vsel %vm3637_vm4, %v14582_v32, %v14495_v10  ;;  %v3661_v41 = vand.u32 4294901760, %v14850_v53  ;;  %v12797_v32 = vpack.c.bf16 %v2689_v55, %v2677_v9  ;;  %v4214_v36 = vand.u32 4294901760, %v14878_v7 }
  0xd6   : > { %12774 = vmatprep.subr.bf16.mxu0 %v12773_v40  ;;  %12025 = vmatmul.mubr.f32.vlgmr.msra.gmra.mrb[4].mxu1 %v13882_v4  ;;  %v14826_v19 = vpop.permute.xlu0 %4734  ;;  %v3645_v40 = vsel %vm3637_vm4, %v14644_v42, %v3636_v46  ;;  %v3663_v26 = vand.u32 4294901760, %v14883_v3  ;;  %v4286_v42 = vand.u32 4294901760, %v14875_v29  ;;  %v14933_v9 = vsub.f32 %v14855_v51, %v3665_v50 }
  0xd7   : > { %12823 = vmatpush3.bf16.msra.mxu1 %v12822_v57  ;;  %2755 = vmatprep.mubr.f32.mxu0 %v17243_v2  ;;  %v14843_v33 = vpop.permute.xlu1 %3629  ;;  %v12837_v57 = vpack.c.bf16 %v3213_v56, %v3206_v47  ;;  %v14894_v56 = vsub.f32 %v14795_v14, %v4208_v34  ;;  %v14898_v47 = vsel %vm3637_vm4, %v3620_v15, %v14535_v43  ;;  %v14901_v10 = vsel %vm317_vm2, %v3645_v40, 0 }
  0xd8   : > { %12824 = vmatprep.subr.bf16.mxu1 %v17251_v1  ;;  %12035 = vmatprep.mubr.msk.f32.mxu1 %vm13825_vm1, %v17243_v2  ;;  %v14916_v43 = vsel %vm3637_vm4, %v14724_v37, %v14843_v33  ;;  %v4211_v20 = vand.u32 4294901760, %v14843_v33  ;;  %v14928_v55 = vsub.f32 %v14850_v53, %v3661_v41  ;;  %v3667_v0 = vand.u32 4294901760, %v14898_v47 }
  0xd9   : > { %12776 = vmatpush1.bf16.msra.mxu0 %v12775_v25  ;;  %9054 = vrot.lane.b32.xlu1 %v13809_v44, %s13829_s7  ;;  %v12799_v25 = vpack.c.bf16 %v2695_v16, %v2683_v11  ;;  %v3669_v17 = vand.u32 4294901760, %v14916_v43  ;;  %v4293_v31 = vand.u32 4294901760, %v14894_v56  ;;  %v14959_v22 = vsub.f32 %v14878_v7, %v4214_v36 }
  0xda   : > { %12778 = vmatprep.subr.bf16.mxu0 %v12777_v27  ;;  %v14841_v63 = vpop.permute.xlu0 %4754  ;;  %v14944_v27 = vsel %vm317_vm2, %v3644_v35, 0  ;;  %v14964_v16 = vsub.f32 %v14843_v33, %v4211_v20  ;;  %v4287_v11 = vsub.f32 %v14875_v29, %v4286_v42  ;;  %v3747_v46 = vand.u32 4294901760, %v14928_v55  ;;  %v13812_v35 = vld [vmem:[%s13891_s28 + $0x178] sm:$0x7] }
  0xdb   : > { %12826 = vmatpush3.bf16.msra.mxu1 %v12825_v54  ;;  %v3626_v21 = vpop.permute.xlu1 %3625  ;;  %v3673_v54 = vand.u32 4294901760, %v14901_v10  ;;  %v3675_v15 = vand.u32 4294901760, %v14944_v27  ;;  %v4307_v40 = vand.u32 4294901760, %v14959_v22  ;;  %v15045_v51 = vpack.c.bf16 %v4214_v36, %v4211_v20 }
  0xdc   : > { %2757 = vmatmul.mubr.f32.vlgmr.msra.gmra.mrb[4].mxu0 %v13882_v4  ;;  %12827 = vmatprep.subr.bf16.mxu1 %v17251_v1  ;;  %v4288_v38 = vand.u32 4294901760, %v4287_v11 }
  0xdd   : > { %12780 = vmatpush1.bf16.msra.mxu0 %v12779_v6  ;;  %2843 = vmatprep.mubr.f32.mxu0 %v17243_v2  ;;  %v14950_v6 = vsel %vm3637_vm4, %v3626_v21, %v14724_v37  ;;  %v14969_v37 = vsub.f32 %v14883_v3, %v3663_v26  ;;  %v15012_v14 = vsub.f32 %v14944_v27, %v3675_v15  ;;  %v13813_v27 = vld [vmem:[%s13891_s28 + $0x160] sm:$0xff] }
  0xde   : > { %12782 = vmatprep.subr.bf16.mxu0 %v12781_v13  ;;  %12036 = vmatmul.mubr.f32.vlgmr.msra.gmra.mrb[4].mxu1 %v13886_v5  ;;  %v14919_v48 = vpop.permute.xlu0 %4748  ;;  %v14977_v13 = vsub.f32 %v14898_v47, %v3667_v0  ;;  %v15029_v47 = vpack.c.bf16 %v3665_v50, %v3661_v41  ;;  %v4308_v53 = vsub.f32 %v14959_v22, %v4307_v40 }
  0xdf   : > { %12829 = vmatpush3.bf16.msra.mxu1 %v14666_v12  ;;  %12046 = vmatprep.mubr.msk.f32.mxu1 %vm13825_vm1, %v17243_v2  ;;  %v3789_v33 = vand.u32 4294901760, %v15012_v14  ;;  %v15068_v20 = vpack.c.bf16 %v3673_v54, %v3669_v17 }
  0xe0   : > { %12830 = vmatprep.subr.bf16.mxu1 %v17251_v1  ;;  %9060 = vrot.lane.b32.xlu1 %v13810_v24, %s13829_s7  ;;  %v14997_v24 = vpack.c.bf16 %v4208_v34, %v4205_v61  ;;  %v3765_v61 = vand.u32 4294901760, %v14977_v13 }
  0xe1   : > { %12784 = vmatpush1.bf16.msra.mxu0 %v12783_v49  ;;  %v3671_v49 = vand.u32 4294901760, %v14950_v6 }
  0xe2   : > { %12786 = vmatprep.subr.bf16.mxu0 %v14702_v60  ;;  %v14980_v44 = vpop.permute.xlu0 %4752  ;;  %v3766_v7 = vsub.f32 %v14977_v13, %v3765_v61 }
  0xe3   : > { %12832 = vmatpush3.bf16.msra.mxu1 %v14716_v62  ;;  %v15016_v34 = vsub.f32 %v14950_v6, %v3671_v49  ;;  %v4309_v6 = vand.u32 4294901760, %v4308_v53 }
  0xe4   : > { %2846 = vmatmul.mubr.f32.vlgmr.msra.gmra.mrb[4].mxu0 %v13886_v5  ;;  %12833 = vmatprep.subr.bf16.mxu1 %v17251_v1 }
  0xe5   : > { %12788 = vmatpush1.bf16.msra.mxu0 %v14731_v52  ;;  %2924 = vmatprep.mubr.f32.mxu0 %v17243_v2  ;;  %v3777_v36 = vand.u32 4294901760, %v15016_v34 }
  0xe6   : > { %12790 = vmatprep.subr.bf16.mxu0 %v14749_v59  ;;  %12047 = vmatmul.mubr.f32.vlgmr.msra.gmra.mrb[4].mxu1 %v13900_v8  ;;  %v15050_v50 = vpop.permute.xlu0 %5815 }
  0xe7   : > { %12835 = vmatpush3.bf16.msra.mxu1 %v12834_v39  ;;  %12057 = vmatprep.mubr.msk.f32.mxu1 %vm13825_vm1, %v17243_v2  ;;  %v14985_v39 = vsub.f32 %v14901_v10, %v3673_v54 }
  0xe8   : > { %12836 = vmatprep.subr.bf16.mxu1 %v17251_v1 }
  0xe9   : > { %12792 = vmatpush1.bf16.msra.mxu0 %v14768_v45 }
  0xea   : > { %12794 = vmatprep.subr.bf16.mxu0 %v12793_v58  ;;  %v14988_v58 = vsub.f32 %v14916_v43, %v3669_v17  ;;  %v3790_v17 = vsub.f32 %v15012_v14, %v3789_v33 }
  0xeb   : > { %12838 = vmatpush3.bf16.msra.mxu1 %v12837_v57  ;;  %v4300_v57 = vand.u32 4294901760, %v14964_v16 }
  0xec   : > { %2928 = vmatmul.mubr.f32.vlgmr.msra.gmra.mrb[4].mxu0 %v13900_v8  ;;  %12839 = vmatprep.subr.bf16.mxu1 %v17251_v1 }
  0xed   : > { %12796 = vmatpush1.bf16.msra.mxu0 %v12795_v30  ;;  %3022 = vmatprep.mubr.f32.mxu0 %v17243_v2  ;;  %v3753_v30 = vand.u32 4294901760, %v14969_v37  ;;  %v4301_v41 = vsub.f32 %v14964_v16, %v4300_v57 }
  0xee   : > { %12798 = vmatprep.subr.bf16.mxu0 %v12797_v32  ;;  %12058 = vmatmul.mubr.f32.vlgmr.msra.gmra.mrb[4].mxu1 %v13882_v4  ;;  %v3771_v32 = vand.u32 4294901760, %v14988_v58 }
  0xef   : > { %12841 = vmatpush3.bf16.msra.mxu1 %v14666_v12  ;;  %12068 = vmatprep.mubr.msk.f32.mxu1 %vm13825_vm1, %v17243_v2  ;;  %v13811_v12 = vld [vmem:[%s13891_s28 + $0x138] sm:$0xff]  ;;  %v3754_v21 = vsub.f32 %v14969_v37, %v3753_v30 }
  0xf0   : > { %12842 = vmatprep.subr.bf16.mxu1 %v17251_v1  ;;  %9056 = vrot.lane.b32.xlu1 %v13811_v12, %s13829_s7  ;;  %v4302_v12 = vand.u32 4294901760, %v4301_v41 }
  0xf1   : > { %12800 = vmatpush1.bf16.msra.mxu0 %v12799_v25  ;;  %v15058_v25 = vpack.c.bf16 %v3667_v0, %v3663_v26  ;;  %v3772_v26 = vsub.f32 %v14988_v58, %v3771_v32  ;;  %v3755_v54 = vand.u32 4294901760, %v3754_v21 }
  0xf2   : > { %12802 = vmatprep.subr.bf16.mxu0 %v14702_v60  ;;  %v3759_v60 = vand.u32 4294901760, %v14933_v9 }
  0xf3   : > { %12844 = vmatpush3.bf16.msra.mxu1 %v14716_v62  ;;  %v4294_v62 = vsub.f32 %v14894_v56, %v4293_v31  ;;  %v3773_v53 = vand.u32 4294901760, %v3772_v26 }
  0xf4   : > { %3024 = vmatmul.mubr.f32.vlgmr.msra.gmra.mrb[4].mxu0 %v13882_v4  ;;  %12893 = vmatprep.subr.bf16.mxu1 %v17251_v1  ;;  %v3760_v10 = vsub.f32 %v14933_v9, %v3759_v60 }
  0xf5   : > { %12804 = vmatpush1.bf16.msra.mxu0 %v14731_v52  ;;  %3102 = vmatprep.mubr.f32.mxu0 %v17243_v2  ;;  %v3748_v52 = vsub.f32 %v14928_v55, %v3747_v46  ;;  %v4295_v43 = vand.u32 4294901760, %v4294_v62  ;;  %v3767_v62 = vand.u32 4294901760, %v3766_v7 }
  0xf6   : > { %12806 = vmatprep.subr.bf16.mxu0 %v14749_v59  ;;  %12069 = vmatmul.mubr.f32.vlgmr.msra.gmra.mrb[4].mxu1 %v13882_v4  ;;  %v3783_v59 = vand.u32 4294901760, %v14985_v39  ;;  %v3761_v3 = vand.u32 4294901760, %v3760_v10  ;;  %v15091_v10 = vpop.permute.xlu0 %5821 }
  0xf7   : > { %12895 = vmatpush3.bf16.msra.mxu1 %v14997_v24  ;;  %12079 = vmatprep.mubr.msk.f32.mxu1 %vm13825_vm1, %v17243_v2  ;;  %v12900_v11 = vpack.c.bf16 %v4295_v43, %v4288_v38  ;;  %v3778_v38 = vsub.f32 %v15016_v34, %v3777_v36  ;;  %v12855_v7 = vpack.c.bf16 %v3767_v62, %v3755_v54 }
  0xf8   : > { %12896 = vmatprep.subr.bf16.mxu1 %v17251_v1  ;;  %9072 = vrot.lane.b32.xlu1 %v13812_v35, %s13829_s7  ;;  %v3784_v0 = vsub.f32 %v14985_v39, %v3783_v59  ;;  %v15095_v35 = vpop.permute.xlu1 %4738  ;;  %v12909_v54 = vpack.c.bf16 %v14959_v22, %v14964_v16  ;;  %v12879_v22 = vpack.c.bf16 %v3765_v61, %v3753_v30 }
  0xf9   : > { %12808 = vmatpush1.bf16.msra.mxu0 %v14768_v45  ;;  %v3749_v45 = vand.u32 4294901760, %v3748_v52  ;;  %v15086_v52 = vpack.c.bf16 %v3675_v15, %v3671_v49  ;;  %v12903_v15 = vpack.c.bf16 %v4309_v6, %v4302_v12  ;;  %v3791_v49 = vand.u32 4294901760, %v3790_v17  ;;  %v13814_v12 = vld [vmem:[%s13891_s28 + $0x150] sm:$0xff] }
  0xfa   : > { %12846 = vmatprep.subr.bf16.mxu0 %v15029_v47  ;;  %v3785_v41 = vand.u32 4294901760, %v3784_v0  ;;  %v3779_v21 = vand.u32 4294901760, %v3778_v38  ;;  %v12861_v6 = vpack.c.bf16 %v14933_v9, %v14928_v55  ;;  %v12863_v17 = vpack.c.bf16 %v14977_v13, %v14969_v37 }
  0xfb   : > { %12898 = vmatpush3.bf16.msra.mxu1 %v15045_v51  ;;  %v12853_v43 = vpack.c.bf16 %v3761_v3, %v3749_v45  ;;  %v15103_v45 = vpop.permute.xlu0 %5813  ;;  %v12906_v3 = vpack.c.bf16 %v14894_v56, %v14875_v29  ;;  %v15160_v29 = vsel %vm4758_vm5, %v14793_v28, %v15095_v35  ;;  %v15191_v9 = vsel %vm4758_vm5, %v14826_v19, %v14793_v28 }
  0xfc   : > { %3104 = vmatmul.mubr.f32.vlgmr.msra.gmra.mrb[4].mxu0 %v13882_v4  ;;  %12899 = vmatprep.subr.bf16.mxu1 %v17251_v1  ;;  %v15108_v26 = vpop.permute.xlu1 %4744  ;;  %v12859_v0 = vpack.c.bf16 %v3791_v49, %v3779_v21  ;;  %v5326_v49 = vand.u32 4294901760, %v15095_v35  ;;  %v12881_v19 = vpack.c.bf16 %v3783_v59, %v3771_v32  ;;  %v4765_v37 = vsel %vm4758_vm5, %v14980_v44, %v14841_v63 }
  0xfd   : > { %12848 = vmatpush1.bf16.msra.mxu0 %v15058_v25  ;;  %3733 = vmatprep.mubr.f32.mxu0 %v17243_v2  ;;  %v15165_v56 = vsel %vm4758_vm5, %v14810_v18, %v15108_v26  ;;  %v4784_v30 = vand.u32 4294901760, %v15191_v9  ;;  %v12883_v32 = vpack.c.bf16 %v3789_v33, %v3777_v36 }
  0xfe   : > { %12850 = vmatprep.subr.bf16.mxu0 %v15068_v20  ;;  %12080 = vmatmul.mubr.f32.vlgmr.msra.gmra.mrb[6].mxu1 %v13943_v23  ;;  %v4786_v16 = vand.u32 4294901760, %v15165_v56 }
  0xff   : > { %12901 = vmatpush3.bf16.msra.mxu1 %v12900_v11  ;;  %12090 = vmatprep.mubr.msk.f32.mxu1 %vm13825_vm1, %v17243_v2  ;;  %v12857_v11 = vpack.c.bf16 %v3785_v41, %v3773_v53  ;;  %v15122_v62 = vpop.permute.xlu0 %5833  ;;  %v12867_v53 = vpack.c.bf16 %v15012_v14, %v15016_v34 }
 0x100   : > { %12902 = vmatprep.subr.bf16.mxu1 %v17251_v1  ;;  %9066 = vrot.lane.b32.xlu1 %v13813_v27, %s13829_s7  ;;  %v4741_v38 = vpop.permute.xlu1 %4740  ;;  %v15239_v44 = vsub.f32 %v15165_v56, %v4786_v16 }
 0x101   : > { %12852 = vmatpush1.bf16.msra.mxu0 %v15086_v52 }
 0x102   : > { %12854 = vmatprep.subr.bf16.mxu0 %v12853_v43  ;;  %v12865_v43 = vpack.c.bf16 %v14985_v39, %v14988_v58 }
 0x103   : > { %12904 = vmatpush3.bf16.msra.mxu1 %v12903_v15  ;;  %v15136_v41 = vpop.permute.xlu0 %5827  ;;  %v12918_v15 = vpack.c.bf16 %v4293_v31, %v4286_v42  ;;  %v5329_v42 = vand.u32 4294901760, %v15108_v26  ;;  %v12877_v31 = vpack.c.bf16 %v3759_v60, %v3747_v46  ;;  %v4782_v46 = vand.u32 4294901760, %v15160_v29 }
 0x104   : > { %3739 = vmatmul.mubr.f32.vlgmr.msra.gmra.mrb[6].mxu0 %v13943_v23  ;;  %12905 = vmatprep.subr.bf16.mxu1 %v17251_v1  ;;  %v4757_v27 = vpop.permute.xlu1 %4756 }
 0x105   : > { %12856 = vmatpush1.bf16.msra.mxu0 %v12855_v7  ;;  %3849 = vmatprep.mubr.f32.mxu0 %v17243_v2  ;;  %v15186_v55 = vsel %vm317_vm2, %v4757_v27, 0  ;;  %v15200_v60 = vsub.f32 %v15108_v26, %v5329_v42  ;;  %v15250_v26 = vsel %vm317_vm2, %v4765_v37, 0  ;;  %v15337_v37 = vpack.c.bf16 %v4786_v16, %v4782_v46 }
 0x106   : > { %12858 = vmatprep.subr.bf16.mxu0 %v12857_v11  ;;  %12091 = vmatmul.mubr.f32.vlgmr.msra.gmra.mrb[6].mxu1 %v13882_v4  ;;  %v4766_v11 = vsel %vm4758_vm5, %v14841_v63, %v4757_v27  ;;  %v15234_v63 = vsub.f32 %v15160_v29, %v4782_v46  ;;  %v4796_v36 = vand.u32 4294901760, %v15250_v26 }
 0x107   : > { %12907 = vmatpush3.bf16.msra.mxu1 %v12906_v3  ;;  %12101 = vmatprep.mubr.msk.f32.mxu1 %vm13825_vm1, %v17243_v2  ;;  %v15151_v21 = vpop.permute.xlu0 %5831  ;;  %v12921_v3 = vpack.c.bf16 %v4307_v40, %v4300_v57  ;;  %v15204_v40 = vsel %vm4758_vm5, %v4741_v38, %v14810_v18  ;;  %v15207_v28 = vsel %vm317_vm2, %v4766_v11, 0  ;;  %v5335_v18 = vand.u32 4294901760, %v15186_v55 }
 0x108   : > { %12908 = vmatprep.subr.bf16.mxu1 %v17251_v1  ;;  %9062 = vrot.lane.b32.xlu1 %v13814_v12, %s13829_s7  ;;  %v15153_v7 = vpop.permute.xlu1 %4750  ;;  %v4788_v59 = vand.u32 4294901760, %v15204_v40  ;;  %v15301_v11 = vpack.c.bf16 %v5329_v42, %v5326_v49 }
 0x109   : > { %12860 = vmatpush1.bf16.msra.mxu0 %v12859_v0  ;;  %v15183_v0 = vsub.f32 %v15095_v35, %v5326_v49  ;;  %v15224_v57 = vsel %vm4758_vm5, %v14919_v48, %v15153_v7  ;;  %v5332_v58 = vand.u32 4294901760, %v15153_v7  ;;  %v15263_v14 = vsub.f32 %v15186_v55, %v5335_v18 }
 0x10a   : > { %12862 = vmatprep.subr.bf16.mxu0 %v12861_v6  ;;  %v4794_v6 = vand.u32 4294901760, %v15207_v28  ;;  %v4790_v12 = vand.u32 4294901760, %v15224_v57  ;;  %v15283_v38 = vsub.f32 %v15204_v40, %v4788_v59  ;;  %v15318_v35 = vsub.f32 %v15250_v26, %v4796_v36 }
 0x10b   : > { %12910 = vmatpush3.bf16.msra.mxu1 %v12909_v54  ;;  %v15218_v13 = vpop.permute.xlu0 %6893  ;;  %v5407_v61 = vand.u32 4294901760, %v15183_v0  ;;  %v15268_v34 = vsub.f32 %v15153_v7, %v5332_v58  ;;  %v15355_v56 = vpack.c.bf16 %v5335_v18, %v5332_v58 }
 0x10c   : > { %3851 = vmatmul.mubr.f32.vlgmr.msra.gmra.mrb[6].mxu0 %v13882_v4  ;;  %12911 = vmatprep.subr.bf16.mxu1 %v17251_v1  ;;  %v4747_v39 = vpop.permute.xlu1 %4746  ;;  %v15289_v27 = vsub.f32 %v15207_v28, %v4794_v6  ;;  %v17226_v49 = vand.u32 4294901760, %v15283_v38  ;;  %v17228_v7 = vand.u32 4294901760, %v15318_v35  ;;  %v15376_v58 = vpack.c.bf16 %v4794_v6, %v4790_v12 }
 0x10d   : > { %12864 = vmatpush1.bf16.msra.mxu0 %v12863_v17  ;;  %3937 = vmatprep.mubr.f32.mxu0 %v17243_v2  ;;  %v15256_v54 = vsel %vm4758_vm5, %v4747_v39, %v14919_v48  ;;  %v15273_v48 = vsub.f32 %v15191_v9, %v4784_v30  ;;  %v5408_v33 = vsub.f32 %v15183_v0, %v5407_v61 }
 0x10e   : > { %12866 = vmatprep.subr.bf16.mxu0 %v12865_v43  ;;  %12102 = vmatmul.mubr.f32.vlgmr.msra.gmra.mrb[6].mxu1 %v13886_v5  ;;  %v4792_v43 = vand.u32 4294901760, %v15256_v54  ;;  %v4904_v42 = vand.u32 4294901760, %v15289_v27  ;;  %v4887_v55 = vsub.f32 %v15283_v38, %v17226_v49 }
 0x10f   : > { %12913 = vmatpush3.bf16.msra.mxu1 %v14997_v24  ;;  %12112 = vmatprep.mubr.msk.f32.mxu1 %vm13825_vm1, %v17243_v2  ;;  %v15280_v17 = vpop.permute.xlu0 %6899  ;;  %v4874_v28 = vand.u32 4294901760, %v15273_v48 }
 0x110   : > { %12914 = vmatprep.subr.bf16.mxu1 %v17251_v1 }
 0x111   : > { %12868 = vmatpush1.bf16.msra.mxu0 %v12867_v53  ;;  %v17224_v53 = vand.u32 4294901760, %v15234_v63 }
 0x112   : > { %12870 = vmatprep.subr.bf16.mxu0 %v15029_v47 }
 0x113   : > { %12916 = vmatpush3.bf16.msra.mxu1 %v15045_v51 }
 0x114   : > { %3940 = vmatmul.mubr.f32.vlgmr.msra.gmra.mrb[6].mxu0 %v13886_v5  ;;  %12917 = vmatprep.subr.bf16.mxu1 %v17251_v1 }
 0x115   : > { %12872 = vmatpush1.bf16.msra.mxu0 %v15058_v25  ;;  %4018 = vmatprep.mubr.f32.mxu0 %v17243_v2 }
 0x116   : > { %12874 = vmatprep.subr.bf16.mxu0 %v15068_v20  ;;  %12113 = vmatmul.mubr.f32.vlgmr.msra.gmra.mrb[6].mxu1 %v13900_v8 }
 0x117   : > { %12919 = vmatpush3.bf16.msra.mxu1 %v12918_v15  ;;  %12123 = vmatprep.mubr.msk.f32.mxu1 %vm13825_vm1, %v17243_v2  ;;  %v15292_v15 = vsub.f32 %v15224_v57, %v4790_v12  ;;  %v4911_v12 = vsub.f32 %v15318_v35, %v17228_v7 }
 0x118   : > { %12920 = vmatprep.subr.bf16.mxu1 %v17251_v1 }
 0x119   : > { %12876 = vmatpush1.bf16.msra.mxu0 %v15086_v52  ;;  %v17227_v39 = vand.u32 4294901760, %v15292_v15 }
 0x11a   : > { %12878 = vmatprep.subr.bf16.mxu0 %v12877_v31 }
 0x11b   : > { %12922 = vmatpush3.bf16.msra.mxu1 %v12921_v3  ;;  %v17225_v3 = vand.u32 4294901760, %v15263_v14 }
 0x11c   : > { %4022 = vmatmul.mubr.f32.vlgmr.msra.gmra.mrb[6].mxu0 %v13900_v8  ;;  %12923 = vmatprep.subr.bf16.mxu1 %v17251_v1 }
 0x11d   : > { %12880 = vmatpush1.bf16.msra.mxu0 %v12879_v22  ;;  %4116 = vmatprep.mubr.f32.mxu0 %v17243_v2  ;;  %v5421_v22 = vand.u32 4294901760, %v15268_v34  ;;  %v5429_v29 = vsub.f32 %v15263_v14, %v17225_v3  ;;  %v15366_v3 = vpack.c.bf16 %v4788_v59, %v4784_v30  ;;  %v4893_v30 = vsub.f32 %v15292_v15, %v17227_v39 }
 0x11e   : > { %12882 = vmatprep.subr.bf16.mxu0 %v12881_v19  ;;  %12124 = vmatmul.mubr.f32.vlgmr.msra.gmra.mrb[6].mxu1 %v13882_v4  ;;  %v5409_v19 = vand.u32 4294901760, %v5408_v33  ;;  %v4905_v59 = vsub.f32 %v15289_v27, %v4904_v42 }
 0x11f   : > { %12925 = vmatpush3.bf16.msra.mxu1 %v14997_v24  ;;  %12134 = vmatprep.mubr.msk.f32.mxu1 %vm13825_vm1, %v17243_v2  ;;  %v5414_v24 = vand.u32 4294901760, %v15200_v60  ;;  %v5422_v46 = vsub.f32 %v15268_v34, %v5421_v22 }
 0x120   : > { %12926 = vmatprep.subr.bf16.mxu1 %v17251_v1 }
 0x121   : > { %12884 = vmatpush1.bf16.msra.mxu0 %v12883_v32  ;;  %v5423_v49 = vand.u32 4294901760, %v5422_v46 }
 0x122   : > { %12886 = vmatprep.subr.bf16.mxu0 %v15029_v47  ;;  %v4880_v47 = vand.u32 4294901760, %v15239_v44 }
 0x123   : > { %12928 = vmatpush3.bf16.msra.mxu1 %v15045_v51  ;;  %v5415_v51 = vsub.f32 %v15200_v60, %v5414_v24 }
 0x124   : > { %4118 = vmatmul.mubr.f32.vlgmr.msra.gmra.mrb[6].mxu0 %v13882_v4  ;;  %12977 = vmatprep.subr.bf16.mxu1 %v17251_v1  ;;  %v15297_v31 = vpop.f32.mrb[0].mxu0  ;;  %v4881_v57 = vsub.f32 %v15239_v44, %v4880_v47 }
 0x125   : > { %12888 = vmatpush1.bf16.msra.mxu0 %v15058_v25  ;;  %4196 = vmatprep.mubr.f32.mxu0 %v17243_v2  ;;  %v15310_v40 = vpop.f32.mrb[1].mxu0  ;;  %v15324_v25 = vsub.f32 %v15256_v54, %v4792_v43  ;;  %v5416_v33 = vand.u32 4294901760, %v5415_v51  ;;  %v4875_v51 = vsub.f32 %v15273_v48, %v4874_v28  ;;  %v4912_v54 = vand.u32 4294901760, %v4911_v12 }
 0x126   : > { %12890 = vmatprep.subr.bf16.mxu0 %v15068_v20  ;;  %12135 = vmatmul.mubr.f32.vlgmr.msra.gmra.mrb[6].mxu1 %v13882_v4  ;;  %v4869_v20 = vsub.f32 %v15234_v63, %v17224_v53  ;;  %v15346_v53 = vpop.permute.xlu0 %6891  ;;  %v4882_v9 = vand.u32 4294901760, %v4881_v57  ;;  %v4888_v57 = vand.u32 4294901760, %v4887_v55  ;;  %v4906_v55 = vand.u32 4294901760, %v4905_v59 }
 0x127   : > { %12979 = vmatpush3.bf16.msra.mxu1 %v15301_v11  ;;  %12145 = vmatprep.mubr.msk.f32.mxu1 %vm13825_vm1, %v17243_v2  ;;  %v4898_v18 = vand.u32 4294901760, %v15324_v25  ;;  %v4876_v6 = vand.u32 4294901760, %v4875_v51  ;;  %v4894_v51 = vand.u32 4294901760, %v4893_v30  ;;  %v12945_v30 = vpack.c.bf16 %v15239_v44, %v15234_v63 }
 0x128   : > { %12980 = vmatprep.subr.bf16.mxu1 %v17251_v1  ;;  %v15344_v32 = vpop.f32.mrb[0].mxu1  ;;  %v12993_v59 = vpack.c.bf16 %v15263_v14, %v15268_v34  ;;  %v15497_v44 = vsel %vm4758_vm5, %v15103_v45, %v15050_v50  ;;  %v17292_v45 = vand.u32 4294901760, %v15292_v15 }
 0x129   : > { %12892 = vmatpush1.bf16.msra.mxu0 %v15086_v52  ;;  %v11938_v16 = vpop.f32.mrb[1].mxu1  ;;  %v4870_v52 = vand.u32 4294901760, %v4869_v20  ;;  %v12984_v20 = vpack.c.bf16 %v5416_v33, %v5409_v19  ;;  %v4899_v19 = vsub.f32 %v15324_v25, %v4898_v18  ;;  %v15405_v33 = vpop.permute.xlu1 %5817 }
 0x12a   : > { %12930 = vmatprep.subr.bf16.mxu0 %v15337_v37  ;;  %v5430_v16 = vand.u32 4294901760, %v5429_v29  ;;  %v15392_v39 = vpop.permute.xlu0 %6911  ;;  %v15398_v29 = vpack.c.bf16 %v4796_v36, %v4792_v43  ;;  %v12939_v43 = vpack.c.bf16 %v4888_v57, %v4876_v6  ;;  %v12949_v57 = vpack.c.bf16 %v15289_v27, %v15292_v15 }
 0x12b   : > { %12982 = vmatpush3.bf16.msra.mxu1 %v15355_v56  ;;  %v12937_v46 = vpack.c.bf16 %v4882_v9, %v4870_v52  ;;  %v4900_v36 = vand.u32 4294901760, %v4899_v19  ;;  %v12990_v52 = vpack.c.bf16 %v15200_v60, %v15183_v0  ;;  %v12951_v19 = vpack.c.bf16 %v15318_v35, %v15324_v25 }
 0x12c   : > { %4198 = vmatmul.mubr.f32.vlgmr.msra.gmra.mrb[6].mxu0 %v13882_v4  ;;  %12983 = vmatprep.subr.bf16.mxu1 %v17251_v1  ;;  %v12987_v26 = vpack.c.bf16 %v5430_v16, %v5423_v49  ;;  %v12947_v16 = vpack.c.bf16 %v15283_v38, %v15273_v48  ;;  %v15466_v0 = vsel %vm4758_vm5, %v15050_v50, %v15405_v33 }
 0x12d   : > { %12932 = vmatpush1.bf16.msra.mxu0 %v15366_v3  ;;  %4854 = vmatprep.mubr.f32.mxu0 %v17243_v2  ;;  %v15416_v9 = vpop.permute.xlu1 %5823  ;;  %v12943_v49 = vpack.c.bf16 %v4912_v54, %v4900_v36  ;;  %v12965_v48 = vpack.c.bf16 %v4904_v42, %v17292_v45  ;;  %v5862_v42 = vand.u32 4294901760, %v15497_v44 }
 0x12e   : > { %12934 = vmatprep.subr.bf16.mxu0 %v15376_v58  ;;  %12146 = vmatmul.mubr.f32.vlgmr.msra.gmra.mrb[8].mxu1 %v13943_v23  ;;  %v15411_v7 = vpop.permute.xlu0 %6905  ;;  %v15471_v60 = vsel %vm4758_vm5, %v15091_v10, %v15416_v9 }
 0x12f   : > { %12985 = vmatpush3.bf16.msra.mxu1 %v12984_v20  ;;  %12156 = vmatprep.mubr.msk.f32.mxu1 %vm13825_vm1, %v17243_v2  ;;  %v12941_v20 = vpack.c.bf16 %v4906_v55, %v4894_v51  ;;  %v13002_v55 = vpack.c.bf16 %v5414_v24, %v5407_v61  ;;  %v6407_v61 = vand.u32 4294901760, %v15416_v9  ;;  %v17289_v24 = vand.u32 4294901760, %v15234_v63 }
 0x130   : > { %12986 = vmatprep.subr.bf16.mxu1 %v17251_v1  ;;  %v5864_v34 = vand.u32 4294901760, %v15471_v60 }
 0x131   : > { %12936 = vmatpush1.bf16.msra.mxu0 %v15398_v29  ;;  %v5820_v12 = vpop.permute.xlu1 %5819 }
 0x132   : > { %12938 = vmatprep.subr.bf16.mxu0 %v12937_v46  ;;  %v15428_v6 = vpop.permute.xlu0 %6909 }
 0x133   : > { %12988 = vmatpush3.bf16.msra.mxu1 %v12987_v26  ;;  %v6404_v26 = vand.u32 4294901760, %v15405_v33 }
 0x134   : > { %4860 = vmatmul.mubr.f32.vlgmr.msra.gmra.mrb[8].mxu0 %v13943_v23  ;;  %12989 = vmatprep.subr.bf16.mxu1 %v17251_v1 }
 0x135   : > { %12940 = vmatpush1.bf16.msra.mxu0 %v12939_v43  ;;  %4970 = vmatprep.mubr.f32.mxu0 %v17243_v2  ;;  %v5836_v51 = vpop.permute.xlu1 %5835  ;;  %v12961_v43 = vpack.c.bf16 %v4880_v47, %v17289_v24  ;;  %v5860_v47 = vand.u32 4294901760, %v15466_v0 }
 0x136   : > { %12942 = vmatprep.subr.bf16.mxu0 %v12941_v20  ;;  %12157 = vmatmul.mubr.f32.vlgmr.msra.gmra.mrb[8].mxu1 %v13882_v4  ;;  %v15442_v46 = vpop.permute.xlu0 %7974  ;;  %v5844_v20 = vsel %vm4758_vm5, %v15122_v62, %v5836_v51  ;;  %v15492_v63 = vsel %vm317_vm2, %v5836_v51, 0 }
 0x137   : > { %12991 = vmatpush3.bf16.msra.mxu1 %v12990_v52  ;;  %12167 = vmatprep.mubr.msk.f32.mxu1 %vm13825_vm1, %v17243_v2  ;;  %v17290_v52 = vand.u32 4294901760, %v15263_v14  ;;  %v17291_v14 = vand.u32 4294901760, %v15283_v38  ;;  %v15513_v50 = vsel %vm317_vm2, %v5844_v20, 0  ;;  %v5843_v38 = vsel %vm4758_vm5, %v15151_v21, %v15122_v62 }
 0x138   : > { %12992 = vmatprep.subr.bf16.mxu1 %v17251_v1  ;;  %v15540_v62 = vsub.f32 %v15466_v0, %v5860_v47  ;;  %v15545_v21 = vsub.f32 %v15471_v60, %v5864_v34  ;;  %v5872_v24 = vand.u32 4294901760, %v15513_v50 }
 0x139   : > { %12944 = vmatpush1.bf16.msra.mxu0 %v12943_v49  ;;  %v15459_v36 = vpop.permute.xlu1 %5829  ;;  %v13005_v49 = vpack.c.bf16 %v17290_v52, %v5421_v22  ;;  %v12963_v22 = vpack.c.bf16 %v17291_v14, %v4874_v28 }
 0x13a   : > { %12946 = vmatprep.subr.bf16.mxu0 %v12945_v30  ;;  %v15457_v54 = vpop.permute.xlu0 %7980  ;;  %v15489_v30 = vsub.f32 %v15405_v33, %v6404_v26  ;;  %v6410_v15 = vand.u32 4294901760, %v15459_v36 }
 0x13b   : > { %12994 = vmatpush3.bf16.msra.mxu1 %v12993_v59  ;;  %v15506_v59 = vsub.f32 %v15416_v9, %v6407_v61  ;;  %v15530_v9 = vsel %vm4758_vm5, %v15136_v41, %v15459_v36 }
 0x13c   : > { %4972 = vmatmul.mubr.f32.vlgmr.msra.gmra.mrb[8].mxu0 %v13882_v4  ;;  %12995 = vmatprep.subr.bf16.mxu1 %v17251_v1  ;;  %v15572_v25 = vsub.f32 %v15459_v36, %v6410_v15 }
 0x13d   : > { %12948 = vmatpush1.bf16.msra.mxu0 %v12947_v16  ;;  %5058 = vmatprep.mubr.f32.mxu0 %v17243_v2  ;;  %v15510_v16 = vsel %vm4758_vm5, %v5820_v12, %v15091_v10  ;;  %v6413_v10 = vand.u32 4294901760, %v15492_v63  ;;  %v5826_v27 = vpop.permute.xlu1 %5825  ;;  %v6485_v12 = vand.u32 4294901760, %v15489_v30 }
 0x13e   : > { %12168 = vmatmul.mubr.f32.vlgmr.msra.gmra.mrb[8].mxu1 %v13886_v5  ;;  %12950 = vmatprep.subr.bf16.mxu0 %v12949_v57  ;;  %v15524_v28 = vpop.permute.xlu0 %7972  ;;  %v5866_v57 = vand.u32 4294901760, %v15510_v16  ;;  %v15562_v20 = vsel %vm4758_vm5, %v5826_v27, %v15136_v41  ;;  %v15633_v27 = vpack.c.bf16 %v5864_v34, %v5860_v47 }
 0x13f   : > { %12997 = vmatpush3.bf16.msra.mxu1 %v15301_v11  ;;  %12178 = vmatprep.mubr.msk.f32.mxu1 %vm13825_vm1, %v17243_v2  ;;  %v6486_v41 = vsub.f32 %v15489_v30, %v6485_v12  ;;  %v5870_v36 = vand.u32 4294901760, %v15562_v20  ;;  %v15647_v0 = vpack.c.bf16 %v6413_v10, %v6410_v15 }
 0x140   : > { %12998 = vmatprep.subr.bf16.mxu1 %v17251_v1  ;;  %v15585_v14 = vsub.f32 %v15510_v16, %v5866_v57  ;;  %v15601_v16 = vpack.c.bf16 %v6407_v61, %v6404_v26  ;;  %v15656_v34 = vpack.c.bf16 %v5866_v57, %v5862_v42 }
 0x141   : > { %12952 = vmatpush1.bf16.msra.mxu0 %v12951_v19  ;;  %v17293_v19 = vand.u32 4294901760, %v15318_v35  ;;  %v15569_v35 = vsub.f32 %v15492_v63, %v6413_v10  ;;  %v15620_v61 = vsub.f32 %v15562_v20, %v5870_v36 }
 0x142   : > { %12954 = vmatprep.subr.bf16.mxu0 %v15337_v37  ;;  %v17230_v26 = vand.u32 4294901760, %v15585_v14 }
 0x143   : > { %13000 = vmatpush3.bf16.msra.mxu1 %v15355_v56  ;;  %v12967_v51 = vpack.c.bf16 %v17293_v19, %v4898_v18  ;;  %v15575_v18 = vsub.f32 %v15497_v44, %v5862_v42  ;;  %v17229_v44 = vand.u32 4294901760, %v15540_v62  ;;  %v17235_v10 = vand.u32 4294901760, %v15620_v61 }
 0x144   : > { %5061 = vmatmul.mubr.f32.vlgmr.msra.gmra.mrb[8].mxu0 %v13886_v5  ;;  %13001 = vmatprep.subr.bf16.mxu1 %v17251_v1  ;;  %v5965_v63 = vsub.f32 %v15585_v14, %v17230_v26 }
 0x145   : > { %12956 = vmatpush1.bf16.msra.mxu0 %v15366_v3  ;;  %5139 = vmatprep.mubr.f32.mxu0 %v17243_v2 }
 0x146   : > { %12958 = vmatprep.subr.bf16.mxu0 %v15376_v58  ;;  %12179 = vmatmul.mubr.f32.vlgmr.msra.gmra.mrb[8].mxu1 %v13900_v8 }
 0x147   : > { %13003 = vmatpush3.bf16.msra.mxu1 %v13002_v55  ;;  %12189 = vmatprep.mubr.msk.f32.mxu1 %vm13825_vm1, %v17243_v2  ;;  %v15556_v55 = vsel %vm317_vm2, %v5843_v38, 0  ;;  %v17231_v38 = vand.u32 4294901760, %v15575_v18 }
 0x148   : > { %13004 = vmatprep.subr.bf16.mxu1 %v17251_v1  ;;  %v5874_v52 = vand.u32 4294901760, %v15556_v55 }
 0x149   : > { %12960 = vmatpush1.bf16.msra.mxu0 %v15398_v29  ;;  %v5953_v47 = vsub.f32 %v15575_v18, %v17231_v38 }
 0x14a   : > { %12962 = vmatprep.subr.bf16.mxu0 %v12961_v43  ;;  %v5868_v43 = vand.u32 4294901760, %v15530_v9  ;;  %v15616_v33 = vsub.f32 %v15556_v55, %v5874_v52 }
 0x14b   : > { %13006 = vmatpush3.bf16.msra.mxu1 %v13005_v49  ;;  %v15582_v49 = vpop.permute.xlu0 %7992 }
 0x14c   : > { %5143 = vmatmul.mubr.f32.vlgmr.msra.gmra.mrb[8].mxu0 %v13900_v8  ;;  %13007 = vmatprep.subr.bf16.mxu1 %v17251_v1  ;;  %v15594_v45 = vsub.f32 %v15530_v9, %v5868_v43  ;;  %v6487_v9 = vand.u32 4294901760, %v6486_v41 }
 0x14d   : > { %12964 = vmatpush1.bf16.msra.mxu0 %v12963_v22  ;;  %5237 = vmatprep.mubr.f32.mxu0 %v17243_v2  ;;  %v15591_v22 = vsub.f32 %v15513_v50, %v5872_v24  ;;  %v17232_v50 = vand.u32 4294901760, %v15569_v35 }
 0x14e   : > { %12966 = vmatprep.subr.bf16.mxu0 %v12965_v48  ;;  %12190 = vmatmul.mubr.f32.vlgmr.msra.gmra.mrb[8].mxu1 %v13882_v4  ;;  %v6499_v48 = vand.u32 4294901760, %v15572_v25 }
 0x14f   : > { %13009 = vmatpush3.bf16.msra.mxu1 %v15301_v11  ;;  %12200 = vmatprep.mubr.msk.f32.mxu1 %vm13825_vm1, %v17243_v2  ;;  %v6492_v11 = vand.u32 4294901760, %v15506_v59  ;;  %v15640_v20 = vpop.permute.xlu0 %7986 }
 0x150   : > { %13010 = vmatprep.subr.bf16.mxu1 %v17251_v1  ;;  %v6500_v60 = vsub.f32 %v15572_v25, %v6499_v48 }
 0x151   : > { %12968 = vmatpush1.bf16.msra.mxu0 %v12967_v51  ;;  %v17233_v51 = vand.u32 4294901760, %v15594_v45 }
 0x152   : > { %12970 = vmatprep.subr.bf16.mxu0 %v15337_v37  ;;  %v5958_v37 = vand.u32 4294901760, %v15545_v21 }
 0x153   : > { %13012 = vmatpush3.bf16.msra.mxu1 %v15355_v56  ;;  %v6493_v56 = vsub.f32 %v15506_v59, %v6492_v11  ;;  %v5971_v57 = vsub.f32 %v15594_v45, %v17233_v51  ;;  %v5966_v51 = vand.u32 4294901760, %v5965_v63 }
 0x154   : > { %5239 = vmatmul.mubr.f32.vlgmr.msra.gmra.mrb[8].mxu0 %v13882_v4  ;;  %13061 = vmatprep.subr.bf16.mxu1 %v17251_v1  ;;  %v5959_v19 = vsub.f32 %v15545_v21, %v5958_v37 }
 0x155   : > { %12972 = vmatpush1.bf16.msra.mxu0 %v15366_v3  ;;  %5317 = vmatprep.mubr.f32.mxu0 %v17243_v2  ;;  %v5947_v3 = vsub.f32 %v15540_v62, %v17229_v44  ;;  %v6494_v41 = vand.u32 4294901760, %v6493_v56  ;;  %v6507_v44 = vsub.f32 %v15569_v35, %v17232_v50  ;;  %v17234_v56 = vand.u32 4294901760, %v15616_v33 }
 0x156   : > { %12974 = vmatprep.subr.bf16.mxu0 %v15376_v58  ;;  %12201 = vmatmul.mubr.f32.vlgmr.msra.gmra.mrb[8].mxu1 %v13882_v4  ;;  %v5982_v58 = vand.u32 4294901760, %v15591_v22  ;;  %v5960_v42 = vand.u32 4294901760, %v5959_v19  ;;  %v6501_v50 = vand.u32 4294901760, %v6500_v60  ;;  %v15682_v19 = vpop.permute.xlu0 %7990 }
 0x157   : > { %13063 = vmatpush3.bf16.msra.mxu1 %v15601_v16  ;;  %12211 = vmatprep.mubr.msk.f32.mxu1 %vm13825_vm1, %v17243_v2  ;;  %v5948_v15 = vand.u32 4294901760, %v5947_v3  ;;  %v6508_v38 = vand.u32 4294901760, %v6507_v44  ;;  %v13068_v3 = vpack.c.bf16 %v6494_v41, %v6487_v9  ;;  %v15686_v44 = vpack.c.bf16 %v5874_v52, %v5870_v36  ;;  %v15693_v41 = vpop.permute.xlu1 %6895 }
 0x158   : > { %13064 = vmatprep.subr.bf16.mxu1 %v17251_v1  ;;  %v5983_v26 = vsub.f32 %v15591_v22, %v5982_v58  ;;  %v5977_v9 = vsub.f32 %v15620_v61, %v17235_v10 }
 0x159   : > { %12976 = vmatpush1.bf16.msra.mxu0 %v15398_v29  ;;  %v15666_v29 = vpack.c.bf16 %v5872_v24, %v5868_v43  ;;  %v5954_v24 = vand.u32 4294901760, %v5953_v47  ;;  %v5989_v43 = vsub.f32 %v15616_v33, %v17234_v56  ;;  %v13021_v60 = vpack.c.bf16 %v5960_v42, %v5948_v15 }
 0x15a   : > { %13014 = vmatprep.subr.bf16.mxu0 %v15633_v27  ;;  %v5972_v47 = vand.u32 4294901760, %v5971_v57  ;;  %v5984_v56 = vand.u32 4294901760, %v5983_v26  ;;  %v13071_v55 = vpack.c.bf16 %v6508_v38, %v6501_v50  ;;  %v5978_v36 = vand.u32 4294901760, %v5977_v9  ;;  %v15699_v10 = vpop.permute.xlu0 %9052 }
 0x15b   : > { %13066 = vmatpush3.bf16.msra.mxu1 %v15647_v0  ;;  %v5990_v52 = vand.u32 4294901760, %v5989_v43  ;;  %v13023_v63 = vpack.c.bf16 %v5966_v51, %v5954_v24  ;;  %v13074_v15 = vpack.c.bf16 %v15506_v59, %v15489_v30  ;;  %v15704_v26 = vpop.permute.xlu1 %6901  ;;  %v13029_v38 = vpack.c.bf16 %v15545_v21, %v15540_v62 }
 0x15c   : > { %5319 = vmatmul.mubr.f32.vlgmr.msra.gmra.mrb[8].mxu0 %v13882_v4  ;;  %13067 = vmatprep.subr.bf16.mxu1 %v17251_v1  ;;  %v13077_v51 = vpack.c.bf16 %v15569_v35, %v15572_v25  ;;  %v13031_v42 = vpack.c.bf16 %v15585_v14, %v15575_v18  ;;  %v13033_v24 = vpack.c.bf16 %v15591_v22, %v15594_v45  ;;  %v7485_v59 = vand.u32 4294901760, %v15704_v26 }
 0x15d   : > { %13016 = vmatpush1.bf16.msra.mxu0 %v15656_v34  ;;  %5932 = vmatprep.mubr.f32.mxu0 %v17243_v2  ;;  %v13027_v50 = vpack.c.bf16 %v5990_v52, %v5978_v36  ;;  %v13035_v43 = vpack.c.bf16 %v15616_v33, %v15620_v61  ;;  %v15749_v52 = vsel %vm3637_vm4, %v15218_v13, %v15693_v41  ;;  %v7482_v36 = vand.u32 4294901760, %v15693_v41 }
 0x15e   : > { %13018 = vmatprep.subr.bf16.mxu0 %v15666_v29  ;;  %12212 = vmatmul.mubr.f32.vlgmr.msra.gmra.mrb[10].mxu1 %v13943_v23  ;;  %v6938_v21 = vand.u32 4294901760, %v15749_v52  ;;  %v17297_v25 = vand.u32 4294901760, %v15585_v14  ;;  %v6921_v14 = vsel %vm3637_vm4, %v15428_v6, %v15392_v39  ;;  %v1360_v6 = vlaneseq }
 0x15f   : > { %13069 = vmatpush3.bf16.msra.mxu1 %v13068_v3  ;;  %12222 = vmatprep.mubr.msk.f32.mxu1 %vm13825_vm1, %v17243_v2  ;;  %v13025_v3 = vpack.c.bf16 %v5984_v56, %v5972_v47  ;;  %v15714_v56 = vpop.permute.xlu0 %9058  ;;  %v6898_v57 = vpop.permute.xlu1 %6897  ;;  %v13086_v47 = vpack.c.bf16 %v6492_v11, %v6485_v12  ;;  %v17294_v12 = vand.u32 4294901760, %v15540_v62 }
 0x160   : > { %13070 = vmatprep.subr.bf16.mxu1 %v17251_v1 }
 0x161   : > { %13020 = vmatpush1.bf16.msra.mxu0 %v15686_v44  ;;  %v13045_v11 = vpack.c.bf16 %v5958_v37, %v17294_v12 }
 0x162   : > { %13022 = vmatprep.subr.bf16.mxu0 %v13021_v60 }
 0x163   : > { %13072 = vmatpush3.bf16.msra.mxu1 %v13071_v55  ;;  %v15730_v9 = vpop.permute.xlu0 %9050  ;;  %v6914_v60 = vpop.permute.xlu1 %6913 }
 0x164   : > { %5938 = vmatmul.mubr.f32.vlgmr.msra.gmra.mrb[10].mxu0 %v13943_v23  ;;  %13073 = vmatprep.subr.bf16.mxu1 %v17251_v1  ;;  %v15776_v37 = vsel %vm317_vm2, %v6914_v60, 0 }
 0x165   : > { %13024 = vmatpush1.bf16.msra.mxu0 %v13023_v63  ;;  %6048 = vmatprep.mubr.f32.mxu0 %v17243_v2  ;;  %v15765_v63 = vsel %vm3637_vm4, %v15280_v17, %v15704_v26 }
 0x166   : > { %13026 = vmatprep.subr.bf16.mxu0 %v13025_v3  ;;  %12223 = vmatmul.mubr.f32.vlgmr.msra.gmra.mrb[10].mxu1 %v13882_v4  ;;  %v6922_v3 = vsel %vm3637_vm4, %v15392_v39, %v6914_v60  ;;  %v15828_v39 = vsub.f32 %v15749_v52, %v6938_v21 }
 0x167   : > { %13075 = vmatpush3.bf16.msra.mxu1 %v13074_v15  ;;  %12233 = vmatprep.mubr.msk.f32.mxu1 %vm13825_vm1, %v17243_v2  ;;  %v15744_v55 = vpop.permute.xlu0 %9070  ;;  %v15752_v30 = vpop.permute.xlu1 %6907  ;;  %v17295_v15 = vand.u32 4294901760, %v15569_v35  ;;  %v17296_v35 = vand.u32 4294901760, %v15575_v18  ;;  %v15807_v18 = vsel %vm317_vm2, %v6922_v3, 0  ;;  %v17301_v3 = vand.u32 4294901760, %v15616_v33 }
 0x168   : > { %13076 = vmatprep.subr.bf16.mxu1 %v17251_v1  ;;  %v17236_v12 = vand.u32 4294901760, %v15807_v18 }
 0x169   : > { %13028 = vmatpush1.bf16.msra.mxu0 %v13027_v50  ;;  %v13089_v62 = vpack.c.bf16 %v17295_v15, %v6499_v48  ;;  %v15781_v50 = vsel %vm3637_vm4, %v15346_v53, %v15218_v13  ;;  %v13047_v48 = vpack.c.bf16 %v17297_v25, %v17296_v35  ;;  %v15800_v13 = vsub.f32 %v15704_v26, %v7485_v59 }
 0x16a   : > { %13030 = vmatprep.subr.bf16.mxu0 %v13029_v38  ;;  %v15786_v38 = vsub.f32 %v15693_v41, %v7482_v36  ;;  %v15804_v53 = vsel %vm3637_vm4, %v6898_v57, %v15280_v17  ;;  %v15820_v17 = vsel %vm3637_vm4, %v15411_v7, %v15752_v30 }
 0x16b   : > { %13078 = vmatpush3.bf16.msra.mxu1 %v13077_v51  ;;  %v17298_v51 = vand.u32 4294901760, %v15594_v45  ;;  %v15814_v22 = vpop.permute.xlu0 %9064  ;;  %v7491_v45 = vand.u32 4294901760, %v15776_v37  ;;  %v6904_v57 = vpop.permute.xlu1 %6903  ;;  %v6946_v25 = vand.u32 4294901760, %v15820_v17  ;;  %v17240_v33 = vand.u32 4294901760, %v15800_v13 }
 0x16c   : > { %6050 = vmatmul.mubr.f32.vlgmr.msra.gmra.mrb[10].mxu0 %v13882_v4  ;;  %13079 = vmatprep.subr.bf16.mxu1 %v17251_v1  ;;  %17299 = vst [vmem:[#allocation2_spill] sm:$0xff] %v15814_v22  ;;  %v17237_v60 = vand.u32 4294901760, %v15786_v38 }
 0x16d   : > { %13032 = vmatpush1.bf16.msra.mxu0 %v13031_v42  ;;  %6136 = vmatprep.mubr.f32.mxu0 %v17243_v2  ;;  %v13049_v42 = vpack.c.bf16 %v5982_v58, %v17298_v51  ;;  %v7488_v58 = vand.u32 4294901760, %v15752_v30  ;;  %v17239_v51 = vand.u32 4294901760, %v15828_v39 }
 0x16e   : > { %12234 = vmatmul.mubr.f32.vlgmr.msra.gmra.mrb[10].mxu1 %v13886_v5  ;;  %13034 = vmatprep.subr.bf16.mxu0 %v13033_v24  ;;  %v6942_v24 = vand.u32 4294901760, %v15765_v63 }
 0x16f   : > { %13081 = vmatpush3.bf16.msra.mxu1 %v15601_v16  ;;  %12244 = vmatprep.mubr.msk.f32.mxu1 %vm13825_vm1, %v17243_v2  ;;  %v7025_v41 = vsub.f32 %v15828_v39, %v17239_v51  ;;  %v15937_v51 = vld [vmem:[%s17212_s5 + $0x8] sm:$0xf]  ;;  %v15959_v52 = vpack.c.bf16 %v7491_v45, %v7488_v58 }
 0x170   : > { %13082 = vmatprep.subr.bf16.mxu1 %v17251_v1  ;;  %v15847_v35 = vsub.f32 %v15765_v63, %v6942_v24 }
 0x171   : > { %13036 = vmatpush1.bf16.msra.mxu0 %v13035_v43  ;;  %v17238_v43 = vand.u32 4294901760, %v15781_v50 }
 0x172   : > { %13038 = vmatprep.subr.bf16.mxu0 %v15633_v27 }
 0x173   : > { %13084 = vmatpush3.bf16.msra.mxu1 %v15647_v0 }
 0x174   : > { %6139 = vmatmul.mubr.f32.vlgmr.msra.gmra.mrb[10].mxu0 %v13886_v5  ;;  %13085 = vmatprep.subr.bf16.mxu1 %v17251_v1 }
 0x175   : > { %13040 = vmatpush1.bf16.msra.mxu0 %v15656_v34  ;;  %6217 = vmatprep.mubr.f32.mxu0 %v17243_v2 }
 0x176   : > { %13042 = vmatprep.subr.bf16.mxu0 %v15666_v29  ;;  %12245 = vmatmul.mubr.f32.vlgmr.msra.gmra.mrb[10].mxu1 %v13900_v8 }
 0x177   : > { %13087 = vmatpush3.bf16.msra.mxu1 %v13086_v47  ;;  %12255 = vmatprep.mubr.msk.f32.mxu1 %vm13825_vm1, %v17243_v2  ;;  %v6944_v47 = vand.u32 4294901760, %v15804_v53 }
 0x178   : > { %13088 = vmatprep.subr.bf16.mxu1 %v17251_v1 }
 0x179   : > { %13044 = vmatpush1.bf16.msra.mxu0 %v15686_v44 }
 0x17a   : > { %13046 = vmatprep.subr.bf16.mxu0 %v13045_v11  ;;  %v17300_v11 = vand.u32 4294901760, %v15620_v61  ;;  %v15859_v61 = vsub.f32 %v15776_v37, %v7491_v45  ;;  %v17306_v45 = vmov 0.0  }
 0x17b   : > { %13090 = vmatpush3.bf16.msra.mxu1 %v13089_v62  ;;  %v15842_v62 = vsel %vm317_vm2, %v6921_v14, 0 }
 0x17c   : > { %6221 = vmatmul.mubr.f32.vlgmr.msra.gmra.mrb[10].mxu0 %v13900_v8  ;;  %13091 = vmatprep.subr.bf16.mxu1 %v17251_v1  ;;  %v13051_v15 = vpack.c.bf16 %v17301_v3, %v17300_v11  ;;  %v17241_v14 = vand.u32 4294901760, %v15842_v62  ;;  %v15879_v11 = vsub.f32 %v15804_v53, %v6944_v47  ;;  %v15884_v3 = vsub.f32 %v15807_v18, %v17236_v12 }
 0x17d   : > { %13048 = vmatpush1.bf16.msra.mxu0 %v13047_v48  ;;  %6315 = vmatprep.mubr.f32.mxu0 %v17243_v2  ;;  %v15864_v48 = vsub.f32 %v15752_v30, %v7488_v58  ;;  %v17248_v53 = vand.u32 4294901760, %v15847_v35  ;;  %v15901_v12 = vpack.c.bf16 %v7485_v59, %v7482_v36  ;;  %v7026_v30 = vand.u32 4294901760, %v7025_v41 }
 0x17e   : > { %13050 = vmatprep.subr.bf16.mxu0 %v13049_v42  ;;  %12256 = vmatmul.mubr.f32.vlgmr.msra.gmra.mrb[10].mxu1 %v13882_v4  ;;  %v15873_v42 = vshrl.u32 %v1360_v6, 7  ;;  %v15892_v6 = vsub.f32 %v15820_v17, %v6946_v25  ;;  %v15922_v36 = vsub.f32 %v15842_v62, %v17241_v14  ;;  %v15943_v14 = vpack.c.bf16 %v6942_v24, %v6938_v21 }
 0x17f   : > { %13093 = vmatpush3.bf16.msra.mxu1 %v15601_v16  ;;  %12266 = vmatprep.mubr.msk.f32.mxu1 %vm13825_vm1, %v17243_v2  ;;  %v15852_v16 = vsel %vm3637_vm4, %v6904_v57, %v15411_v7  ;;  %v15869_v7 = vsub.f32 %v15781_v50, %v17238_v43  ;;  %v15876_v57 = vpop.permute.xlu0 %9068  ;;  %v17247_v17 = vand.u32 4294901760, %v15864_v48  ;;  %v17302_v24 = vand.u32 4294901760, %v15781_v50 }
 0x180   : > { %13094 = vmatprep.subr.bf16.mxu1 %v17251_v1  ;;  %v15917_v26 = vsub.s32 3, %v15873_v42  ;;  %v17303_v58 = vand.u32 4294901760, %v15879_v11  ;;  %v17304_v50 = vand.u32 4294901760, %v15884_v3  ;;  %v17305_v41 = vand.u32 4294901760, %v15807_v18 }
 0x181   : > { %13052 = vmatpush1.bf16.msra.mxu0 %v13051_v15  ;;  %v17242_v15 = vand.u32 4294901760, %v15852_v16  ;;  %v17246_v43 = vand.u32 4294901760, %v15869_v7  ;;  %v7578_v63 = vsub.f32 %v15864_v48, %v17247_v17 }
 0x182   : > { %13054 = vmatprep.subr.bf16.mxu0 %v15633_v27  ;;  %v7564_v27 = vsub.f32 %v15786_v38, %v17237_v60  ;;  %v17245_v60 = vand.u32 4294901760, %v15859_v61  ;;  %v1371_v37 = vrot.slane %v15937_v51, %v15917_v26 }
 0x183   : > { %13096 = vmatpush3.bf16.msra.mxu1 %v15647_v0  ;;  %v7571_v0 = vsub.f32 %v15800_v13, %v17240_v33  ;;  %v15950_v59 = vpop.permute.xlu0 %310  ;;  %v7031_v21 = vsub.f32 %v15869_v7, %v17246_v43 }
 0x184   : > { %6317 = vmatmul.mubr.f32.vlgmr.msra.gmra.mrb[10].mxu0 %v13882_v4  ;;  %13145 = vmatprep.subr.bf16.mxu1 %v17251_v1  ;;  %v7565_v33 = vand.u32 4294901760, %v7564_v27  ;;  %v7585_v27 = vsub.f32 %v15859_v61, %v17245_v60  ;;  %v13543_v17 = vadd.f32 %v15344_v32, %v15950_v59  ;;  %v7579_v60 = vand.u32 4294901760, %v7578_v63 }
 0x185   : > { %13056 = vmatpush1.bf16.msra.mxu0 %v15656_v34  ;;  %6395 = vmatprep.mubr.f32.mxu0 %v17243_v2  ;;  %v7572_v34 = vand.u32 4294901760, %v7571_v0  ;;  %v15970_v0 = vpack.c.bf16 %v6944_v47, %v17302_v24  ;;  %v7061_v47 = vsub.f32 %v15884_v3, %v17304_v50  ;;  %v15987_v24 = vpack.c.bf16 %v17305_v41, %v6946_v25 }
 0x186   : > { %13058 = vmatprep.subr.bf16.mxu0 %v15666_v29  ;;  %12267 = vmatmul.mubr.f32.vlgmr.msra.gmra.mrb[10].mxu1 %v13882_v4  ;;  %v15929_v29 = vsub.f32 %v15852_v16, %v17242_v15  ;;  %v7037_v15 = vsub.f32 %v15847_v35, %v17248_v53  ;;  %v7586_v53 = vand.u32 4294901760, %v7585_v27  ;;  %v7032_v18 = vand.u32 4294901760, %v7031_v21 }
 0x187   : > { %13147 = vmatpush3.bf16.msra.mxu1 %v15901_v12  ;;  %12277 = vmatprep.mubr.msk.f32.mxu1 %vm13825_vm1, %v17243_v2  ;;  %v17249_v2 = vand.u32 4294901760, %v15892_v6  ;;  %v13152_v50 = vpack.c.bf16 %v7572_v34, %v7565_v33  ;;  %v1386_v25 = vrot.slane %v1371_v37, %v15917_v26  ;;  %v17307_v41 = vand.u32 4294901760, %v15922_v36  ;;  %v16015_v37 = vpop.permute.xlu1 %7976 }
 0x188   : > { %13148 = vmatprep.subr.bf16.mxu1 %v17251_v1  ;;  %v7038_v43 = vand.u32 4294901760, %v7037_v15  ;;  %v1366_v15 = vsub.s32 7, %v15873_v42  ;;  %v17308_v63 = vand.u32 4294901760, %v15852_v16  ;;  %v17309_v33 = vand.u32 4294901760, %v15842_v62 }
 0x189   : > { %13060 = vmatpush1.bf16.msra.mxu0 %v15686_v44  ;;  %v7043_v44 = vsub.f32 %v15879_v11, %v17303_v58  ;;  %v7049_v58 = vsub.f32 %v15892_v6, %v17249_v2  ;;  %v7067_v32 = vsub.f32 %v15922_v36, %v17307_v41  ;;  %v17310_v21 = vand.u32 4294901760, %v15929_v29 }
 0x18a   : > { %13098 = vmatprep.subr.bf16.mxu0 %v15943_v14  ;;  %v16008_v34 = vpack.c.bf16 %v17309_v33, %v17308_v63  ;;  %v13105_v16 = vpack.c.bf16 %v7038_v43, %v7026_v30  ;;  %v7062_v41 = vand.u32 4294901760, %v7061_v47  ;;  %v1357_v63 = vmax.f32 %v13543_v17, 0.0 }
 0x18b   : > { %13150 = vmatpush3.bf16.msra.mxu1 %v15959_v52  ;;  %v7044_v27 = vand.u32 4294901760, %v7043_v44  ;;  %v7055_v2 = vsub.f32 %v15929_v29, %v17310_v21  ;;  %v16020_v44 = vld [vmem:[%s17212_s5] sm:$0xff]  ;;  %v7050_v62 = vand.u32 4294901760, %v7049_v58  ;;  %v13155_v33 = vpack.c.bf16 %v7586_v53, %v7579_v60 }
 0x18c   : > { %6397 = vmatmul.mubr.f32.vlgmr.msra.gmra.mrb[10].mxu0 %v13882_v4  ;;  %13151 = vmatprep.subr.bf16.mxu1 %v17251_v1  ;;  %v13541_v21 = vadd.f32 %v15297_v31, %v15950_v59  ;;  %v1363_v22 = vrot.slane %v16020_v44, %v15917_v26  ;;  %v1367_v43 = vrot.slane %v16020_v44, %v1366_v15  ;;  %v7068_v30 = vand.u32 4294901760, %v7067_v32  ;;  %v16041_v15 = vpop.permute.xlu1 %7982 }
 0x18d   : > { %13100 = vmatpush1.bf16.msra.mxu0 %v15970_v0  ;;  %7010 = vmatprep.mubr.f32.mxu0 %v17306_v45  ;;  %v13107_v47 = vpack.c.bf16 %v7044_v27, %v7032_v18  ;;  %v13542_v17 = vadd.f32 %v15310_v40, %v15950_v59  ;;  %v13109_v60 = vpack.c.bf16 %v7062_v41, %v7050_v62  ;;  %v17311_v53 = vmov 0.0|0.0  }
 0x18e   : > { %13102 = vmatprep.subr.bf16.mxu0 %v15987_v24  ;;  %12278 = vmatmul.mubr.f32.vlgmr.msra.gmra.mrb[12].mxu1 %v13943_v23  ;;  %v16036_v58 = vmul.f32 %v1386_v25, %v1357_v63  ;;  %v13158_v31 = vpack.c.bf16 %v15800_v13, %v15786_v38  ;;  %v1355_v40 = vmax.f32 %v13541_v21, 0.0  ;;  %v1378_v18 = vrot.slane %v1363_v22, %v15917_v26 }
 0x18f   : > { %13153 = vmatpush3.bf16.msra.mxu1 %v13152_v50  ;;  %12288 = vmatprep.mubr.msk.f32.mxu1 %vm13825_vm1, %v17306_v45  ;;  %v16025_v50 = vsub.s32 2, %v15873_v42  ;;  %v1356_v32 = vmax.f32 %v13542_v17, 0.0  ;;  %v1382_v27 = vrot.slane %v1367_v43, %v15917_v26  ;;  %v13113_v62 = vpack.c.bf16 %v15847_v35, %v15828_v39 }
 0x190   : > { %13154 = vmatprep.subr.bf16.mxu1 %v17251_v1  ;;  %v7056_v1 = vand.u32 4294901760, %v7055_v2  ;;  %v13161_v22 = vpack.c.bf16 %v15859_v61, %v15864_v48  ;;  %v16061_v21 = vmul.f32 %v1378_v18, %v1355_v40  ;;  %v13115_v43 = vpack.c.bf16 %v15879_v11, %v15869_v7 }
 0x191   : > { %13104 = vmatpush1.bf16.msra.mxu0 %v16008_v34  ;;  %v2492_v2 = vrot.slane %v15937_v51, %v16025_v50  ;;  %v16069_v17 = vmul.f32 %v1382_v27, %v1356_v32  ;;  %v17312_v18 = vand.u32 4294901760, %v15786_v38  ;;  %v17314_v27 = vand.u32 4294901760, %v15828_v39 }
 0x192   : > { %13106 = vmatprep.subr.bf16.mxu0 %v13105_v16  ;;  %v13111_v25 = vpack.c.bf16 %v7068_v30, %v7056_v1  ;;  %v17253_v16 = vand.u32 4294901760, %v16036_v58  ;;  %v2487_v1 = vsub.s32 6, %v15873_v42  ;;  %v2484_v30 = vrot.slane %v16020_v44, %v16025_v50 }
 0x193   : > { %13156 = vmatpush3.bf16.msra.mxu1 %v13155_v33  ;;  %v16059_v33 = vrot.slane %v2492_v2, %v16025_v50  ;;  %v17317_v38 = vand.u32 4294901760, %v15859_v61  ;;  %v17318_v39 = vand.u32 4294901760, %v15869_v7  ;;  %v17255_v61 = vand.u32 4294901760, %v16069_v17 }
 0x194   : > { %7016 = vmatmul.mubr.f32.vlgmr.msra.gmra.mrb[12].mxu0 %v13943_v23  ;;  %13157 = vmatprep.subr.bf16.mxu1 %v17311_v53  ;;  %v10963_v2 = vsub.f32 %v16036_v58, %v17253_v16  ;;  %v2488_v40 = vrot.slane %v16020_v44, %v2487_v1  ;;  %v17254_v1 = vand.u32 4294901760, %v16061_v21 }
 0x195   : > { %13108 = vmatpush1.bf16.msra.mxu0 %v13107_v47  ;;  %7126 = vmatprep.mubr.f32.mxu0 %v17306_v45  ;;  %v16067_v47 = vpop.permute.xlu1 %7978 }
 0x196   : > { %13110 = vmatprep.subr.bf16.mxu0 %v13109_v60  ;;  %12289 = vmatmul.mubr.f32.vlgmr.msra.gmra.mrb[12].mxu1 %v13882_v4 }
 0x197   : > { %13159 = vmatpush3.bf16.msra.mxu1 %v13158_v31  ;;  %12299 = vmatprep.mubr.msk.f32.mxu1 %vm13825_vm1, %v17306_v45  ;;  %v13117_v31 = vpack.c.bf16 %v15884_v3, %v15892_v6 }
 0x198   : > { %13160 = vmatprep.subr.bf16.mxu1 %v17311_v53 }
 0x199   : > { %v2474_v41 = vpop.f32.mrb[2].mxu1  ;;  %13112 = vmatpush1.bf16.msra.mxu0 %v13111_v25  ;;  %v17313_v25 = vand.u32 4294901760, %v15800_v13 }
 0x19a   : > { %v13546_v63 = vadd.f32 %v2474_v41, %v15950_v59  ;;  %v12004_v26 = vpop.f32.mrb[3].mxu1  ;;  %13114 = vmatprep.subr.bf16.mxu0 %v13113_v62  ;;  %v17315_v62 = vand.u32 4294901760, %v15847_v35  ;;  %v17319_v35 = vand.u32 4294901760, %v15879_v11 }
 0x19b   : > { %13162 = vmatpush3.bf16.msra.mxu1 %v13161_v22  ;;  %v13170_v32 = vpack.c.bf16 %v17313_v25, %v17312_v18  ;;  %v17257_v25 = vand.u32 4294901760, %v16015_v37 }
 0x19c   : > { %v2480_v60 = vmax.f32 %v13546_v63, 0.0  ;;  %7128 = vmatmul.mubr.f32.vlgmr.msra.gmra.mrb[12].mxu0 %v13882_v4  ;;  %13163 = vmatprep.subr.bf16.mxu1 %v17311_v53  ;;  %v16088_v41 = vpack.c.bf16 %v17315_v62, %v17314_v27  ;;  %v17316_v63 = vand.u32 4294901760, %v15864_v48  ;;  %v16105_v26 = vpack.c.bf16 %v17319_v35, %v17318_v39 }
 0x19d   : > { %13116 = vmatpush1.bf16.msra.mxu0 %v13115_v43  ;;  %7214 = vmatprep.mubr.f32.mxu0 %v17306_v45  ;;  %v16110_v43 = vsel %vm4758_vm5, %v15524_v28, %v15442_v46  ;;  %v16115_v48 = vrot.slane %v2484_v30, %v16025_v50  ;;  %v16125_v28 = vsel %vm4758_vm5, %v15442_v46, %v16015_v37  ;;  %v10964_v30 = vand.u32 4294901760, %v10963_v2 }
 0x19e   : > { %v16091_v22 = vmul.f32 %v16059_v33, %v2480_v60  ;;  %12300 = vmatmul.mubr.f32.vlgmr.msra.gmra.mrb[12].mxu1 %v13886_v5  ;;  %13118 = vmatprep.subr.bf16.mxu0 %v13117_v31  ;;  %v16099_v13 = vpack.c.bf16 %v17317_v38, %v17316_v63  ;;  %v13119_v60 = vpack.c.bf16 %v15922_v36, %v15929_v29  ;;  %v7995_v63 = vpop.permute.xlu1 %7994  ;;  %v17320_v38 = vand.u32 4294901760, %v15892_v6 }
 0x19f   : > { %v1988_v31 = vpop.f32.mrb[2].mxu0  ;;  %13165 = vmatpush3.bf16.msra.mxu1 %v15901_v12  ;;  %12310 = vmatprep.mubr.msk.f32.mxu1 %vm13825_vm1, %v17306_v45  ;;  %v16132_v62 = vrot.slane %v2488_v40, %v16025_v50  ;;  %v17321_v46 = vand.u32 4294901760, %v15884_v3  ;;  %v16147_v50 = vsub.f32 %v16061_v21, %v17254_v1  ;;  %v17258_v6 = vand.u32 4294901760, %v16125_v28 }
 0x1a0   : > { %v17256_v7 = vand.u32 4294901760, %v16091_v22  ;;  %v13544_v11 = vadd.f32 %v1988_v31, %v15950_v59  ;;  %v1990_v18 = vpop.f32.mrb[3].mxu0  ;;  %13166 = vmatprep.subr.bf16.mxu1 %v17311_v53  ;;  %v17323_v3 = vand.u32 4294901760, %v15929_v29  ;;  %v16178_v29 = vsel %vm4758_vm5, %v15457_v54, %v16041_v15 }
 0x1a1   : > { %v13545_v27 = vadd.f32 %v1990_v18, %v15950_v59  ;;  %13120 = vmatpush1.bf16.msra.mxu0 %v13119_v60  ;;  %v16138_v39 = vpack.c.bf16 %v17321_v46, %v17320_v38  ;;  %17322 = vst [vmem:[#allocation3_spill] sm:$0xff] %v16147_v50  ;;  %v17324_v60 = vand.u32 4294901760, %v15922_v36  ;;  %v16173_v36 = vsub.f32 %v16015_v37, %v17257_v25 }
 0x1a2   : > { %v10970_v31 = vsub.f32 %v16091_v22, %v17256_v7  ;;  %v2478_v16 = vmax.f32 %v13544_v11, 0.0  ;;  %13122 = vmatprep.subr.bf16.mxu0 %v15943_v14  ;;  %v16161_v11 = vsub.f32 %v16069_v17, %v17255_v61  ;;  %v10258_v61 = vand.u32 4294901760, %v16147_v50 }
 0x1a3   : > { %v2479_v40 = vmax.f32 %v13545_v27, 0.0  ;;  %13168 = vmatpush3.bf16.msra.mxu1 %v15959_v52  ;;  %v16156_v18 = vpack.c.bf16 %v17324_v60, %v17323_v3  ;;  %v10965_v27 = vsub.f32 %v10963_v2, %v10964_v30  ;;  %v16198_v25 = vsub.f32 %v16125_v28, %v17258_v6 }
 0x1a4   : > { %17325 = vst [vmem:[#allocation4_spill] sm:$0xff] %v16161_v11  ;;  %v16164_v38 = vmul.f32 %v16115_v48, %v2478_v16  ;;  %7217 = vmatmul.mubr.f32.vlgmr.msra.gmra.mrb[12].mxu0 %v13886_v5  ;;  %13169 = vmatprep.subr.bf16.mxu1 %v17311_v53  ;;  %v10971_v46 = vand.u32 4294901760, %v10970_v31  ;;  %v16168_v1 = vpack.c.bf16 %v10970_v31, %v10963_v2  ;;  %v16201_v16 = vpop.permute.xlu1 %7988 }
 0x1a5   : > { %v16182_v3 = vmul.f32 %v16132_v62, %v2479_v40  ;;  %13124 = vmatpush1.bf16.msra.mxu0 %v15970_v0  ;;  %7295 = vmatprep.mubr.f32.mxu0 %v17306_v45  ;;  %v8002_v40 = vsel %vm4758_vm5, %v15682_v19, %v15582_v49 }
 0x1a6   : > { %17326 = vst [vmem:[#allocation5_spill] sm:$0xff] %v16164_v38  ;;  %17327 = vst [vmem:[#allocation6_spill] sm:$0xff] %v16168_v1  ;;  %v17261_v2 = vand.u32 4294901760, %v16164_v38  ;;  %13126 = vmatprep.subr.bf16.mxu0 %v15987_v24  ;;  %12311 = vmatmul.mubr.f32.vlgmr.msra.gmra.mrb[12].mxu1 %v13900_v8  ;;  %v10972_v60 = vsub.f32 %v10970_v31, %v10971_v46  ;;  %v16190_v7 = vpack.c.bf16 %v10971_v46, %v10964_v30 }
 0x1a7   : > { %13171 = vmatpush3.bf16.msra.mxu1 %v13170_v32  ;;  %12321 = vmatprep.mubr.msk.f32.mxu1 %vm13825_vm1, %v17306_v45  ;;  %v10252_v30 = vand.u32 4294901760, %v16161_v11  ;;  %v10966_v46 = vand.u32 4294901760, %v10965_v27  ;;  %v17330_v32 = vand.u32 4294901760, %v16041_v15  ;;  %v8003_v31 = vsel %vm4758_vm5, %v15582_v49, %v7995_v63 }
 0x1a8   : > { %17328 = vst [vmem:[#allocation7_spill] sm:$0xff] %v16190_v7  ;;  %v16210_v19 = vsub.f32 %v16164_v38, %v17261_v2  ;;  %13172 = vmatprep.subr.bf16.mxu1 %v17311_v53  ;;  %v10973_v6 = vand.u32 4294901760, %v10972_v60  ;;  %v17331_v7 = vand.u32 4294901760, %v16182_v3  ;;  %v16226_v2 = vsel %vm317_vm2, %v7995_v63, 0 }
 0x1a9   : > { %v16216_v35 = vsub.f32 %v16041_v15, %v17330_v32  ;;  %13128 = vmatpush1.bf16.msra.mxu0 %v16008_v34  ;;  %v10259_v32 = vsub.f32 %v16147_v50, %v10258_v61  ;;  %v16239_v49 = vsel %vm4758_vm5, %v16067_v47, %v15457_v54  ;;  %v10253_v63 = vsub.f32 %v16161_v11, %v10252_v30 }
 0x1aa   : > { %17329 = vst [vmem:[#allocation8_spill] sm:$0xff] %v16210_v19  ;;  %v16221_v1 = vsub.f32 %v16182_v3, %v17331_v7  ;;  %v10270_v27 = vand.u32 4294901760, %v16210_v19  ;;  %13130 = vmatprep.subr.bf16.mxu0 %v16088_v41  ;;  %v16231_v60 = vpack.c.bf16 %v10973_v6, %v10966_v46  ;;  %v16248_v46 = vsel %vm317_vm2, %v8003_v31, 0  ;;  %v7985_v41 = vpop.permute.xlu1 %7984 }
 0x1ab   : > { %13174 = vmatpush3.bf16.msra.mxu1 %v16099_v13  ;;  %v16258_v47 = vsel %vm4758_vm5, %v15640_v20, %v16201_v16  ;;  %v16267_v50 = vsel %vm317_vm2, %v8002_v40, 0 }
 0x1ac   : > { %17332 = vst [vmem:[#allocation9_spill] sm:$0xff] %v16221_v1  ;;  %v10264_v38 = vand.u32 4294901760, %v16221_v1  ;;  %v10271_v6 = vsub.f32 %v16210_v19, %v10270_v27  ;;  %7299 = vmatmul.mubr.f32.vlgmr.msra.gmra.mrb[12].mxu0 %v13900_v8  ;;  %13175 = vmatprep.subr.bf16.mxu1 %v17311_v53  ;;  %v16253_v54 = vpack.c.bf16 %v10270_v27, %v10258_v61  ;;  %v10260_v27 = vand.u32 4294901760, %v10259_v32 }
 0x1ad   : > { %13132 = vmatpush1.bf16.msra.mxu0 %v16105_v26  ;;  %7393 = vmatprep.mubr.f32.mxu0 %v17306_v45  ;;  %v17335_v26 = vand.u32 4294901760, %v16178_v29  ;;  %v8025_v19 = vand.u32 4294901760, %v16239_v49  ;;  %v16285_v32 = vsel %vm4758_vm5, %v7985_v41, %v15640_v20  ;;  %v17338_v41 = vand.u32 4294901760, %v16110_v43 }
 0x1ae   : > { %17333 = vst [vmem:[#allocation10_spill] sm:$0xff] %v16253_v54  ;;  %v10265_v31 = vsub.f32 %v16221_v1, %v10264_v38  ;;  %v16264_v7 = vpack.c.bf16 %v10264_v38, %v10252_v30  ;;  %13134 = vmatprep.subr.bf16.mxu0 %v16138_v39  ;;  %12322 = vmatmul.mubr.f32.vlgmr.msra.gmra.mrb[12].mxu1 %v13882_v4  ;;  %v10272_v13 = vand.u32 4294901760, %v10271_v6  ;;  %v10254_v38 = vand.u32 4294901760, %v10253_v63 }
 0x1af   : > { %v16275_v54 = vsub.f32 %v16178_v29, %v17335_v26  ;;  %13177 = vmatpush3.bf16.msra.mxu1 %v15901_v12  ;;  %12332 = vmatprep.mubr.msk.f32.mxu1 %vm13825_vm1, %v17306_v45  ;;  %v8031_v39 = vand.u32 4294901760, %v16248_v46  ;;  %v8027_v30 = vand.u32 4294901760, %v16258_v47  ;;  %v17336_v12 = vand.u32 4294901760, %v16226_v2 }
 0x1b0   : > { %17334 = vst [vmem:[#allocation11_spill] sm:$0xff] %v16264_v7  ;;  %v10266_v40 = vand.u32 4294901760, %v10265_v31  ;;  %13178 = vmatprep.subr.bf16.mxu1 %v17311_v53  ;;  %v16288_v6 = vpack.c.bf16 %v10272_v13, %v10260_v27  ;;  %v17337_v63 = vand.u32 4294901760, %v16201_v16  ;;  %v16307_v13 = vsub.f32 %v16110_v43, %v17338_v41 }
 0x1b1   : > { %v16294_v61 = vsub.f32 %v16226_v2, %v17336_v12  ;;  %13136 = vmatpush1.bf16.msra.mxu0 %v16156_v18  ;;  %v8033_v27 = vand.u32 4294901760, %v16267_v50  ;;  %v17339_v12 = vand.u32 4294901760, %v16173_v36  ;;  %v8029_v18 = vand.u32 4294901760, %v16285_v32 }
 0x1b2   : > { %v16299_v31 = vsub.f32 %v16201_v16, %v17337_v63  ;;  %v16302_v20 = vpack.c.bf16 %v10266_v40, %v10254_v38  ;;  %13138 = vmatprep.subr.bf16.mxu0 %v15943_v14  ;;  %v16315_v63 = vsub.f32 %v16239_v49, %v8025_v19  ;;  %v16321_v40 = vsub.f32 %v16248_v46, %v8031_v39 }
 0x1b3   : > { %v8645_v26 = vsub.f32 %v16173_v36, %v17339_v12  ;;  %13180 = vmatpush3.bf16.msra.mxu1 %v15959_v52  ;;  %v16324_v41 = vsub.f32 %v16258_v47, %v8027_v30  ;;  %v17340_v49 = vand.u32 4294901760, %v16015_v37  ;;  %v17341_v12 = vand.u32 4294901760, %v16041_v15 }
 0x1b4   : > { %7395 = vmatmul.mubr.f32.vlgmr.msra.gmra.mrb[12].mxu0 %v13882_v4  ;;  %13229 = vmatprep.subr.bf16.mxu1 %v17311_v53  ;;  %v17342_v52 = vand.u32 4294901760, %v16216_v35  ;;  %v16344_v37 = vsub.f32 %v16267_v50, %v8033_v27  ;;  %v17347_v11 = vand.u32 4294901760, %v16294_v61  ;;  %v16414_v1 = vpack.c.bf16 %v8033_v27, %v8029_v18 }
 0x1b5   : > { %v16333_v7 = vpack.c.bf16 %v17341_v12, %v17340_v49  ;;  %13140 = vmatpush1.bf16.msra.mxu0 %v15970_v0  ;;  %7473 = vmatprep.mubr.f32.mxu0 %v17306_v45  ;;  %v8646_v15 = vand.u32 4294901760, %v8645_v26  ;;  %v16350_v12 = vsub.f32 %v16285_v32, %v8029_v18  ;;  %v17343_v0 = vand.u32 4294901760, %v16198_v25 }
 0x1b6   : > { %v8652_v46 = vsub.f32 %v16216_v35, %v17342_v52  ;;  %13142 = vmatprep.subr.bf16.mxu0 %v15987_v24  ;;  %12333 = vmatmul.mubr.f32.vlgmr.msra.gmra.mrb[12].mxu1 %v13882_v4  ;;  %v17344_v24 = vand.u32 4294901760, %v16125_v28  ;;  %v17345_v26 = vand.u32 4294901760, %v16178_v29  ;;  %v17346_v32 = vand.u32 4294901760, %v16275_v54 }
 0x1b7   : > { %13231 = vmatpush3.bf16.msra.mxu1 %v16333_v7  ;;  %12343 = vmatprep.mubr.msk.f32.mxu1 %vm13825_vm1, %v17306_v45  ;;  %v8106_v50 = vsub.f32 %v16198_v25, %v17343_v0  ;;  %v8666_v0 = vsub.f32 %v16294_v61, %v17347_v11  ;;  %v17348_v52 = vand.u32 4294901760, %v16201_v16  ;;  %v17349_v28 = vand.u32 4294901760, %v16226_v2 }
 0x1b8   : > { %v16363_v14 = vpack.c.bf16 %v17345_v26, %v17344_v24  ;;  %13232 = vmatprep.subr.bf16.mxu1 %v17311_v53  ;;  %v8118_v49 = vsub.f32 %v16275_v54, %v17346_v32  ;;  %v8653_v38 = vand.u32 4294901760, %v8652_v46  ;;  %v17350_v24 = vand.u32 4294901760, %v16299_v31 }
 0x1b9   : > { %v16377_v29 = vpack.c.bf16 %v17349_v28, %v17348_v52  ;;  %13144 = vmatpush1.bf16.msra.mxu0 %v16008_v34  ;;  %v17351_v32 = vand.u32 4294901760, %v16307_v13  ;;  %v17352_v11 = vand.u32 4294901760, %v16110_v43  ;;  %v17353_v2 = vand.u32 4294901760, %v16315_v63 }
 0x1ba   : > { %v8659_v26 = vsub.f32 %v16299_v31, %v17350_v24  ;;  %13182 = vmatprep.subr.bf16.mxu0 %v16363_v14  ;;  %v8107_v34 = vand.u32 4294901760, %v8106_v50  ;;  %v16398_v24 = vpack.c.bf16 %v8031_v39, %v8027_v30  ;;  %v17354_v43 = vand.u32 4294901760, %v16324_v41 }
 0x1bb   : > { %v8112_v46 = vsub.f32 %v16307_v13, %v17351_v32  ;;  %v16390_v16 = vpack.c.bf16 %v8025_v19, %v17352_v11  ;;  %v8124_v52 = vsub.f32 %v16315_v63, %v17353_v2  ;;  %13234 = vmatpush3.bf16.msra.mxu1 %v16377_v29  ;;  %v8119_v32 = vand.u32 4294901760, %v8118_v49 }
 0x1bc   : > { %7475 = vmatmul.mubr.f32.vlgmr.msra.gmra.mrb[12].mxu0 %v13882_v4  ;;  %13235 = vmatprep.subr.bf16.mxu1 %v17311_v53  ;;  %v8130_v19 = vsub.f32 %v16324_v41, %v17354_v43  ;;  %v17355_v11 = vand.u32 4294901760, %v16321_v40  ;;  %v8667_v47 = vand.u32 4294901760, %v8666_v0  ;;  %v8660_v28 = vand.u32 4294901760, %v8659_v26 }
 0x1bd   : > { %13184 = vmatpush1.bf16.msra.mxu0 %v16390_v16  ;;  %v13236_v50 = vpack.c.bf16 %v8653_v38, %v8646_v15  ;;  %8091 = vmatprep.mubr.f32.mxu0 %v17306_v45  ;;  %v8113_v39 = vand.u32 4294901760, %v8112_v46  ;;  %v17356_v30 = vand.u32 4294901760, %v16344_v37  ;;  %v8125_v43 = vand.u32 4294901760, %v8124_v52  ;;  %v16421_v38 = vpop.permute.xlu1 %9054 }
 0x1be   : > { %v8142_v2 = vsub.f32 %v16321_v40, %v17355_v11  ;;  %13186 = vmatprep.subr.bf16.mxu0 %v16398_v24  ;;  %12344 = vmatmul.mubr.f32.vlgmr.msra.gmra.mrb[14].mxu1 %v13943_v23  ;;  %v17357_v0 = vand.u32 4294901760, %v16350_v12  ;;  %v13189_v15 = vpack.c.bf16 %v8119_v32, %v8107_v34  ;;  %v8131_v46 = vand.u32 4294901760, %v8130_v19 }
 0x1bf   : > { %v8148_v49 = vsub.f32 %v16344_v37, %v17356_v30  ;;  %13237 = vmatpush3.bf16.msra.mxu1 %v13236_v50  ;;  %12354 = vmatprep.mubr.msk.f32.mxu1 %vm13825_vm1, %v17306_v45  ;;  %v13239_v52 = vpack.c.bf16 %v8667_v47, %v8660_v28  ;;  %v13191_v30 = vpack.c.bf16 %v8125_v43, %v8113_v39 }
 0x1c0   : > { %v8136_v26 = vsub.f32 %v16350_v12, %v17357_v0  ;;  %13238 = vmatprep.subr.bf16.mxu1 %v17311_v53  ;;  %v8143_v11 = vand.u32 4294901760, %v8142_v2  ;;  %v13242_v34 = vpack.c.bf16 %v16216_v35, %v16173_v36  ;;  %v13197_v28 = vpack.c.bf16 %v16275_v54, %v16198_v25 }
 0x1c1   : > { %13188 = vmatpush1.bf16.msra.mxu0 %v16414_v1  ;;  %v8149_v27 = vand.u32 4294901760, %v8148_v49  ;;  %v16430_v32 = vpop.permute.xlu1 %9060  ;;  %v13245_v2 = vpack.c.bf16 %v16294_v61, %v16299_v31  ;;  %v13199_v43 = vpack.c.bf16 %v16315_v63, %v16307_v13 }
 0x1c2   : > { %13190 = vmatprep.subr.bf16.mxu0 %v13189_v15  ;;  %v8137_v18 = vand.u32 4294901760, %v8136_v26  ;;  %v13193_v50 = vpack.c.bf16 %v8143_v11, %v8131_v46  ;;  %v13201_v15 = vpack.c.bf16 %v16321_v40, %v16324_v41  ;;  %v13203_v11 = vpack.c.bf16 %v16344_v37, %v16350_v12 }
 0x1c3   : > { %13240 = vmatpush3.bf16.msra.mxu1 %v13239_v52 }
 0x1c4   : > { %8097 = vmatmul.mubr.f32.vlgmr.msra.gmra.mrb[14].mxu0 %v13943_v23  ;;  %13241 = vmatprep.subr.bf16.mxu1 %v17311_v53  ;;  %v13195_v47 = vpack.c.bf16 %v8149_v27, %v8137_v18 }
 0x1c5   : > { %13192 = vmatpush1.bf16.msra.mxu0 %v13191_v30  ;;  %8207 = vmatprep.mubr.f32.mxu0 %v17306_v45  ;;  %v9057_v0 = vpop.permute.xlu1 %9056 }
 0x1c6   : > { %13194 = vmatprep.subr.bf16.mxu0 %v13193_v50  ;;  %12355 = vmatmul.mubr.f32.vlgmr.msra.gmra.mrb[14].mxu1 %v13882_v4 }
 0x1c7   : > { %13243 = vmatpush3.bf16.msra.mxu1 %v13242_v34  ;;  %12365 = vmatprep.mubr.msk.f32.mxu1 %vm13825_vm1, %v17306_v45 }
 0x1c8   : > { %13244 = vmatprep.subr.bf16.mxu1 %v17311_v53 }
 0x1c9   : > { %v3591_v19 = vpop.f32.mrb[4].mxu1  ;;  %13196 = vmatpush1.bf16.msra.mxu0 %v13195_v47  ;;  %v9073_v50 = vpop.permute.xlu1 %9072 }
 0x1ca   : > { %v13549_v39 = vadd.f32 %v3591_v19, %v15950_v59  ;;  %v12070_v49 = vpop.f32.mrb[5].mxu1  ;;  %13198 = vmatprep.subr.bf16.mxu0 %v13197_v28 }
 0x1cb   : > { %13246 = vmatpush3.bf16.msra.mxu1 %v13245_v2  ;;  %v17359_v49 = vand.u32 4294901760, %v16216_v35  ;;  %v16494_v35 = vsel %vm4758_vm5, %v15699_v10, %v16421_v38 }
 0x1cc   : > { %v3597_v26 = vmax.f32 %v13549_v39, 0.0  ;;  %8209 = vmatmul.mubr.f32.vlgmr.msra.gmra.mrb[14].mxu0 %v13882_v4  ;;  %13247 = vmatprep.subr.bf16.mxu1 %v17311_v53  ;;  %v17358_v39 = vand.u32 4294901760, %v16173_v36  ;;  %v9644_v36 = vand.u32 4294901760, %v16430_v32 }
 0x1cd   : > { %13200 = vmatpush1.bf16.msra.mxu0 %v13199_v43  ;;  %8295 = vmatprep.mubr.f32.mxu0 %v17306_v45 }
 0x1ce   : > { %v16449_v46 = vmul.f32 %v3597_v26, %v16059_v33  ;;  %12366 = vmatmul.mubr.f32.vlgmr.msra.gmra.mrb[14].mxu1 %v13886_v5  ;;  %13202 = vmatprep.subr.bf16.mxu0 %v13201_v15  ;;  %v13254_v43 = vpack.c.bf16 %v17359_v49, %v17358_v39  ;;  %v16487_v15 = vpop.permute.xlu1 %9066  ;;  %v16525_v39 = vsel %vm4758_vm5, %v15730_v9, %v15699_v10  ;;  %v17364_v10 = vand.u32 4294901760, %v16307_v13 }
 0x1cf   : > { %v3105_v52 = vpop.f32.mrb[4].mxu0  ;;  %13249 = vmatpush3.bf16.msra.mxu1 %v16333_v7  ;;  %12376 = vmatprep.mubr.msk.f32.mxu1 %vm13825_vm1, %v17306_v45  ;;  %v9081_v49 = vsel %vm4758_vm5, %v15744_v55, %v9073_v50  ;;  %v17365_v9 = vand.u32 4294901760, %v16315_v63 }
 0x1d0   : > { %v17271_v27 = vand.u32 4294901760, %v16449_v46  ;;  %v13547_v18 = vadd.f32 %v3105_v52, %v15950_v59  ;;  %v3107_v30 = vpop.f32.mrb[5].mxu0  ;;  %13250 = vmatprep.subr.bf16.mxu1 %v17311_v53  ;;  %v17360_v52 = vand.u32 4294901760, %v16198_v25  ;;  %v17363_v25 = vand.u32 4294901760, %v16294_v61 }
 0x1d1   : > { %v13548_v33 = vadd.f32 %v3107_v30, %v15950_v59  ;;  %13204 = vmatpush1.bf16.msra.mxu0 %v13203_v11  ;;  %v16560_v13 = vsel %vm317_vm2, %v9081_v49, 0 }
 0x1d2   : > { %v16464_v34 = vsub.f32 %v16449_v46, %v17271_v27  ;;  %v3595_v47 = vmax.f32 %v13547_v18, 0.0  ;;  %13206 = vmatprep.subr.bf16.mxu0 %v16363_v14  ;;  %v17361_v18 = vand.u32 4294901760, %v16275_v54 }
 0x1d3   : > { %v3596_v28 = vmax.f32 %v13548_v33, 0.0  ;;  %13252 = vmatpush3.bf16.msra.mxu1 %v16377_v29  ;;  %v16510_v33 = vsel %vm4758_vm5, %v15714_v56, %v16430_v32 }
 0x1d4   : > { %v16469_v19 = vmul.f32 %v3595_v47, %v16115_v48  ;;  %8298 = vmatmul.mubr.f32.vlgmr.msra.gmra.mrb[14].mxu0 %v13886_v5  ;;  %13253 = vmatprep.subr.bf16.mxu1 %v17311_v53  ;;  %v9641_v48 = vand.u32 4294901760, %v16421_v38  ;;  %v13213_v30 = vpack.c.bf16 %v17361_v18, %v17360_v52  ;;  %v9080_v52 = vsel %vm4758_vm5, %v15876_v57, %v15744_v55 }
 0x1d5   : > { %v16474_v2 = vmul.f32 %v3596_v28, %v16132_v62  ;;  %13208 = vmatpush1.bf16.msra.mxu0 %v16390_v16  ;;  %8376 = vmatprep.mubr.f32.mxu0 %v17306_v45  ;;  %v17362_v28 = vand.u32 4294901760, %v16299_v31  ;;  %v9097_v31 = vand.u32 4294901760, %v16494_v35  ;;  %v13215_v18 = vpack.c.bf16 %v17365_v9, %v17364_v10 }
 0x1d6   : > { %v17268_v26 = vand.u32 4294901760, %v16469_v19  ;;  %13210 = vmatprep.subr.bf16.mxu0 %v16398_v24  ;;  %12377 = vmatmul.mubr.f32.vlgmr.msra.gmra.mrb[14].mxu1 %v13900_v8  ;;  %v16539_v61 = vsub.f32 %v16421_v38, %v9641_v48  ;;  %v16551_v55 = vsel %vm4758_vm5, %v9057_v0, %v15714_v56  ;;  %v17366_v57 = vand.u32 4294901760, %v16324_v41  ;;  %v9063_v0 = vpop.permute.xlu1 %9062 }
 0x1d7   : > { %v17267_v62 = vand.u32 4294901760, %v16474_v2  ;;  %13255 = vmatpush3.bf16.msra.mxu1 %v13254_v43  ;;  %12387 = vmatprep.mubr.msk.f32.mxu1 %vm13825_vm1, %v17306_v45  ;;  %v13257_v54 = vpack.c.bf16 %v17363_v25, %v17362_v28  ;;  %v16530_v43 = vsel %vm317_vm2, %v9073_v50, 0  ;;  %v9101_v50 = vand.u32 4294901760, %v16510_v33 }
 0x1d8   : > { %v16500_v11 = vsub.f32 %v16469_v19, %v17268_v26  ;;  %13256 = vmatprep.subr.bf16.mxu1 %v17311_v53  ;;  %v17367_v28 = vand.u32 4294901760, %v16321_v40  ;;  %v9650_v63 = vand.u32 4294901760, %v16530_v43  ;;  %v9647_v56 = vand.u32 4294901760, %v16487_v15 }
 0x1d9   : > { %v16515_v47 = vsub.f32 %v16474_v2, %v17267_v62  ;;  %13212 = vmatpush1.bf16.msra.mxu0 %v16414_v1  ;;  %v9099_v40 = vand.u32 4294901760, %v16525_v39  ;;  %v16572_v41 = vsel %vm317_vm2, %v9080_v52, 0  ;;  %v16578_v49 = vsub.f32 %v16494_v35, %v9097_v31 }
 0x1da   : > { %13214 = vmatprep.subr.bf16.mxu0 %v13213_v30  ;;  %v16547_v30 = vsub.f32 %v16430_v32, %v9644_v36  ;;  %v13217_v25 = vpack.c.bf16 %v17367_v28, %v17366_v57  ;;  %v17368_v32 = vld [vmem:[#allocation2_spill] sm:$0xff]  ;;  %v17269_v10 = vand.u32 4294901760, %v16539_v61  ;;  %v9103_v9 = vand.u32 4294901760, %v16551_v55 }
 0x1db   : > { %13258 = vmatpush3.bf16.msra.mxu1 %v13257_v54  ;;  %v16566_v54 = vsel %vm4758_vm5, %v17368_v32, %v16487_v15  ;;  %v17370_v57 = vand.u32 4294901760, %v16344_v37  ;;  %v16590_v28 = vsub.f32 %v16510_v33, %v9101_v50  ;;  %v16596_v26 = vsel %vm4758_vm5, %v9063_v0, %v17368_v32 }
 0x1dc   : > { %8380 = vmatmul.mubr.f32.vlgmr.msra.gmra.mrb[14].mxu0 %v13900_v8  ;;  %13259 = vmatprep.subr.bf16.mxu1 %v17311_v53  ;;  %v9105_v62 = vand.u32 4294901760, %v16566_v54  ;;  %v16601_v37 = vsub.f32 %v16530_v43, %v9650_v63  ;;  %v16607_v33 = vsub.f32 %v16525_v39, %v9099_v40  ;;  %v9723_v32 = vsub.f32 %v16539_v61, %v17269_v10 }
 0x1dd   : > { %13216 = vmatpush1.bf16.msra.mxu0 %v13215_v18  ;;  %8474 = vmatprep.mubr.f32.mxu0 %v17306_v45  ;;  %v17369_v18 = vand.u32 4294901760, %v16350_v12  ;;  %v16604_v12 = vsub.f32 %v16487_v15, %v9647_v56  ;;  %v16615_v0 = vsub.f32 %v16551_v55, %v9103_v9  ;;  %v9107_v43 = vand.u32 4294901760, %v16596_v26 }
 0x1de   : > { %13218 = vmatprep.subr.bf16.mxu0 %v13217_v25  ;;  %12388 = vmatmul.mubr.f32.vlgmr.msra.gmra.mrb[14].mxu1 %v13882_v4  ;;  %v9109_v25 = vand.u32 4294901760, %v16560_v13  ;;  %v17272_v15 = vand.u32 4294901760, %v16578_v49  ;;  %v16631_v55 = vpack.c.bf16 %v9644_v36, %v9641_v48  ;;  %v9724_v38 = vand.u32 4294901760, %v9723_v32 }
 0x1df   : > { %13261 = vmatpush3.bf16.msra.mxu1 %v16333_v7  ;;  %v13219_v52 = vpack.c.bf16 %v17370_v57, %v17369_v18  ;;  %12398 = vmatprep.mubr.msk.f32.mxu1 %vm13825_vm1, %v17306_v45  ;;  %v17270_v7 = vand.u32 4294901760, %v16547_v30  ;;  %v9111_v18 = vand.u32 4294901760, %v16572_v41  ;;  %v16624_v57 = vsub.f32 %v16566_v54, %v9105_v62 }
 0x1e0   : > { %13262 = vmatprep.subr.bf16.mxu1 %v17311_v53  ;;  %v16621_v39 = vsub.f32 %v16560_v13, %v9109_v25  ;;  %v17273_v13 = vand.u32 4294901760, %v16601_v37  ;;  %v17274_v54 = vand.u32 4294901760, %v16607_v33  ;;  %v17275_v48 = vand.u32 4294901760, %v16615_v0 }
 0x1e1   : > { %13220 = vmatpush1.bf16.msra.mxu0 %v13219_v52  ;;  %v17276_v52 = vand.u32 4294901760, %v16604_v12  ;;  %v16642_v10 = vsub.f32 %v16572_v41, %v9111_v18  ;;  %v16648_v36 = vsub.f32 %v16596_v26, %v9107_v43  ;;  %v17277_v32 = vand.u32 4294901760, %v16624_v57 }
 0x1e2   : > { %13222 = vmatprep.subr.bf16.mxu0 %v16363_v14  ;;  %v9195_v14 = vand.u32 4294901760, %v16590_v28  ;;  %v9219_v41 = vand.u32 4294901760, %v16621_v39  ;;  %v9744_v27 = vsub.f32 %v16601_v37, %v17273_v13 }
 0x1e3   : > { %13264 = vmatpush3.bf16.msra.mxu1 %v16377_v29  ;;  %v9730_v29 = vsub.f32 %v16547_v30, %v17270_v7  ;;  %v9737_v35 = vsub.f32 %v16604_v12, %v17276_v52 }
 0x1e4   : > { %8476 = vmatmul.mubr.f32.vlgmr.msra.gmra.mrb[14].mxu0 %v13882_v4  ;;  %13313 = vmatprep.subr.bf16.mxu1 %v17311_v53  ;;  %v9196_v26 = vsub.f32 %v16590_v28, %v9195_v14 }
 0x1e5   : > { %13224 = vmatpush1.bf16.msra.mxu0 %v16390_v16  ;;  %8554 = vmatprep.mubr.f32.mxu0 %v17306_v45  ;;  %v9184_v16 = vsub.f32 %v16578_v49, %v17272_v15  ;;  %v9731_v7 = vand.u32 4294901760, %v9730_v29  ;;  %v16669_v15 = vpack.c.bf16 %v9650_v63, %v9647_v56  ;;  %v16680_v29 = vpack.c.bf16 %v9103_v9, %v9099_v40 }
 0x1e6   : > { %13226 = vmatprep.subr.bf16.mxu0 %v16398_v24  ;;  %12399 = vmatmul.mubr.f32.vlgmr.msra.gmra.mrb[14].mxu1 %v13882_v4  ;;  %v16659_v24 = vpack.c.bf16 %v9101_v50, %v9097_v31  ;;  %v9190_v31 = vsub.f32 %v16607_v33, %v17274_v54  ;;  %v17278_v50 = vand.u32 4294901760, %v16642_v10  ;;  %v9202_v63 = vsub.f32 %v16615_v0, %v17275_v48 }
 0x1e7   : > { %13315 = vmatpush3.bf16.msra.mxu1 %v16631_v55  ;;  %12409 = vmatprep.mubr.msk.f32.mxu1 %vm13825_vm1, %v17306_v45  ;;  %v9213_v56 = vand.u32 4294901760, %v16648_v36  ;;  %v9185_v13 = vand.u32 4294901760, %v9184_v16  ;;  %v9197_v54 = vand.u32 4294901760, %v9196_v26  ;;  %v9208_v40 = vsub.f32 %v16624_v57, %v17277_v32 }
 0x1e8   : > { %13316 = vmatprep.subr.bf16.mxu1 %v17311_v53  ;;  %v9220_v9 = vsub.f32 %v16621_v39, %v9219_v41  ;;  %v9745_v48 = vand.u32 4294901760, %v9744_v27  ;;  %v9738_v52 = vand.u32 4294901760, %v9737_v35  ;;  %v13320_v16 = vpack.c.bf16 %v9731_v7, %v9724_v38 }
 0x1e9   : > { %13228 = vmatpush1.bf16.msra.mxu0 %v16414_v1  ;;  %v16688_v1 = vpack.c.bf16 %v9109_v25, %v9105_v62  ;;  %v9191_v62 = vand.u32 4294901760, %v9190_v31  ;;  %v9226_v25 = vsub.f32 %v16642_v10, %v17278_v50  ;;  %v9203_v26 = vand.u32 4294901760, %v9202_v63 }
 0x1ea   : > { %13266 = vmatprep.subr.bf16.mxu0 %v16659_v24  ;;  %v16704_v32 = vpack.c.bf16 %v9111_v18, %v9107_v43  ;;  %v9214_v27 = vsub.f32 %v16648_v36, %v9213_v56  ;;  %v13273_v7 = vpack.c.bf16 %v9197_v54, %v9185_v13  ;;  %v9209_v38 = vand.u32 4294901760, %v9208_v40 }
 0x1eb   : > { %13318 = vmatpush3.bf16.msra.mxu1 %v16669_v15  ;;  %v9221_v35 = vand.u32 4294901760, %v9220_v9  ;;  %v13323_v31 = vpack.c.bf16 %v9745_v48, %v9738_v52  ;;  %v4694_v18 = vsub.s32 1, %v15873_v42  ;;  %v9227_v43 = vand.u32 4294901760, %v9226_v25 }
 0x1ec   : > { %8556 = vmatmul.mubr.f32.vlgmr.msra.gmra.mrb[14].mxu0 %v13882_v4  ;;  %13319 = vmatprep.subr.bf16.mxu1 %v17311_v53  ;;  %v9215_v63 = vand.u32 4294901760, %v9214_v27  ;;  %v13275_v50 = vpack.c.bf16 %v9203_v26, %v9191_v62  ;;  %v13326_v13 = vpack.c.bf16 %v16547_v30, %v16539_v61  ;;  %v4698_v40 = vsub.s32 5, %v15873_v42 }
 0x1ed   : > { %13268 = vmatpush1.bf16.msra.mxu0 %v16680_v29  ;;  %9169 = vmatprep.mubr.f32.mxu0 %v17306_v45  ;;  %v4703_v52 = vrot.slane %v15937_v51, %v4694_v18  ;;  %v13283_v25 = vpack.c.bf16 %v16615_v0, %v16607_v33  ;;  %v13285_v27 = vpack.c.bf16 %v16621_v39, %v16624_v57  ;;  %v17383_v39 = vand.u32 4294901760, %v16642_v10 }
 0x1ee   : > { %13270 = vmatprep.subr.bf16.mxu0 %v16688_v1  ;;  %12410 = vmatmul.mubr.f32.vlgmr.msra.gmra.mrb[16].mxu1 %v13943_v23  ;;  %v13279_v54 = vpack.c.bf16 %v9227_v43, %v9215_v63  ;;  %v4695_v42 = vrot.slane %v16020_v44, %v4694_v18 }
 0x1ef   : > { %13321 = vmatpush3.bf16.msra.mxu1 %v13320_v16  ;;  %12420 = vmatprep.mubr.msk.f32.mxu1 %vm13825_vm1, %v17306_v45  ;;  %v13277_v16 = vpack.c.bf16 %v9221_v35, %v9209_v38  ;;  %v16730_v51 = vrot.slane %v4703_v52, %v4694_v18  ;;  %v13287_v35 = vpack.c.bf16 %v16642_v10, %v16648_v36  ;;  %v17388_v10 = vand.u32 4294901760, %v16061_v21 }
 0x1f0   : > { %13322 = vmatprep.subr.bf16.mxu1 %v17311_v53 }
 0x1f1   : > { %13272 = vmatpush1.bf16.msra.mxu0 %v16704_v32 }
 0x1f2   : > { %13274 = vmatprep.subr.bf16.mxu0 %v13273_v7  ;;  %v4699_v7 = vrot.slane %v16020_v44, %v4698_v40  ;;  %v16749_v44 = vrot.slane %v4695_v42, %v4694_v18  ;;  %v17373_v42 = vand.u32 4294901760, %v16547_v30  ;;  %v10276_v30 = vand.u32 4294901760, %v16515_v47 }
 0x1f3   : > { %13324 = vmatpush3.bf16.msra.mxu1 %v13323_v31 }
 0x1f4   : > { %9175 = vmatmul.mubr.f32.vlgmr.msra.gmra.mrb[16].mxu0 %v13943_v23  ;;  %13325 = vmatprep.subr.bf16.mxu1 %v17311_v53  ;;  %v13281_v23 = vpack.c.bf16 %v16590_v28, %v16578_v49  ;;  %v17377_v28 = vand.u32 4294901760, %v16601_v37 }
 0x1f5   : > { %13276 = vmatpush1.bf16.msra.mxu0 %v13275_v50  ;;  %9285 = vmatprep.mubr.f32.mxu0 %v17306_v45  ;;  %v13329_v50 = vpack.c.bf16 %v16601_v37, %v16604_v12  ;;  %v17380_v37 = vand.u32 4294901760, %v16615_v0 }
 0x1f6   : > { %13278 = vmatprep.subr.bf16.mxu0 %v13277_v16  ;;  %12421 = vmatmul.mubr.f32.vlgmr.msra.gmra.mrb[16].mxu1 %v13882_v4 }
 0x1f7   : > { %13327 = vmatpush3.bf16.msra.mxu1 %v13326_v13  ;;  %12431 = vmatprep.mubr.msk.f32.mxu1 %vm13825_vm1, %v17306_v45  ;;  %v10978_v13 = vand.u32 4294901760, %v16464_v34 }
 0x1f8   : > { %13328 = vmatprep.subr.bf16.mxu1 %v17311_v53 }
 0x1f9   : > { %v4685_v48 = vpop.f32.mrb[6].mxu1  ;;  %13280 = vmatpush1.bf16.msra.mxu0 %v13279_v54  ;;  %v16754_v54 = vrot.slane %v4699_v7, %v4694_v18  ;;  %v10979_v18 = vsub.f32 %v16464_v34, %v10978_v13 }
 0x1fa   : > { %v13552_v9 = vadd.f32 %v4685_v48, %v15950_v59  ;;  %v12136_v62 = vpop.f32.mrb[7].mxu1  ;;  %13282 = vmatprep.subr.bf16.mxu0 %v13281_v23  ;;  %v17371_v23 = vand.u32 4294901760, %v16449_v46 }
 0x1fb   : > { %13330 = vmatpush3.bf16.msra.mxu1 %v13329_v50 }
 0x1fc   : > { %v4691_v26 = vmax.f32 %v13552_v9, 0.0  ;;  %9287 = vmatmul.mubr.f32.vlgmr.msra.gmra.mrb[16].mxu0 %v13882_v4  ;;  %13331 = vmatprep.subr.bf16.mxu1 %v17311_v53 }
 0x1fd   : > { %13284 = vmatpush1.bf16.msra.mxu0 %v13283_v25  ;;  %9373 = vmatprep.mubr.f32.mxu0 %v17306_v45 }
 0x1fe   : > { %v4721_v38 = vmul.f32 %v16730_v51, %v4691_v26  ;;  %13286 = vmatprep.subr.bf16.mxu0 %v13285_v27  ;;  %12432 = vmatmul.mubr.f32.vlgmr.msra.gmra.mrb[16].mxu1 %v13886_v5  ;;  %v17372_v27 = vand.u32 4294901760, %v16539_v61 }
 0x1ff   : > { %v4199_v31 = vpop.f32.mrb[6].mxu0  ;;  %13333 = vmatpush3.bf16.msra.mxu1 %v16631_v55  ;;  %12442 = vmatprep.mubr.msk.f32.mxu1 %vm13825_vm1, %v17306_v45 }
 0x200   : > { %v10877_v43 = vand.u32 4294901760, %v4721_v38  ;;  %v13550_v63 = vadd.f32 %v4199_v31, %v15950_v59  ;;  %v4201_v16 = vpop.f32.mrb[7].mxu0  ;;  %13334 = vmatprep.subr.bf16.mxu1 %v17311_v53  ;;  %v13338_v7 = vpack.c.bf16 %v17373_v42, %v17372_v27 }
 0x201   : > { %v13551_v52 = vadd.f32 %v4201_v16, %v15950_v59  ;;  %13288 = vmatpush1.bf16.msra.mxu0 %v13287_v35 }
 0x202   : > { %v16758_v48 = vpack.c.bf16 %v10877_v43, %v17371_v23  ;;  %v10984_v50 = vsub.f32 %v4721_v38, %v10877_v43  ;;  %v4689_v40 = vmax.f32 %v13550_v63, 0.0  ;;  %13290 = vmatprep.subr.bf16.mxu0 %v16659_v24  ;;  %v17374_v43 = vand.u32 4294901760, %v16578_v49 }
 0x203   : > { %v4690_v9 = vmax.f32 %v13551_v52, 0.0  ;;  %13336 = vmatpush3.bf16.msra.mxu1 %v16669_v15  ;;  %v17375_v63 = vand.u32 4294901760, %v16469_v19  ;;  %v17376_v49 = vand.u32 4294901760, %v16604_v12  ;;  %v17379_v12 = vand.u32 4294901760, %v16607_v33 }
 0x204   : > { %v4719_v62 = vmul.f32 %v16749_v44, %v4689_v40  ;;  %9376 = vmatmul.mubr.f32.vlgmr.msra.gmra.mrb[16].mxu0 %v13886_v5  ;;  %13337 = vmatprep.subr.bf16.mxu1 %v17311_v53  ;;  %v10985_v25 = vand.u32 4294901760, %v10984_v50  ;;  %v16767_v46 = vpack.c.bf16 %v10984_v50, %v16464_v34  ;;  %v10282_v5 = vand.u32 4294901760, %v16500_v11 }
 0x205   : > { %v4720_v26 = vmul.f32 %v16754_v54, %v4690_v9  ;;  %13292 = vmatpush1.bf16.msra.mxu0 %v16680_v29  ;;  %9454 = vmatprep.mubr.f32.mxu0 %v17306_v45  ;;  %v13297_v61 = vpack.c.bf16 %v9195_v14, %v17374_v43  ;;  %v13341_v14 = vpack.c.bf16 %v17377_v28, %v17376_v49  ;;  %v17378_v40 = vand.u32 4294901760, %v16474_v2 }
 0x206   : > { %v10159_v38 = vand.u32 4294901760, %v4719_v62  ;;  %13294 = vmatprep.subr.bf16.mxu0 %v16688_v1  ;;  %12443 = vmatmul.mubr.f32.vlgmr.msra.gmra.mrb[16].mxu1 %v13900_v8  ;;  %v10986_v34 = vsub.f32 %v10984_v50, %v10985_v25  ;;  %v16779_v35 = vpack.c.bf16 %v10985_v25, %v10978_v13  ;;  %v10980_v13 = vand.u32 4294901760, %v10979_v18 }
 0x207   : > { %v10157_v31 = vand.u32 4294901760, %v4720_v26  ;;  %13339 = vmatpush3.bf16.msra.mxu1 %v13338_v7  ;;  %12453 = vmatprep.mubr.msk.f32.mxu1 %vm13825_vm1, %v17306_v45  ;;  %v10283_v9 = vsub.f32 %v16500_v11, %v10282_v5  ;;  %v10277_v2 = vsub.f32 %v16515_v47, %v10276_v30 }
 0x208   : > { %v16790_v16 = vpack.c.bf16 %v10159_v38, %v17375_v63  ;;  %v16792_v52 = vsub.f32 %v4719_v62, %v10159_v38  ;;  %13340 = vmatprep.subr.bf16.mxu1 %v17311_v53  ;;  %v10987_v23 = vand.u32 4294901760, %v10986_v34  ;;  %v17381_v38 = vand.u32 4294901760, %v16624_v57 }
 0x209   : > { %v16795_v50 = vsub.f32 %v4720_v26, %v10157_v31  ;;  %13296 = vmatpush1.bf16.msra.mxu0 %v16704_v32  ;;  %v16804_v19 = vpack.c.bf16 %v10157_v31, %v17378_v40  ;;  %v13299_v26 = vpack.c.bf16 %v17380_v37, %v17379_v12  ;;  %v13303_v57 = vpack.c.bf16 %v17383_v39, %v9213_v56 }
 0x20a   : > { %v10294_v62 = vand.u32 4294901760, %v16792_v52  ;;  %13298 = vmatprep.subr.bf16.mxu0 %v13297_v61  ;;  %v16808_v18 = vpack.c.bf16 %v10987_v23, %v10980_v13  ;;  %v13301_v34 = vpack.c.bf16 %v9219_v41, %v17381_v38  ;;  %v10278_v41 = vand.u32 4294901760, %v10277_v2 }
 0x20b   : > { %13342 = vmatpush3.bf16.msra.mxu1 %v13341_v14  ;;  %v10288_v27 = vand.u32 4294901760, %v16795_v50  ;;  %v17384_v63 = vand.u32 4294901760, %v16036_v58  ;;  %v17387_v58 = vand.u32 4294901760, %v16182_v3 }
 0x20c   : > { %v10295_v7 = vsub.f32 %v16792_v52, %v10294_v62  ;;  %9458 = vmatmul.mubr.f32.vlgmr.msra.gmra.mrb[16].mxu0 %v13900_v8  ;;  %13343 = vmatprep.subr.bf16.mxu1 %v17311_v53  ;;  %v16827_v33 = vpack.c.bf16 %v10294_v62, %v10282_v5  ;;  %v10284_v8 = vand.u32 4294901760, %v10283_v9 }
 0x20d   : > { %13300 = vmatpush1.bf16.msra.mxu0 %v13299_v26  ;;  %9552 = vmatprep.mubr.f32.mxu0 %v17306_v45  ;;  %v10289_v0 = vsub.f32 %v16795_v50, %v10288_v27  ;;  %v16831_v31 = vpack.c.bf16 %v10288_v27, %v10276_v30 }
 0x20e   : > { %17382 = vst [vmem:[#allocation2_spill] sm:$0xff] %v16827_v33  ;;  %13302 = vmatprep.subr.bf16.mxu0 %v13301_v34  ;;  %12454 = vmatmul.mubr.f32.vlgmr.msra.gmra.mrb[16].mxu1 %v13882_v4  ;;  %v10296_v43 = vand.u32 4294901760, %v10295_v7 }
 0x20f   : > { %13345 = vmatpush3.bf16.msra.mxu1 %v16631_v55  ;;  %12464 = vmatprep.mubr.msk.f32.mxu1 %vm13825_vm1, %v17306_v45  ;;  %v10290_v5 = vand.u32 4294901760, %v10289_v0  ;;  %v17385_v55 = vand.u32 4294901760, %v16091_v22 }
 0x210   : > { %13346 = vmatprep.subr.bf16.mxu1 %v17311_v53  ;;  %v16842_v61 = vpack.c.bf16 %v10296_v43, %v10284_v8  ;;  %v17386_v53 = vand.u32 4294901760, %v16069_v17 }
 0x211   : > { %13304 = vmatpush1.bf16.msra.mxu0 %v13303_v57  ;;  %v16844_v30 = vpack.c.bf16 %v10290_v5, %v10278_v41  ;;  %v16850_v36 = vpack.c.bf16 %v17385_v55, %v17384_v63 }
 0x212   : > { %13306 = vmatprep.subr.bf16.mxu0 %v16659_v24  ;;  %v16866_v22 = vpack.c.bf16 %v17387_v58, %v17386_v53 }
 0x213   : > { %13348 = vmatpush3.bf16.msra.mxu1 %v16669_v15  ;;  %v17389_v15 = vld [vmem:[#allocation5_spill] sm:$0xff] }
 0x214   : > { %9554 = vmatmul.mubr.f32.vlgmr.msra.gmra.mrb[16].mxu0 %v13882_v4  ;;  %13446 = vmatprep.subr.bf16.mxu1 %v16850_v36  ;;  %v17390_v24 = vand.u32 4294901760, %v17389_v15 }
 0x215   : > { %13308 = vmatpush1.bf16.msra.mxu0 %v16680_v29  ;;  %9632 = vmatprep.mubr.f32.mxu0 %v17306_v45 }
 0x216   : > { %13310 = vmatprep.subr.bf16.mxu0 %v16688_v1  ;;  %12465 = vmatmul.mubr.f32.vlgmr.msra.gmra.mrb[16].mxu1 %v13882_v4  ;;  %v16874_v29 = vpack.c.bf16 %v17390_v24, %v17388_v10 }
 0x217   : > { %13448 = vmatpush3.bf16.msra.mxu1 %v16850_v36 }
 0x218   : > { %13450 = vmatprep.subr.bf16.mxu1 %v16758_v48 }
 0x219   : > { %13312 = vmatpush1.bf16.msra.mxu0 %v16704_v32 }
 0x21a   : > { %13350 = vmatprep.subr.bf16.mxu0 %v16866_v22 }
 0x21b   : > { %13452 = vmatpush3.bf16.msra.mxu1 %v16758_v48 }
 0x21c   : > { %9634 = vmatmul.mubr.f32.vlgmr.msra.gmra.mrb[16].mxu0 %v13882_v4 }
 0x21d   : > { %13352 = vmatpush1.bf16.msra.mxu0 %v16874_v29  ;;  %10227 = vmatprep.mubr.f32.mxu0 %v17306_v45 }
 0x21e   : > { %13354 = vmatprep.subr.bf16.mxu0 %v16804_v19 }
 0x221   : > { %13356 = vmatpush1.bf16.msra.mxu0 %v16790_v16 }
 0x229   : > { %v5806_v17 = vpop.f32.mrb[8].mxu1 }
 0x22a   : > { %v13555_v3 = vadd.f32 %v5806_v17, %v15950_v59  ;;  %v12202_v21 = vpop.f32.mrb[9].mxu1 }
 0x22c   : > { %v5812_v32 = vmax.f32 %v13555_v3, 0.0 }
 0x22e   : > { %v10880_v56 = vand.u32 4294901760, %v5812_v32 }
 0x22f   : > { %v5320_v1 = vpop.f32.mrb[8].mxu0 }
 0x230   : > { %v10991_v13 = vsub.f32 %v5812_v32, %v10880_v56  ;;  %v13553_v23 = vadd.f32 %v5320_v1, %v15950_v59  ;;  %v5322_v49 = vpop.f32.mrb[9].mxu0 }
 0x231   : > { %v13554_v4 = vadd.f32 %v5322_v49, %v15950_v59 }
 0x232   : > { %v5810_v28 = vmax.f32 %v13553_v23, 0.0  ;;  %v10992_v7 = vand.u32 4294901760, %v10991_v13 }
 0x233   : > { %v5811_v14 = vmax.f32 %v13554_v4, 0.0 }
 0x234   : > { %v10163_v40 = vand.u32 4294901760, %v5810_v28  ;;  %v10993_v63 = vsub.f32 %v10991_v13, %v10992_v7 }
 0x235   : > { %v10161_v9 = vand.u32 4294901760, %v5811_v14 }
 0x236   : > { %v16885_v62 = vsub.f32 %v5810_v28, %v10163_v40 }
 0x237   : > { %v16887_v12 = vsub.f32 %v5811_v14, %v10161_v9 }
 0x238   : > { %v10306_v58 = vand.u32 4294901760, %v16885_v62 }
 0x239   : > { %v10300_v17 = vand.u32 4294901760, %v16887_v12 }
 0x23a   : > { %v10307_v49 = vsub.f32 %v16885_v62, %v10306_v58 }
 0x259   : > { %v6884_v37 = vpop.f32.mrb[10].mxu1 }
 0x25a   : > { %v13558_v26 = vadd.f32 %v6884_v37, %v15950_v59  ;;  %v12268_v2 = vpop.f32.mrb[11].mxu1  ;;  %v10301_v37 = vsub.f32 %v16887_v12, %v10300_v17 }
 0x25c   : > { %v6890_v27 = vmax.f32 %v13558_v26, 0.0 }
 0x25e   : > { %v10883_v38 = vand.u32 4294901760, %v6890_v27 }
 0x25f   : > { %v6398_v34 = vpop.f32.mrb[10].mxu0 }
 0x260   : > { %v16890_v0 = vpack.c.bf16 %v10883_v38, %v10880_v56  ;;  %v10998_v8 = vsub.f32 %v6890_v27, %v10883_v38  ;;  %v13556_v43 = vadd.f32 %v6398_v34, %v15950_v59  ;;  %v6400_v39 = vpop.f32.mrb[11].mxu0  ;;  %v10994_v56 = vand.u32 4294901760, %v10993_v63 }
 0x261   : > { %v13557_v57 = vadd.f32 %v6400_v39, %v15950_v59  ;;  %v10308_v38 = vand.u32 4294901760, %v10307_v49 }
 0x262   : > { %v10999_v41 = vand.u32 4294901760, %v10998_v8  ;;  %v6888_v5 = vmax.f32 %v13556_v43, 0.0  ;;  %13454 = vmatprep.subr.bf16.mxu1 %v16890_v0  ;;  %v16895_v55 = vpack.c.bf16 %v10998_v8, %v10991_v13 }
 0x263   : > { %v6889_v53 = vmax.f32 %v13557_v57, 0.0  ;;  %13456 = vmatpush3.bf16.msra.mxu1 %v16890_v0 }
 0x264   : > { %v10167_v10 = vand.u32 4294901760, %v6888_v5  ;;  %v11000_v15 = vsub.f32 %v10998_v8, %v10999_v41  ;;  %v16899_v24 = vpack.c.bf16 %v10999_v41, %v10992_v7  ;;  %v10302_v8 = vand.u32 4294901760, %v10301_v37  ;;  %v302_v41 = vld [vmem:[%s17210_s3] sm:$0xff] }
 0x265   : > { %v10165_v3 = vand.u32 4294901760, %v6889_v53 }
 0x266   : > { %v16902_v21 = vpack.c.bf16 %v10167_v10, %v10163_v40  ;;  %v16904_v32 = vsub.f32 %v6888_v5, %v10167_v10  ;;  %v11001_v1 = vand.u32 4294901760, %v11000_v15  ;;  %v10140_v5 = vsel %vm10138_vm6, %v302_v41, 0 }
 0x267   : > { %v16906_v13 = vsub.f32 %v6889_v53, %v10165_v3  ;;  %v16908_v23 = vpack.c.bf16 %v10165_v3, %v10161_v9  ;;  %v16936_v63 = vand.u32 4294901760, %v10140_v5 }
 0x268   : > { %v10318_v4 = vand.u32 4294901760, %v16904_v32  ;;  %v16912_v28 = vpack.c.bf16 %v11001_v1, %v10994_v56 }
 0x269   : > { %v10312_v40 = vand.u32 4294901760, %v16906_v13  ;;  %13358 = vmatprep.subr.bf16.mxu0 %v16908_v23  ;;  %v16939_v53 = vsub.f32 %v10140_v5, %v16936_v63 }
 0x26a   : > { %v10319_v9 = vsub.f32 %v16904_v32, %v10318_v4  ;;  %13360 = vmatpush1.bf16.msra.mxu0 %v16902_v21  ;;  %v16923_v2 = vpack.c.bf16 %v10318_v4, %v10306_v58 }
 0x26b   : > { %v10313_v27 = vsub.f32 %v16906_v13, %v10312_v40  ;;  %v16926_v7 = vpack.c.bf16 %v10312_v40, %v10300_v17  ;;  %v16942_v58 = vand.u32 4294901760, %v16939_v53 }
 0x26c   : > { %17391 = vst [vmem:[#allocation5_spill] sm:$0xff] %v16923_v2  ;;  %v10320_v34 = vand.u32 4294901760, %v10319_v9 }
 0x26d   : > { %17392 = vst [vmem:[#allocation12_spill] sm:$0xff] %v16926_v7  ;;  %v10314_v43 = vand.u32 4294901760, %v10313_v27  ;;  %v10231_v10 = vsub.f32 %v16939_v53, %v16942_v58 }
 0x26e   : > { %v16928_v39 = vpack.c.bf16 %v10320_v34, %v10308_v38 }
 0x26f   : > { %v16930_v57 = vpack.c.bf16 %v10314_v43, %v10302_v8  ;;  %v16946_v15 = vand.u32 4294901760, %v10231_v10 }
 0x271   : > { %12485 = vmatprep.mubr.f32.mxu1 %v16946_v15 }
 0x289   : > { %v7962_v17 = vpop.f32.mrb[12].mxu1 }
 0x28a   : > { %v12334_v3 = vpop.f32.mrb[13].mxu1  ;;  %v13561_v49 = vadd.f32 %v7962_v17, %v15950_v59 }
 0x28c   : > { %v7968_v4 = vmax.f32 %v13561_v49, 0.0 }
 0x28e   : > { %v7971_v9 = vmul.f32 %v7968_v4, %v16730_v51 }
 0x28f   : > { %v7476_v56 = vpop.f32.mrb[12].mxu0 }
 0x290   : > { %v7478_v1 = vpop.f32.mrb[13].mxu0  ;;  %v13559_v40 = vadd.f32 %v7476_v56, %v15950_v59  ;;  %v10886_v34 = vand.u32 4294901760, %v7971_v9 }
 0x291   : > { %v13560_v37 = vadd.f32 %v7478_v1, %v15950_v59 }
 0x292   : > { %v7966_v27 = vmax.f32 %v13559_v40, 0.0  ;;  %v11005_v5 = vsub.f32 %v7971_v9, %v10886_v34 }
 0x293   : > { %v7967_v38 = vmax.f32 %v13560_v37, 0.0 }
 0x294   : > { %v7969_v8 = vmul.f32 %v7966_v27, %v16749_v44  ;;  %v11006_v26 = vand.u32 4294901760, %v11005_v5 }
 0x295   : > { %v7970_v43 = vmul.f32 %v7967_v38, %v16754_v54 }
 0x296   : > { %v10171_v17 = vand.u32 4294901760, %v7969_v8  ;;  %v11007_v38 = vsub.f32 %v11005_v5, %v11006_v26 }
 0x297   : > { %v10169_v14 = vand.u32 4294901760, %v7970_v43 }
 0x298   : > { %v16956_v25 = vsub.f32 %v7969_v8, %v10171_v17 }
 0x299   : > { %v16961_v54 = vsub.f32 %v7970_v43, %v10169_v14 }
 0x2b9   : > { %v9043_v41 = vpop.f32.mrb[14].mxu1 }
 0x2ba   : > { %v13564_v10 = vadd.f32 %v9043_v41, %v15950_v59  ;;  %v12400_v3 = vpop.f32.mrb[15].mxu1 }
 0x2bc   : > { %v9049_v49 = vmax.f32 %v13564_v10, 0.0 }
 0x2be   : > { %v10889_v56 = vand.u32 4294901760, %v9049_v49 }
 0x2bf   : > { %v8557_v1 = vpop.f32.mrb[14].mxu0 }
 0x2c0   : > { %v16958_v51 = vpack.c.bf16 %v10889_v56, %v10886_v34  ;;  %v11012_v4 = vsub.f32 %v9049_v49, %v10889_v56  ;;  %v13562_v44 = vadd.f32 %v8557_v1, %v15950_v59  ;;  %v8559_v40 = vpop.f32.mrb[15].mxu0  ;;  %v10330_v34 = vand.u32 4294901760, %v16956_v25 }
 0x2c1   : > { %v13563_v37 = vadd.f32 %v8559_v40, %v15950_v59  ;;  %v10324_v56 = vand.u32 4294901760, %v16961_v54  ;;  %v11008_v40 = vand.u32 4294901760, %v11007_v38 }
 0x2c2   : > { %v11013_v9 = vand.u32 4294901760, %v11012_v4  ;;  %v9047_v27 = vmax.f32 %v13562_v44, 0.0  ;;  %13458 = vmatprep.subr.bf16.mxu1 %v16958_v51  ;;  %v16965_v41 = vpack.c.bf16 %v11012_v4, %v11005_v5  ;;  %v10331_v2 = vsub.f32 %v16956_v25, %v10330_v34 }
 0x2c3   : > { %v9048_v10 = vmax.f32 %v13563_v37, 0.0  ;;  %13460 = vmatpush3.bf16.msra.mxu1 %v16958_v51 }
 0x2c4   : > { %v10175_v8 = vand.u32 4294901760, %v9047_v27  ;;  %v11014_v3 = vsub.f32 %v11012_v4, %v11013_v9  ;;  %v16969_v49 = vpack.c.bf16 %v11013_v9, %v11006_v26  ;;  %v10325_v9 = vsub.f32 %v16961_v54, %v10324_v56 }
 0x2c5   : > { %v10173_v43 = vand.u32 4294901760, %v9048_v10 }
 0x2c6   : > { %v16972_v1 = vpack.c.bf16 %v10175_v8, %v10171_v17  ;;  %v16974_v44 = vsub.f32 %v9047_v27, %v10175_v8  ;;  %v11015_v42 = vand.u32 4294901760, %v11014_v3  ;;  %v10332_v3 = vand.u32 4294901760, %v10331_v2  ;;  %v304_v27 = vld [vmem:[%s17211_s4] sm:$0xff] }
 0x2c7   : > { %v16976_v5 = vsub.f32 %v9048_v10, %v10173_v43  ;;  %v16978_v37 = vpack.c.bf16 %v10173_v43, %v10169_v14  ;;  %v10326_v43 = vand.u32 4294901760, %v10325_v9  ;;  %10130 = vperm.xlu1 %13802, %v304_v27  }
 0x2c8   : > { %v10342_v7 = vand.u32 4294901760, %v16974_v44  ;;  %v16982_v4 = vpack.c.bf16 %v11015_v42, %v11008_v40 }
 0x2c9   : > { %v10336_v17 = vand.u32 4294901760, %v16976_v5  ;;  %13362 = vmatprep.subr.bf16.mxu0 %v16978_v37 }
 0x2ca   : > { %v10343_v14 = vsub.f32 %v16974_v44, %v10342_v7  ;;  %13364 = vmatpush1.bf16.msra.mxu0 %v16972_v1  ;;  %v16993_v38 = vpack.c.bf16 %v10342_v7, %v10330_v34  ;;  %v303_v7 = vld [vmem:[%s17210_s3 + $0x8] sm:$0xff] }
 0x2cb   : > { %v10337_v42 = vsub.f32 %v16976_v5, %v10336_v17  ;;  %v16996_v10 = vpack.c.bf16 %v10336_v17, %v10324_v56  ;;  %v305_v34 = vld [vmem:[%s17211_s4 + $0x8] sm:$0xff]  ;;  %v10143_v2 = vsel %vm10138_vm6, %v303_v7, 0 }
 0x2cc   : > { %17393 = vst [vmem:[#allocation13_spill] sm:$0xff] %v16993_v38  ;;  %v10344_v8 = vand.u32 4294901760, %v10343_v14  ;;  %10135 = vperm.xlu1 %13802, %v305_v34   ;;  %v17010_v56 = vand.u32 4294901760, %v10143_v2 }
 0x2cd   : > { %v10338_v40 = vand.u32 4294901760, %v10337_v42 }
 0x2ce   : > { %v16998_v26 = vpack.c.bf16 %v10344_v8, %v10332_v3  ;;  %v17013_v17 = vsub.f32 %v10143_v2, %v17010_v56 }
 0x2cf   : > { %v13377_v33 = vpack.c.bf16 %v10338_v40, %v10326_v43 }
 0x2d0   : > { %v17016_v9 = vand.u32 4294901760, %v17013_v17 }
 0x2d2   : > { %v10242_v27 = vsub.f32 %v17013_v17, %v17016_v9 }
 0x2d4   : > { %v10243_v40 = vand.u32 4294901760, %v10242_v27 }
 0x2e9   : > { %v10121_v14 = vpop.f32.mrb[16].mxu1 }
 0x2ea   : > { %v13567_v42 = vadd.f32 %v10121_v14, %v15950_v59  ;;  %v12466_v8 = vpop.f32.mrb[17].mxu1 }
 0x2ec   : > { %v10127_v3 = vmax.f32 %v13567_v42, 0.0 }
 0x2ee   : > { %v17021_v43 = vand.u32 4294901760, %v10127_v3 }
 0x2ef   : > { %v9635_v7 = vpop.f32.mrb[16].mxu0 }
 0x2f0   : > { %v13565_v34 = vadd.f32 %v9635_v7, %v15950_v59  ;;  %v9637_v38 = vpop.f32.mrb[17].mxu0  ;;  %12483 = vmatprep.subr.mxu1 %v17021_v43  ;;  %v17028_v14 = vsub.f32 %v10127_v3, %v17021_v43 }
 0x2f1   : > { %v13566_v2 = vadd.f32 %v9637_v38, %v15950_v59  ;;  %12484 = vmatpush3.msra.mxu1 %v17021_v43 }
 0x2f2   : > { %v10125_v8 = vmax.f32 %v13565_v34, 0.0  ;;  %13462 = vmatprep.subr.bf16.mxu1 %v16231_v60  ;;  %12486 = vmatmul.mubr.f32.vlgmr.msra.gmra.mrb[18].mxu1 %v10243_v40  ;;  %v17039_v59 = vand.u32 4294901760, %v17028_v14  ;;  %v17399_v34 = vld [vmem:[#allocation3_spill] sm:$0xff] }
 0x2f3   : > { %v10126_v42 = vmax.f32 %v13566_v2, 0.0  ;;  %13464 = vmatpush3.bf16.msra.mxu1 %v16231_v60  ;;  %12506 = vmatprep.mubr.f32.mxu1 %v16936_v63 }
 0x2f4   : > { %13466 = vmatprep.subr.bf16.mxu1 %v16808_v18  ;;  %v17036_v7 = vand.u32 4294901760, %v10125_v8  ;;  %v11021_v38 = vsub.f32 %v17028_v14, %v17039_v59 }
 0x2f5   : > { %v17034_v27 = vand.u32 4294901760, %v10126_v42 }
 0x2f7   : > { %10178 = vmatprep.subr.mxu0 %v17034_v27  ;;  %13468 = vmatpush3.bf16.msra.mxu1 %v16808_v18  ;;  %v17046_v60 = vsub.f32 %v10126_v42, %v17034_v27  ;;  %v17057_v18 = vsub.f32 %v10125_v8, %v17036_v7  ;;  %v17403_v8 = vpack.c.bf16 %v16906_v13, %v16887_v12  ;;  %v17411_v12 = vld [vmem:[#allocation12_spill] sm:$0xff] }
 0x2f8   : > { %10180 = vmatpush1.msra.mxu0 %v17036_v7  ;;  %13470 = vmatprep.subr.bf16.mxu1 %v16912_v28 }
 0x2f9   : > { %13366 = vmatprep.subr.bf16.mxu0 %v16302_v20  ;;  %10233 = vmatmul.mubr.f32.vlgmr.msra.gmra.mrb[18].mxu0 %v16946_v15  ;;  %v10348_v20 = vand.u32 4294901760, %v17046_v60  ;;  %v17394_v15 = vld [vmem:[#allocation6_spill] sm:$0xff] }
 0x2fa   : > { %13368 = vmatpush1.bf16.msra.mxu0 %v16288_v6  ;;  %10238 = vmatprep.mubr.f32.mxu0 %v17306_v45  ;;  %v11022_v6 = vand.u32 4294901760, %v11021_v38 }
 0x2fb   : > { %13370 = vmatprep.subr.bf16.mxu0 %v16844_v30  ;;  %13472 = vmatpush3.bf16.msra.mxu1 %v16912_v28  ;;  %v10354_v30 = vand.u32 4294901760, %v17057_v18  ;;  %v10349_v28 = vsub.f32 %v17046_v60, %v10348_v20 }
 0x2fc   : > { %13474 = vmatprep.subr.bf16.mxu1 %v16982_v4 }
 0x2fd   : > { %10244 = vmatmul.mubr.f32.gmra.mrb[20].mxu0 %v10243_v40  ;;  %v17398_v40 = vld [vmem:[#allocation8_spill] sm:$0xff] }
 0x2fe   : > { %13372 = vmatpush1.bf16.msra.mxu0 %v16842_v61  ;;  %10404 = vmatprep.mubr.f32.mxu0 %v17306_v45  ;;  %v10355_v61 = vsub.f32 %v17057_v18, %v10354_v30  ;;  %v17400_v2 = vpack.c.bf16 %v17398_v40, %v17399_v34 }
 0x2ff   : > { %13374 = vmatprep.subr.bf16.mxu0 %v16930_v57  ;;  %13476 = vmatpush3.bf16.msra.mxu1 %v16982_v4  ;;  %v10350_v57 = vand.u32 4294901760, %v10349_v28  ;;  %v17396_v4 = vld [vmem:[#allocation4_spill] sm:$0xff] }
 0x300   : > { %12504 = vmatprep.subr.mxu1 %v11022_v6 }
 0x302   : > { %13376 = vmatpush1.bf16.msra.mxu0 %v16928_v39  ;;  %v17395_v39 = vld [vmem:[#allocation9_spill] sm:$0xff] }
 0x303   : > { %13378 = vmatprep.subr.bf16.mxu0 %v13377_v33  ;;  %12505 = vmatpush3.msra.mxu1 %v11022_v6  ;;  %v10356_v33 = vand.u32 4294901760, %v10355_v61  ;;  %v17397_v3 = vpack.c.bf16 %v17395_v39, %v17396_v4 }
 0x304   : > { %13478 = vmatprep.subr.bf16.mxu1 %v17394_v15  ;;  %12507 = vmatmul.mubr.f32.vlgmr.msra.gmra.mrb[18].mxu1 %v17010_v56 }
 0x305   : > { %13480 = vmatpush3.bf16.msra.mxu1 %v17394_v15  ;;  %12527 = vmatprep.mubr.f32.mxu1 %v16939_v53 }
 0x306   : > { %13380 = vmatpush1.bf16.msra.mxu0 %v16998_v26  ;;  %13482 = vmatprep.subr.bf16.mxu1 %v16767_v46  ;;  %v17401_v26 = vpack.c.bf16 %v16795_v50, %v16515_v47  ;;  %v17404_v47 = vpack.c.bf16 %v16904_v32, %v16885_v62  ;;  %v17405_v50 = vpack.c.bf16 %v16976_v5, %v16961_v54  ;;  %v17409_v62 = vld [vmem:[#allocation10_spill] sm:$0xff] }
 0x307   : > { %10351 = vmatprep.subr.mxu0 %v10350_v57 }
 0x309   : > { %13484 = vmatpush3.bf16.msra.mxu1 %v16767_v46  ;;  %v17402_v46 = vpack.c.bf16 %v16792_v52, %v16500_v11  ;;  %v17406_v11 = vpack.c.bf16 %v16974_v44, %v16956_v25  ;;  %v17407_v52 = vld [vmem:[#allocation7_spill] sm:$0xff] }
 0x30a   : > { %10357 = vmatpush1.msra.mxu0 %v10356_v33  ;;  %13486 = vmatprep.subr.bf16.mxu1 %v16895_v55  ;;  %v17408_v25 = vld [vmem:[#allocation11_spill] sm:$0xff] }
 0x30b   : > { %13382 = vmatprep.subr.bf16.mxu0 %v17397_v3  ;;  %10406 = vmatmul.mubr.f32.vlgmr.msra.gmra.mrb[18].mxu0 %v16936_v63 }
 0x30c   : > { %13384 = vmatpush1.bf16.msra.mxu0 %v17400_v2  ;;  %10411 = vmatprep.mubr.f32.mxu0 %v17306_v45 }
 0x30d   : > { %13386 = vmatprep.subr.bf16.mxu0 %v17401_v26  ;;  %13488 = vmatpush3.bf16.msra.mxu1 %v16895_v55  ;;  %v17412_v55 = vld [vmem:[#allocation5_spill] sm:$0xff] }
 0x30e   : > { %13490 = vmatprep.subr.bf16.mxu1 %v16965_v41 }
 0x30f   : > { %10413 = vmatmul.mubr.f32.gmra.mrb[20].mxu0 %v17010_v56 }
 0x310   : > { %13388 = vmatpush1.bf16.msra.mxu0 %v17402_v46  ;;  %10519 = vmatprep.mubr.f32.mxu0 %v17306_v45 }
 0x311   : > { %13390 = vmatprep.subr.bf16.mxu0 %v17403_v8  ;;  %13492 = vmatpush3.bf16.msra.mxu1 %v16965_v41 }
 0x312   : > { %12525 = vmatprep.subr.mxu1 %v17028_v14 }
 0x314   : > { %13392 = vmatpush1.bf16.msra.mxu0 %v17404_v47 }
 0x315   : > { %13394 = vmatprep.subr.bf16.mxu0 %v17405_v50  ;;  %12526 = vmatpush3.msra.mxu1 %v17028_v14 }
 0x316   : > { %13494 = vmatprep.subr.bf16.mxu1 %v16850_v36  ;;  %12528 = vmatmul.mubr.f32.vlgmr.msra.gmra.mrb[18].mxu1 %v17013_v17 }
 0x317   : > { %13496 = vmatpush3.bf16.msra.mxu1 %v16850_v36  ;;  %12548 = vmatprep.mubr.f32.mxu1 %v16942_v58 }
 0x318   : > { %13396 = vmatpush1.bf16.msra.mxu0 %v17406_v11  ;;  %13498 = vmatprep.subr.bf16.mxu1 %v16758_v48 }
 0x319   : > { %10469 = vmatprep.subr.mxu0 %v17046_v60 }
 0x31b   : > { %13500 = vmatpush3.bf16.msra.mxu1 %v16758_v48 }
 0x31c   : > { %10472 = vmatpush1.msra.mxu0 %v17057_v18  ;;  %13502 = vmatprep.subr.bf16.mxu1 %v16890_v0 }
 0x31d   : > { %13398 = vmatprep.subr.bf16.mxu0 %v16866_v22  ;;  %10522 = vmatmul.mubr.f32.vlgmr.msra.gmra.mrb[18].mxu0 %v16939_v53 }
 0x31e   : > { %13400 = vmatpush1.bf16.msra.mxu0 %v16874_v29  ;;  %10527 = vmatprep.mubr.f32.mxu0 %v17306_v45 }
 0x31f   : > { %13402 = vmatprep.subr.bf16.mxu0 %v16804_v19  ;;  %13504 = vmatpush3.bf16.msra.mxu1 %v16890_v0 }
 0x320   : > { %13506 = vmatprep.subr.bf16.mxu1 %v16958_v51 }
 0x321   : > { %10530 = vmatmul.mubr.f32.gmra.mrb[20].mxu0 %v17013_v17 }
 0x322   : > { %13404 = vmatpush1.bf16.msra.mxu0 %v16790_v16  ;;  %10618 = vmatprep.mubr.f32.mxu0 %v17306_v45 }
 0x323   : > { %13406 = vmatprep.subr.bf16.mxu0 %v16908_v23  ;;  %13508 = vmatpush3.bf16.msra.mxu1 %v16958_v51 }
 0x324   : > { %12546 = vmatprep.subr.mxu1 %v17021_v43 }
 0x326   : > { %13408 = vmatpush1.bf16.msra.mxu0 %v16902_v21 }
 0x327   : > { %13410 = vmatprep.subr.bf16.mxu0 %v16978_v37  ;;  %12547 = vmatpush3.msra.mxu1 %v17021_v43 }
 0x328   : > { %13510 = vmatprep.subr.bf16.mxu1 %v17407_v52  ;;  %12549 = vmatmul.mubr.f32.vlgmr.msra.gmra.mrb[18].mxu1 %v17016_v9 }
 0x329   : > { %13512 = vmatpush3.bf16.msra.mxu1 %v17407_v52  ;;  %12569 = vmatprep.mubr.f32.mxu1 %v16936_v63 }
 0x32a   : > { %13412 = vmatpush1.bf16.msra.mxu0 %v16972_v1  ;;  %13514 = vmatprep.subr.bf16.mxu1 %v16779_v35 }
 0x32b   : > { %10569 = vmatprep.subr.mxu0 %v17034_v27 }
 0x32d   : > { %13516 = vmatpush3.bf16.msra.mxu1 %v16779_v35  ;;  %v17410_v35 = vld [vmem:[#allocation2_spill] sm:$0xff] }
 0x32e   : > { %10571 = vmatpush1.msra.mxu0 %v17036_v7  ;;  %13518 = vmatprep.subr.bf16.mxu1 %v16899_v24 }
 0x32f   : > { %13414 = vmatprep.subr.bf16.mxu0 %v17408_v25  ;;  %10622 = vmatmul.mubr.f32.vlgmr.msra.gmra.mrb[18].mxu0 %v16942_v58 }
 0x330   : > { %13416 = vmatpush1.bf16.msra.mxu0 %v17409_v62  ;;  %10627 = vmatprep.mubr.f32.mxu0 %v17306_v45 }
 0x331   : > { %13418 = vmatprep.subr.bf16.mxu0 %v16831_v31  ;;  %13520 = vmatpush3.bf16.msra.mxu1 %v16899_v24  ;;  %v17413_v31 = vld [vmem:[#allocation13_spill] sm:$0xff] }
 0x332   : > { %13522 = vmatprep.subr.bf16.mxu1 %v16969_v49 }
 0x333   : > { %10631 = vmatmul.mubr.f32.gmra.mrb[20].mxu0 %v17016_v9 }
 0x334   : > { %13420 = vmatpush1.bf16.msra.mxu0 %v17410_v35  ;;  %10755 = vmatprep.mubr.f32.mxu0 %v17306_v45 }
 0x335   : > { %13422 = vmatprep.subr.bf16.mxu0 %v17411_v12  ;;  %13524 = vmatpush3.bf16.msra.mxu1 %v16969_v49 }
 0x336   : > { %12567 = vmatprep.subr.mxu1 %v17039_v59 }
 0x338   : > { %13424 = vmatpush1.bf16.msra.mxu0 %v17412_v55 }
 0x339   : > { %13426 = vmatprep.subr.bf16.mxu0 %v16996_v10  ;;  %12568 = vmatpush3.msra.mxu1 %v17039_v59 }
 0x33a   : > { %13526 = vmatprep.subr.bf16.mxu1 %v16850_v36  ;;  %12570 = vmatmul.mubr.f32.vlgmr.msra.gmra.mrb[18].mxu1 %v17010_v56 }
 0x33b   : > { %13528 = vmatpush3.bf16.msra.mxu1 %v16850_v36  ;;  %12590 = vmatprep.mubr.f32.mxu1 %v16936_v63 }
 0x33c   : > { %13428 = vmatpush1.bf16.msra.mxu0 %v17413_v31  ;;  %13530 = vmatprep.subr.bf16.mxu1 %v16758_v48 }
 0x33d   : > { %10704 = vmatprep.subr.mxu0 %v10348_v20 }
 0x33f   : > { %13532 = vmatpush3.bf16.msra.mxu1 %v16758_v48 }
 0x340   : > { %10708 = vmatpush1.msra.mxu0 %v10354_v30  ;;  %13534 = vmatprep.subr.bf16.mxu1 %v16890_v0 }
 0x341   : > { %13430 = vmatprep.subr.bf16.mxu0 %v16866_v22  ;;  %10757 = vmatmul.mubr.f32.vlgmr.msra.gmra.mrb[18].mxu0 %v16936_v63 }
 0x342   : > { %13432 = vmatpush1.bf16.msra.mxu0 %v16874_v29  ;;  %10762 = vmatprep.mubr.f32.mxu0 %v17306_v45 }
 0x343   : > { %13434 = vmatprep.subr.bf16.mxu0 %v16804_v19  ;;  %13536 = vmatpush3.bf16.msra.mxu1 %v16890_v0 }
 0x344   : > { %13538 = vmatprep.subr.bf16.mxu1 %v16958_v51 }
 0x345   : > { %10764 = vmatmul.mubr.f32.gmra.mrb[20].mxu0 %v17010_v56 }
 0x346   : > { %13436 = vmatpush1.bf16.msra.mxu0 %v16790_v16  ;;  %10852 = vmatprep.mubr.f32.mxu0 %v17306_v45  ;;  %v10131_v48 = vpop.permute.xlu1 %10130 }
 0x347   : > { %13438 = vmatprep.subr.bf16.mxu0 %v16908_v23  ;;  %13540 = vmatpush3.bf16.msra.mxu1 %v16958_v51 }
 0x348   : > { %12588 = vmatprep.subr.mxu1 %v17021_v43 }
 0x34a   : > { %13440 = vmatpush1.bf16.msra.mxu0 %v16902_v21 }
 0x34b   : > { %13442 = vmatprep.subr.bf16.mxu0 %v16978_v37  ;;  %12589 = vmatpush3.msra.mxu1 %v17021_v43  ;;  %v10136_v16 = vpop.permute.xlu1 %10135 }
 0x34c   : > { %12591 = vmatmul.mubr.f32.vlgmr.msra.gmra.mrb[18].mxu1 %v17010_v56 }
 0x34e   : > { %13444 = vmatpush1.bf16.msra.mxu0 %v16972_v1 }
 0x34f   : > { %10803 = vmatprep.subr.mxu0 %v17034_v27 }
 0x352   : > { %10805 = vmatpush1.msra.mxu0 %v17036_v7 }
 0x353   : > { %10854 = vmatmul.mubr.f32.vlgmr.msra.gmra.mrb[18].mxu0 %v16936_v63 }
 0x354   : > { %10859 = vmatprep.mubr.f32.mxu0 %v17306_v45 }
 0x357   : > { %10861 = vmatmul.mubr.f32.gmra.mrb[20].mxu0 %v17010_v56 }
 0x41f   : > { %v12592_v19 = vpop.f32.mrb[18].mxu1 }
 0x420   : > { %v13572_v36 = vadd.f32 %v12592_v19, %v10136_v16  ;;  %v11450_v22 = vpop.f32.mrb[19].mxu1 }
 0x421   : > { %v13573_v29 = vadd.f32 %v11450_v22, %v10131_v48 }
 0x422   : > { %v11465_v0 = vmax.f32 %v13572_v36, 0.0 }
 0x423   : > { %v11462_v24 = vmax.f32 %v13573_v29, 0.0 }
 0x424   : > { %11472 = vst.msk [vmem:[%s251_s27 + $0x28] sm:$0xff] %vm11468_vm7, %v11465_v0 }
 0x425   : > { %11469 = vst.msk [vmem:[%s251_s27 + $0x10] sm:$0xff] %vm11468_vm7, %v11462_v24 }
 0x426   : > { %v10855_v21 = vpop.f32.mrb[18].mxu0 }
 0x427   : > { %v13568_v45 = vadd.f32 %v10855_v21, %v10131_v48  ;;  %v10857_v32 = vpop.f32.mrb[19].mxu0 }
 0x428   : > { %v13569_v13 = vadd.f32 %v10857_v32, %v10131_v48 }
 0x429   : > { %v11460_v23 = vmax.f32 %v13568_v45, 0.0 }
 0x42a   : > { %v11461_v63 = vmax.f32 %v13569_v13, 0.0  ;;  %v10862_v53 = vpop.f32.mrb[20].mxu0 }
 0x42b   : > { %11466 = vst [vmem:[%s251_s27] sm:$0xff] %v11460_v23  ;;  %v13570_v58 = vadd.f32 %v10862_v53, %v10136_v16  ;;  %v10864_v51 = vpop.f32.mrb[21].mxu0 }
 0x42c   : > { %11467 = vst [vmem:[%s251_s27 + $0x8] sm:$0xff] %v11461_v63  ;;  %v13571_v54 = vadd.f32 %v10864_v51, %v10136_v16 }
 0x42d   : > { %v11463_v41 = vmax.f32 %v13570_v58, 0.0 }
 0x42e   : > { %v11464_v49 = vmax.f32 %v13571_v54, 0.0 }
 0x42f   : > { %11470 = vst [vmem:[%s251_s27 + $0x18] sm:$0xff] %v11463_v41 }
 0x430   : > { %11471 = vst [vmem:[%s251_s27 + $0x20] sm:$0xff] %v11464_v49 }
 0x431 PF: > { %s16_s21 = sadd.s32 1, %s13821_s21  }
 0x432   : > { %p13_p4 = scmp.ge.s32.totalorder %s16_s21, 4  }
 0x434   :  { %15 = sbr.rel (!%p13_p4) target bundleno = 1 (0x1), region = 74 }

</bundles_post_ra>
